<compile_context>
chip_gen: v5e
topology: v5e:2x2
jax: 0.10.0
libtpu: 0.0.40
codegen_flags: <defaults>
</compile_context>

<pallas_src>
import functools
import math

import jax
import jax.numpy as jnp
from jax.experimental import pallas as pl
from jax.experimental.pallas import tpu as pltpu

_INV_SQRT_2 = 1.0 / math.sqrt(2.0)
_SQRT_2_OVER_PI = math.sqrt(2.0 / math.pi)


def _erf(x):
    # Abramowitz & Stegun 7.1.26 (|err| <= 1.5e-7): "exact" erf-GELU semantics
    # to f32 noise using only ops guaranteed to lower in Mosaic (exp/mul/add),
    # instead of depending on a lax.erf lowering rule.
    a1, a2, a3, a4, a5 = (0.254829592, -0.284496736, 1.421413741,
                          -1.453152027, 1.061405429)
    p = 0.3275911
    z = jnp.abs(x)
    t = 1.0 / (1.0 + p * z)
    poly = ((((a5 * t + a4) * t + a3) * t + a2) * t + a1) * t
    y = 1.0 - poly * jnp.exp(-z * z)
    return jnp.where(x >= 0, y, -y)


def _gelu(x, fast_math):
    if fast_math:
        # tanh GELU routes through the EUP (separate bundle slot) instead of a
        # long VPU polynomial over the (S, H) tensor.
        inner = _SQRT_2_OVER_PI * (x + 0.044715 * x * x * x)
        return 0.5 * x * (1.0 + jnp.tanh(inner))
    return 0.5 * x * (1.0 + _erf(x * _INV_SQRT_2))   # PyTorch nn.GELU default


def _layernorm(h, gamma, beta, eps=1e-5):
    mu = jnp.mean(h, axis=-1, keepdims=True)
    c = h - mu
    var = jnp.mean(c * c, axis=-1, keepdims=True)
    return c * jax.lax.rsqrt(var + eps) * gamma + beta


def transformer_block_kernel(
    x_ref,
    ln1_g_ref, ln1_b_ref,
    wqkv_ref, bqkv_ref,        # (E, 3E) pre-transposed, Q cols pre-scaled; (1, 3E) f32
    wo_ref, bo_ref,            # (E, E) pre-transposed; (1, E) f32
    ln2_g_ref, ln2_b_ref,
    w1_ref, b1_ref,            # (E, H) pre-transposed; (1, H) f32
    w2_ref, b2_ref,            # (H, E) pre-transposed; (1, E) f32
    o_ref,
    *, num_heads: int, compute_dtype, head_split: str, fast_math: bool,
):
    x = x_ref[0]                                   # (S, E) f32
    S, E = x.shape
    dH = E // num_heads
    cdt = compute_dtype

    # ---- LayerNorm 1 (f32 element-wise) ----
    h1 = _layernorm(x, ln1_g_ref[...], ln1_b_ref[...])

    # ---- fused QKV projection: one (S,E)@(E,3E) MXU matmul, f32 accumulation ----
    qkv = jnp.dot(h1.astype(cdt), wqkv_ref[...],
                  preferred_element_type=jnp.float32) + bqkv_ref[...]   # (S,3E) f32

    # Q/K/V are sliced from the f32 accumulation (lane-aligned slices of width
    # E) and cast per slice -- no full bf16 copy of qkv kept live -- then moved
    # to head-major (nh, S, dH) with a single relayout.
    def split_heads(base):
        blk = qkv[:, base:base + E].astype(cdt)                   # (S, E)
        if head_split == "einshape":
            return pltpu.einshape("s(hd)->hsd", blk, h=num_heads, d=dH)
        if head_split == "reshape_swap":
            return jnp.swapaxes(blk.reshape(S, num_heads, dH), 0, 1)
        # "stack": conservative per-head slicing (always lowers; slower).
        return jnp.stack(
            [blk[:, h * dH:(h + 1) * dH] for h in range(num_heads)], axis=0)

    q = split_heads(0)           # 1/sqrt(dH) already folded into the Q weights
    k = split_heads(E)
    v = split_heads(2 * E)

    # ---- attention, batched over heads (leading batch dim -> batched MXU) ----
    s = jnp.einsum("hqd,hkd->hqk", q, k,
                   preferred_element_type=jnp.float32)            # (nh,S,S) f32
    # TODO(synk): if S is padded on the host, mask padded key columns to -inf here.
    s = s - jnp.max(s, axis=-1, keepdims=True)
    p = jnp.exp(s)
    # approx=True -> EUP vrcp slot on the fast path; exact on the f32 check path.
    p = p * pl.reciprocal(jnp.sum(p, axis=-1, keepdims=True), approx=fast_math)
    ctx = jnp.einsum("hqk,hkd->hqd", p.astype(cdt), v,
                     preferred_element_type=jnp.float32)          # (nh,S,dH) f32

    # ---- merge heads with ONE relayout, then a single K=E out-projection ----
    ctx = ctx.astype(cdt)
    if head_split == "einshape":
        ctx2d = pltpu.einshape("hsd->s(hd)", ctx)                 # (S, E)
    elif head_split == "reshape_swap":
        ctx2d = jnp.swapaxes(ctx, 0, 1).reshape(S, E)
    else:
        ctx2d = jnp.concatenate([ctx[h] for h in range(num_heads)], axis=-1)
    attn = jnp.dot(ctx2d, wo_ref[...],
                   preferred_element_type=jnp.float32) + bo_ref[...]

    x1 = x + attn                                   # residual 1 (f32)

    # ---- LayerNorm 2 + MLP ----
    h2 = _layernorm(x1, ln2_g_ref[...], ln2_b_ref[...])
    z = jnp.dot(h2.astype(cdt), w1_ref[...],
                preferred_element_type=jnp.float32) + b1_ref[...]
    z = _gelu(z, fast_math)
    z = jnp.dot(z.astype(cdt), w2_ref[...],
                preferred_element_type=jnp.float32) + b2_ref[...]
    # dropout p=0.0 -> identity

    o_ref[0] = (x1 + z).astype(o_ref.dtype)         # residual 2


def _pick_vmem_limit_bytes():
    # ~75% of physical per-core VMEM (leave compiler scratch headroom):
    # v5e/v6e 128 MiB -> 96 MiB (well above the 16/32 MiB scoped defaults),
    # v7x 64 MiB -> 48 MiB.  Fallback is the v7x-safe 48 MiB.
    try:
        cap = int(pltpu.get_tpu_info().vmem_capacity_bytes)
    except Exception:
        cap = 64 * 1024 * 1024
    return min((cap * 3) // 4, 100 * 1024 * 1024)


def transformer_block(x, params, num_heads, *, compute_dtype=jnp.bfloat16,
                      fast_math=None, head_split="einshape",
                      single_buffer_weights=True):
    """params use the PyTorch layout (see make_params); all layout / dtype /
    scale prep is done once here on the host so the kernel stays clean."""
    B, S, E = x.shape
    H = params["w1"].shape[0]
    assert E % num_heads == 0
    dH = E // num_heads
    if fast_math is None:
        fast_math = jnp.dtype(compute_dtype) != jnp.dtype(jnp.float32)
    f32 = jnp.float32
    scale = 1.0 / math.sqrt(dH)

    # --- one-time host-side weight prep: pre-transpose, fold 1/sqrt(dH) into
    #     the Q projection, cast matmul weights to the MXU dtype (biases / LN
    #     params stay f32 -> f32 accumulate & add). ---
    qkv_scale = jnp.concatenate(
        [jnp.full((E,), scale, f32), jnp.ones((2 * E,), f32)])
    wqkv_t = (params["wqkv"] * qkv_scale[:, None]).T.astype(compute_dtype)   # (E, 3E)
    bqkv = (params["bqkv"] * qkv_scale[None, :]).astype(f32)                 # (1, 3E)
    wo_t = params["wo"].T.astype(compute_dtype)                              # (E, E)
    w1_t = params["w1"].T.astype(compute_dtype)                              # (E, H)
    w2_t = params["w2"].T.astype(compute_dtype)                              # (H, E)

    # Grid-invariant weights/biases: constant index_map -> DMA'd once per core;
    # pl.Buffered(1) single-buffers them (double-buffering data that never
    # changes across the B grid is pure VMEM waste).
    def const2d(shape):
        if single_buffer_weights:
            return pl.BlockSpec(shape, lambda b: (0, 0),
                                pipeline_mode=pl.Buffered(1))
        return pl.BlockSpec(shape, lambda b: (0, 0))

    kernel = functools.partial(
        transformer_block_kernel, num_heads=num_heads,
        compute_dtype=compute_dtype, head_split=head_split,
        fast_math=fast_math)

    return pl.pallas_call(
        kernel,
        out_shape=jax.ShapeDtypeStruct((B, S, E), x.dtype),
        grid_spec=pltpu.PrefetchScalarGridSpec(
            num_scalar_prefetch=0,
            grid=(B,),
            in_specs=[
                pl.BlockSpec((1, S, E), lambda b: (b, 0, 0)),   # x (double-buffered)
                const2d((1, E)), const2d((1, E)),               # ln1 gamma/beta
                const2d((E, 3 * E)), const2d((1, 3 * E)),       # in_proj W^T, b
                const2d((E, E)), const2d((1, E)),               # out_proj W^T, b
                const2d((1, E)), const2d((1, E)),               # ln2 gamma/beta
                const2d((E, H)), const2d((1, H)),               # mlp fc1 W^T, b
                const2d((H, E)), const2d((1, E)),               # mlp fc2 W^T, b
            ],
            out_specs=pl.BlockSpec((1, S, E), lambda b: (b, 0, 0)),
        ),
        compiler_params=pltpu.CompilerParams(
            # batch elements are independent -> shard across both v7x cores
            dimension_semantics=("parallel",),
            vmem_limit_bytes=_pick_vmem_limit_bytes(),
        ),
    )(
        x,
        params["ln1_g"], params["ln1_b"],
        wqkv_t, bqkv,
        wo_t, params["bo"],
        params["ln2_g"], params["ln2_b"],
        w1_t, params["b1"],
        w2_t, params["b2"],
    )


# (head_split, single_buffer_weights) configurations, fastest first.  Later
# entries are compatibility fallbacks only, in case this JAX build lacks
# pltpu.einshape grouping or pl.Buffered(1) pipeline_mode on pallas_call inputs.
_CONFIGS = [
    ("einshape", True), ("reshape_swap", True), ("stack", True),
    ("einshape", False), ("reshape_swap", False), ("stack", False),
]
_WORKING_CONFIG = None


def transformer_block_auto(x, params, num_heads, *, compute_dtype=jnp.bfloat16):
    """Run the fused block with the preferred (reviewed) configuration, falling
    back to more conservative lowerings only if lowering is unsupported."""
    global _WORKING_CONFIG
    configs = list(_CONFIGS)
    if _WORKING_CONFIG is not None:
        configs.remove(_WORKING_CONFIG)
        configs.insert(0, _WORKING_CONFIG)
    last_err = None
    for head_split, single_buf in configs:
        try:
            out = transformer_block(
                x, params, num_heads, compute_dtype=compute_dtype,
                head_split=head_split, single_buffer_weights=single_buf)
            out = jax.block_until_ready(out)
            _WORKING_CONFIG = (head_split, single_buf)
            return out
        except Exception as e:   # lowering incompatibility on this JAX build
            last_err = e
    raise last_err


def _reference(x, params, num_heads):
    """Pure-JAX reference matching PyTorch TransformerBlock.forward semantics
    (HIGHEST matmul precision so the f32 comparison is meaningful on TPU)."""
    B, S, E = x.shape
    dH = E // num_heads
    hp = jax.lax.Precision.HIGHEST

    def ln(h, g, b):
        mu = jnp.mean(h, axis=-1, keepdims=True)
        var = jnp.mean((h - mu) ** 2, axis=-1, keepdims=True)
        return (h - mu) / jnp.sqrt(var + 1e-5) * g + b

    h = ln(x, params["ln1_g"], params["ln1_b"])
    qkv = jnp.matmul(h, params["wqkv"].T, precision=hp) + params["bqkv"]
    q, k, v = jnp.split(qkv, 3, axis=-1)
    q = q.reshape(B, S, num_heads, dH).transpose(0, 2, 1, 3)
    k = k.reshape(B, S, num_heads, dH).transpose(0, 2, 1, 3)
    v = v.reshape(B, S, num_heads, dH).transpose(0, 2, 1, 3)
    s = jnp.einsum("bhqd,bhkd->bhqk", q, k, precision=hp) / math.sqrt(dH)
    p = jax.nn.softmax(s, axis=-1)
    a = jnp.einsum("bhqk,bhkd->bhqd", p, v, precision=hp)
    a = a.transpose(0, 2, 1, 3).reshape(B, S, E)
    a = jnp.matmul(a, params["wo"].T, precision=hp) + params["bo"]
    x1 = x + a
    h2 = ln(x1, params["ln2_g"], params["ln2_b"])
    z = jax.nn.gelu(jnp.matmul(h2, params["w1"].T, precision=hp) + params["b1"],
                    approximate=False)
    z = jnp.matmul(z, params["w2"].T, precision=hp) + params["b2"]
    return x1 + z


def make_params(key, embed_dim, mlp_ratio=4.0):
    H = int(embed_dim * mlp_ratio)
    ks = jax.random.split(key, 6)
    scale = 0.1
    return {
        "ln1_g": jnp.ones((1, embed_dim), jnp.float32),
        "ln1_b": jnp.zeros((1, embed_dim), jnp.float32),
        "wqkv": scale * jax.random.normal(ks[0], (3 * embed_dim, embed_dim), jnp.float32),
        "bqkv": scale * jax.random.normal(ks[1], (1, 3 * embed_dim), jnp.float32),
        "wo": scale * jax.random.normal(ks[2], (embed_dim, embed_dim), jnp.float32),
        "bo": jnp.zeros((1, embed_dim), jnp.float32),
        "ln2_g": jnp.ones((1, embed_dim), jnp.float32),
        "ln2_b": jnp.zeros((1, embed_dim), jnp.float32),
        "w1": scale * jax.random.normal(ks[3], (H, embed_dim), jnp.float32),
        "b1": scale * jax.random.normal(ks[4], (1, H), jnp.float32),
        "w2": scale * jax.random.normal(ks[5], (embed_dim, H), jnp.float32),
        "b2": jnp.zeros((1, embed_dim), jnp.float32),
    }


if __name__ == "__main__":
    B, S, E, num_heads = 2, 8, 32, 4

    key = jax.random.PRNGKey(0)
    kx, kp = jax.random.split(key)
    x = jax.random.normal(kx, (B, S, E), jnp.float32)
    params = make_params(kp, E, mlp_ratio=4.0)

    ref = _reference(x, params, num_heads)

    # f32 exact path (exact reciprocal + erf-GELU); tolerance covers MXU
    # multi-pass f32 rounding differences vs the XLA reference.
    out_f32 = transformer_block_auto(x, params, num_heads,
                                     compute_dtype=jnp.float32)
    assert out_f32.shape == (B, S, E)
    assert jnp.allclose(out_f32, ref, atol=3e-3, rtol=3e-3), (
        float(jnp.max(jnp.abs(out_f32 - ref))))

    # bf16 MXU fast path (default; approx reciprocal + tanh GELU): looser tol.
    out_bf16 = transformer_block_auto(x, params, num_heads,
                                      compute_dtype=jnp.bfloat16)
    assert out_bf16.shape == (B, S, E)
    assert jnp.allclose(out_bf16, ref, atol=5e-2, rtol=5e-2), (
        float(jnp.max(jnp.abs(out_bf16 - ref))))

    print("KERNEL_OK")
</pallas_src>

<mosaic_0001>
module attributes {stable_mosaic.version = 11 : i64} {
  func.func @transformer_block_kernel(%arg0: i32, %arg1: memref<1x8x32xf32, #tpu.memory_space<vmem>>, %arg2: memref<1x32xf32, #tpu.memory_space<vmem>>, %arg3: memref<1x32xf32, #tpu.memory_space<vmem>>, %arg4: memref<32x96xf32, #tpu.memory_space<vmem>>, %arg5: memref<1x96xf32, #tpu.memory_space<vmem>>, %arg6: memref<32x32xf32, #tpu.memory_space<vmem>>, %arg7: memref<1x32xf32, #tpu.memory_space<vmem>>, %arg8: memref<1x32xf32, #tpu.memory_space<vmem>>, %arg9: memref<1x32xf32, #tpu.memory_space<vmem>>, %arg10: memref<32x128xf32, #tpu.memory_space<vmem>>, %arg11: memref<1x128xf32, #tpu.memory_space<vmem>>, %arg12: memref<128x32xf32, #tpu.memory_space<vmem>>, %arg13: memref<1x32xf32, #tpu.memory_space<vmem>>, %arg14: memref<1x8x32xf32, #tpu.memory_space<vmem>>) attributes {dimension_semantics = [#tpu.dimension_semantics<parallel>], iteration_bounds = array<i64: 2>, scalar_prefetch = 0 : i64, scratch_operands = 0 : i64, tpu.core_type = #tpu.core_type<tc>, window_params = [{transform_indices = @transform_0, window_bounds = array<i64: 1, 8, 32>}, {pipeline_mode = #tpu.pipeline_mode<synchronous>, transform_indices = @transform_1, window_bounds = array<i64: 1, 32>}, {pipeline_mode = #tpu.pipeline_mode<synchronous>, transform_indices = @transform_2, window_bounds = array<i64: 1, 32>}, {pipeline_mode = #tpu.pipeline_mode<synchronous>, transform_indices = @transform_3, window_bounds = array<i64: 32, 96>}, {pipeline_mode = #tpu.pipeline_mode<synchronous>, transform_indices = @transform_4, window_bounds = array<i64: 1, 96>}, {pipeline_mode = #tpu.pipeline_mode<synchronous>, transform_indices = @transform_5, window_bounds = array<i64: 32, 32>}, {pipeline_mode = #tpu.pipeline_mode<synchronous>, transform_indices = @transform_6, window_bounds = array<i64: 1, 32>}, {pipeline_mode = #tpu.pipeline_mode<synchronous>, transform_indices = @transform_7, window_bounds = array<i64: 1, 32>}, {pipeline_mode = #tpu.pipeline_mode<synchronous>, transform_indices = @transform_8, window_bounds = array<i64: 1, 32>}, {pipeline_mode = #tpu.pipeline_mode<synchronous>, transform_indices = @transform_9, window_bounds = array<i64: 32, 128>}, {pipeline_mode = #tpu.pipeline_mode<synchronous>, transform_indices = @transform_10, window_bounds = array<i64: 1, 128>}, {pipeline_mode = #tpu.pipeline_mode<synchronous>, transform_indices = @transform_11, window_bounds = array<i64: 128, 32>}, {pipeline_mode = #tpu.pipeline_mode<synchronous>, transform_indices = @transform_12, window_bounds = array<i64: 1, 32>}, {transform_indices = @transform_13, window_bounds = array<i64: 1, 8, 32>}]} {
    %c0 = arith.constant 0 : index
    %c0_0 = arith.constant 0 : index
    %c0_1 = arith.constant 0 : index
    %0 = vector.load %arg1[%c0, %c0_0, %c0_1] : memref<1x8x32xf32, #tpu.memory_space<vmem>>, vector<1x8x32xf32>
    %1 = vector.shape_cast %0 : vector<1x8x32xf32> to vector<8x32xf32>
    %c0_2 = arith.constant 0 : index
    %c0_3 = arith.constant 0 : index
    %2 = vector.load %arg2[%c0_2, %c0_3] : memref<1x32xf32, #tpu.memory_space<vmem>>, vector<1x32xf32>
    %c0_4 = arith.constant 0 : index
    %c0_5 = arith.constant 0 : index
    %3 = vector.load %arg3[%c0_4, %c0_5] : memref<1x32xf32, #tpu.memory_space<vmem>>, vector<1x32xf32>
    %cst = arith.constant dense<0.000000e+00> : vector<8xf32>
    %4 = vector.multi_reduction <add>, %1, %cst [1] : vector<8x32xf32> to vector<8xf32>
    %5 = vector.shape_cast %4 : vector<8xf32> to vector<8x1xf32>
    %cst_6 = arith.constant 3.200000e+01 : f32
    %6 = vector.broadcast %cst_6 : f32 to vector<8x1xf32>
    %7 = arith.divf %5, %6 : vector<8x1xf32>
    %8 = vector.broadcast %7 : vector<8x1xf32> to vector<8x32xf32>
    %9 = arith.subf %1, %8 : vector<8x32xf32>
    %10 = arith.mulf %9, %9 : vector<8x32xf32>
    %cst_7 = arith.constant dense<0.000000e+00> : vector<8xf32>
    %11 = vector.multi_reduction <add>, %10, %cst_7 [1] : vector<8x32xf32> to vector<8xf32>
    %12 = vector.shape_cast %11 : vector<8xf32> to vector<8x1xf32>
    %cst_8 = arith.constant 3.200000e+01 : f32
    %13 = vector.broadcast %cst_8 : f32 to vector<8x1xf32>
    %14 = arith.divf %12, %13 : vector<8x1xf32>
    %cst_9 = arith.constant 9.99999974E-6 : f32
    %15 = vector.broadcast %cst_9 : f32 to vector<8x1xf32>
    %16 = arith.addf %14, %15 : vector<8x1xf32>
    %17 = math.rsqrt %16 : vector<8x1xf32>
    %18 = vector.broadcast %17 : vector<8x1xf32> to vector<8x32xf32>
    %19 = arith.mulf %9, %18 : vector<8x32xf32>
    %20 = vector.broadcast %2 : vector<1x32xf32> to vector<8x32xf32>
    %21 = arith.mulf %19, %20 : vector<8x32xf32>
    %22 = vector.broadcast %3 : vector<1x32xf32> to vector<8x32xf32>
    %23 = arith.addf %21, %22 : vector<8x32xf32>
    %c0_10 = arith.constant 0 : index
    %c0_11 = arith.constant 0 : index
    %24 = vector.load %arg4[%c0_10, %c0_11] : memref<32x96xf32, #tpu.memory_space<vmem>>, vector<32x96xf32>
    %cst_12 = arith.constant dense<0.000000e+00> : vector<8x96xf32>
    %25 = tpu.matmul %23, %24, %cst_12 {dimension_numbers = #tpu.dot_dimension_numbers<[1], [0], [0], [1], [0, 0, 1, 1], [], []>} : vector<8x32xf32>, vector<32x96xf32>, vector<8x96xf32> -> vector<8x96xf32>
    %c0_13 = arith.constant 0 : index
    %c0_14 = arith.constant 0 : index
    %26 = vector.load %arg5[%c0_13, %c0_14] : memref<1x96xf32, #tpu.memory_space<vmem>>, vector<1x96xf32>
    %27 = vector.broadcast %26 : vector<1x96xf32> to vector<8x96xf32>
    %28 = arith.addf %25, %27 : vector<8x96xf32>
    %29 = vector.extract_strided_slice %28 {offsets = [0, 0], sizes = [8, 32], strides = [1, 1]} : vector<8x96xf32> to vector<8x32xf32>
    %30 = vector.shape_cast %29 : vector<8x32xf32> to vector<8x4x8xf32>
    %31 = tpu.transpose %30, [1, 0, 2] : vector<8x4x8xf32> -> vector<4x8x8xf32>
    %32 = vector.extract_strided_slice %28 {offsets = [0, 32], sizes = [8, 32], strides = [1, 1]} : vector<8x96xf32> to vector<8x32xf32>
    %33 = vector.shape_cast %32 : vector<8x32xf32> to vector<8x4x8xf32>
    %34 = tpu.transpose %33, [1, 0, 2] : vector<8x4x8xf32> -> vector<4x8x8xf32>
    %35 = vector.extract_strided_slice %28 {offsets = [0, 64], sizes = [8, 32], strides = [1, 1]} : vector<8x96xf32> to vector<8x32xf32>
    %36 = vector.shape_cast %35 : vector<8x32xf32> to vector<8x4x8xf32>
    %37 = tpu.transpose %36, [1, 0, 2] : vector<8x4x8xf32> -> vector<4x8x8xf32>
    "tpu.trace_start"() <{level = 10 : i32, message = "hqd,hkd->hqk"}> : () -> ()
    %cst_15 = arith.constant dense<0.000000e+00> : vector<4x8x8xf32>
    %38 = tpu.matmul %31, %34, %cst_15 {dimension_numbers = #tpu.dot_dimension_numbers<[2], [2], [1], [1], [0, 0, 0, 1, 1, 1], [0], [0]>} : vector<4x8x8xf32>, vector<4x8x8xf32>, vector<4x8x8xf32> -> vector<4x8x8xf32>
    "tpu.trace_stop"() : () -> ()
    %cst_16 = arith.constant dense<0xFF800000> : vector<4x8xf32>
    %39 = vector.multi_reduction <maximumf>, %38, %cst_16 [2] : vector<4x8x8xf32> to vector<4x8xf32>
    %40 = vector.shape_cast %39 : vector<4x8xf32> to vector<4x8x1xf32>
    %41 = vector.broadcast %40 : vector<4x8x1xf32> to vector<4x8x8xf32>
    %42 = arith.subf %38, %41 : vector<4x8x8xf32>
    %43 = math.exp %42 : vector<4x8x8xf32>
    %cst_17 = arith.constant dense<0.000000e+00> : vector<4x8xf32>
    %44 = vector.multi_reduction <add>, %43, %cst_17 [2] : vector<4x8x8xf32> to vector<4x8xf32>
    %45 = vector.shape_cast %44 : vector<4x8xf32> to vector<4x8x1xf32>
    %46 = tpu.reciprocal %45 : vector<4x8x1xf32> -> vector<4x8x1xf32>
    %47 = vector.broadcast %46 : vector<4x8x1xf32> to vector<4x8x8xf32>
    %48 = arith.mulf %43, %47 : vector<4x8x8xf32>
    "tpu.trace_start"() <{level = 10 : i32, message = "hqk,hkd->hqd"}> : () -> ()
    %cst_18 = arith.constant dense<0.000000e+00> : vector<4x8x8xf32>
    %49 = tpu.matmul %48, %37, %cst_18 {dimension_numbers = #tpu.dot_dimension_numbers<[2], [1], [1], [2], [0, 0, 0, 1, 1, 2], [0], [0]>} : vector<4x8x8xf32>, vector<4x8x8xf32>, vector<4x8x8xf32> -> vector<4x8x8xf32>
    "tpu.trace_stop"() : () -> ()
    %50 = tpu.transpose %49, [1, 0, 2] : vector<4x8x8xf32> -> vector<8x4x8xf32>
    %51 = vector.shape_cast %50 : vector<8x4x8xf32> to vector<8x32xf32>
    %c0_19 = arith.constant 0 : index
    %c0_20 = arith.constant 0 : index
    %52 = vector.load %arg6[%c0_19, %c0_20] : memref<32x32xf32, #tpu.memory_space<vmem>>, vector<32x32xf32>
    %cst_21 = arith.constant dense<0.000000e+00> : vector<8x32xf32>
    %53 = tpu.matmul %51, %52, %cst_21 {dimension_numbers = #tpu.dot_dimension_numbers<[1], [0], [0], [1], [0, 0, 1, 1], [], []>} : vector<8x32xf32>, vector<32x32xf32>, vector<8x32xf32> -> vector<8x32xf32>
    %c0_22 = arith.constant 0 : index
    %c0_23 = arith.constant 0 : index
    %54 = vector.load %arg7[%c0_22, %c0_23] : memref<1x32xf32, #tpu.memory_space<vmem>>, vector<1x32xf32>
    %55 = vector.broadcast %54 : vector<1x32xf32> to vector<8x32xf32>
    %56 = arith.addf %53, %55 : vector<8x32xf32>
    %57 = arith.addf %1, %56 : vector<8x32xf32>
    %c0_24 = arith.constant 0 : index
    %c0_25 = arith.constant 0 : index
    %58 = vector.load %arg8[%c0_24, %c0_25] : memref<1x32xf32, #tpu.memory_space<vmem>>, vector<1x32xf32>
    %c0_26 = arith.constant 0 : index
    %c0_27 = arith.constant 0 : index
    %59 = vector.load %arg9[%c0_26, %c0_27] : memref<1x32xf32, #tpu.memory_space<vmem>>, vector<1x32xf32>
    %cst_28 = arith.constant dense<0.000000e+00> : vector<8xf32>
    %60 = vector.multi_reduction <add>, %57, %cst_28 [1] : vector<8x32xf32> to vector<8xf32>
    %61 = vector.shape_cast %60 : vector<8xf32> to vector<8x1xf32>
    %cst_29 = arith.constant 3.200000e+01 : f32
    %62 = vector.broadcast %cst_29 : f32 to vector<8x1xf32>
    %63 = arith.divf %61, %62 : vector<8x1xf32>
    %64 = vector.broadcast %63 : vector<8x1xf32> to vector<8x32xf32>
    %65 = arith.subf %57, %64 : vector<8x32xf32>
    %66 = arith.mulf %65, %65 : vector<8x32xf32>
    %cst_30 = arith.constant dense<0.000000e+00> : vector<8xf32>
    %67 = vector.multi_reduction <add>, %66, %cst_30 [1] : vector<8x32xf32> to vector<8xf32>
    %68 = vector.shape_cast %67 : vector<8xf32> to vector<8x1xf32>
    %cst_31 = arith.constant 3.200000e+01 : f32
    %69 = vector.broadcast %cst_31 : f32 to vector<8x1xf32>
    %70 = arith.divf %68, %69 : vector<8x1xf32>
    %cst_32 = arith.constant 9.99999974E-6 : f32
    %71 = vector.broadcast %cst_32 : f32 to vector<8x1xf32>
    %72 = arith.addf %70, %71 : vector<8x1xf32>
    %73 = math.rsqrt %72 : vector<8x1xf32>
    %74 = vector.broadcast %73 : vector<8x1xf32> to vector<8x32xf32>
    %75 = arith.mulf %65, %74 : vector<8x32xf32>
    %76 = vector.broadcast %58 : vector<1x32xf32> to vector<8x32xf32>
    %77 = arith.mulf %75, %76 : vector<8x32xf32>
    %78 = vector.broadcast %59 : vector<1x32xf32> to vector<8x32xf32>
    %79 = arith.addf %77, %78 : vector<8x32xf32>
    %c0_33 = arith.constant 0 : index
    %c0_34 = arith.constant 0 : index
    %80 = vector.load %arg10[%c0_33, %c0_34] : memref<32x128xf32, #tpu.memory_space<vmem>>, vector<32x128xf32>
    %cst_35 = arith.constant dense<0.000000e+00> : vector<8x128xf32>
    %81 = tpu.matmul %79, %80, %cst_35 {dimension_numbers = #tpu.dot_dimension_numbers<[1], [0], [0], [1], [0, 0, 1, 1], [], []>} : vector<8x32xf32>, vector<32x128xf32>, vector<8x128xf32> -> vector<8x128xf32>
    %c0_36 = arith.constant 0 : index
    %c0_37 = arith.constant 0 : index
    %82 = vector.load %arg11[%c0_36, %c0_37] : memref<1x128xf32, #tpu.memory_space<vmem>>, vector<1x128xf32>
    %83 = vector.broadcast %82 : vector<1x128xf32> to vector<8x128xf32>
    %84 = arith.addf %81, %83 : vector<8x128xf32>
    %cst_38 = arith.constant 5.000000e-01 : f32
    %85 = vector.broadcast %cst_38 : f32 to vector<8x128xf32>
    %86 = arith.mulf %85, %84 : vector<8x128xf32>
    %cst_39 = arith.constant 0.707106769 : f32
    %87 = vector.broadcast %cst_39 : f32 to vector<8x128xf32>
    %88 = arith.mulf %84, %87 : vector<8x128xf32>
    %89 = math.absf %88 : vector<8x128xf32>
    %cst_40 = arith.constant 0.327591091 : f32
    %90 = vector.broadcast %cst_40 : f32 to vector<8x128xf32>
    %91 = arith.mulf %90, %89 : vector<8x128xf32>
    %cst_41 = arith.constant 1.000000e+00 : f32
    %92 = vector.broadcast %cst_41 : f32 to vector<8x128xf32>
    %93 = arith.addf %92, %91 : vector<8x128xf32>
    %cst_42 = arith.constant 1.000000e+00 : f32
    %94 = vector.broadcast %cst_42 : f32 to vector<8x128xf32>
    %95 = arith.divf %94, %93 : vector<8x128xf32>
    %cst_43 = arith.constant 1.06140542 : f32
    %96 = vector.broadcast %cst_43 : f32 to vector<8x128xf32>
    %97 = arith.mulf %96, %95 : vector<8x128xf32>
    %cst_44 = arith.constant -1.45315206 : f32
    %98 = vector.broadcast %cst_44 : f32 to vector<8x128xf32>
    %99 = arith.addf %97, %98 : vector<8x128xf32>
    %100 = arith.mulf %99, %95 : vector<8x128xf32>
    %cst_45 = arith.constant 1.42141378 : f32
    %101 = vector.broadcast %cst_45 : f32 to vector<8x128xf32>
    %102 = arith.addf %100, %101 : vector<8x128xf32>
    %103 = arith.mulf %102, %95 : vector<8x128xf32>
    %cst_46 = arith.constant -0.284496725 : f32
    %104 = vector.broadcast %cst_46 : f32 to vector<8x128xf32>
    %105 = arith.addf %103, %104 : vector<8x128xf32>
    %106 = arith.mulf %105, %95 : vector<8x128xf32>
    %cst_47 = arith.constant 0.254829586 : f32
    %107 = vector.broadcast %cst_47 : f32 to vector<8x128xf32>
    %108 = arith.addf %106, %107 : vector<8x128xf32>
    %109 = arith.mulf %108, %95 : vector<8x128xf32>
    %cst_48 = arith.constant 0.000000e+00 : f32
    %110 = vector.broadcast %cst_48 : f32 to vector<8x128xf32>
    %111 = arith.subf %110, %89 : vector<8x128xf32>
    %112 = arith.mulf %111, %89 : vector<8x128xf32>
    %113 = math.exp %112 : vector<8x128xf32>
    %114 = arith.mulf %109, %113 : vector<8x128xf32>
    %cst_49 = arith.constant 1.000000e+00 : f32
    %115 = vector.broadcast %cst_49 : f32 to vector<8x128xf32>
    %116 = arith.subf %115, %114 : vector<8x128xf32>
    %cst_50 = arith.constant 0.000000e+00 : f32
    %117 = vector.broadcast %cst_50 : f32 to vector<8x128xf32>
    %118 = arith.cmpf oge, %88, %117 : vector<8x128xf32>
    %cst_51 = arith.constant 0.000000e+00 : f32
    %119 = vector.broadcast %cst_51 : f32 to vector<8x128xf32>
    %120 = arith.subf %119, %116 : vector<8x128xf32>
    %121 = arith.select %118, %116, %120 : vector<8x128xi1>, vector<8x128xf32>
    %cst_52 = arith.constant 1.000000e+00 : f32
    %122 = vector.broadcast %cst_52 : f32 to vector<8x128xf32>
    %123 = arith.addf %122, %121 : vector<8x128xf32>
    %124 = arith.mulf %86, %123 : vector<8x128xf32>
    %c0_53 = arith.constant 0 : index
    %c0_54 = arith.constant 0 : index
    %125 = vector.load %arg12[%c0_53, %c0_54] : memref<128x32xf32, #tpu.memory_space<vmem>>, vector<128x32xf32>
    %cst_55 = arith.constant dense<0.000000e+00> : vector<8x32xf32>
    %126 = tpu.matmul %124, %125, %cst_55 {dimension_numbers = #tpu.dot_dimension_numbers<[1], [0], [0], [1], [0, 0, 1, 1], [], []>} : vector<8x128xf32>, vector<128x32xf32>, vector<8x32xf32> -> vector<8x32xf32>
    %c0_56 = arith.constant 0 : index
    %c0_57 = arith.constant 0 : index
    %127 = vector.load %arg13[%c0_56, %c0_57] : memref<1x32xf32, #tpu.memory_space<vmem>>, vector<1x32xf32>
    %128 = vector.broadcast %127 : vector<1x32xf32> to vector<8x32xf32>
    %129 = arith.addf %126, %128 : vector<8x32xf32>
    %130 = arith.addf %57, %129 : vector<8x32xf32>
    %c0_58 = arith.constant 0 : index
    %c0_59 = arith.constant 0 : index
    %c0_60 = arith.constant 0 : index
    %131 = vector.load %arg14[%c0_58, %c0_59, %c0_60] : memref<1x8x32xf32, #tpu.memory_space<vmem>>, vector<1x8x32xf32>
    %132 = vector.shape_cast %131 : vector<1x8x32xf32> to vector<8x32xf32>
    %133 = vector.shape_cast %130 : vector<8x32xf32> to vector<1x8x32xf32>
    tpu.vector_store %arg14[%c0_58, %c0_59, %c0_60], %133 {strides = array<i32>} : memref<1x8x32xf32, #tpu.memory_space<vmem>>, vector<1x8x32xf32>,
    return
  }
  func.func @transform_0(%arg0: i32) -> (i32, i32, i32) {
    %c0_i32 = arith.constant 0 : i32
    %c0_i32_0 = arith.constant 0 : i32
    %c0_i32_1 = arith.constant 0 : i32
    return %arg0, %c0_i32, %c0_i32_0 : i32, i32, i32
  }
  func.func @transform_1(%arg0: i32) -> (i32, i32) {
    %c0_i32 = arith.constant 0 : i32
    %c0_i32_0 = arith.constant 0 : i32
    %c0_i32_1 = arith.constant 0 : i32
    return %c0_i32, %c0_i32_0 : i32, i32
  }
  func.func @transform_2(%arg0: i32) -> (i32, i32) {
    %c0_i32 = arith.constant 0 : i32
    %c0_i32_0 = arith.constant 0 : i32
    %c0_i32_1 = arith.constant 0 : i32
    return %c0_i32, %c0_i32_0 : i32, i32
  }
  func.func @transform_3(%arg0: i32) -> (i32, i32) {
    %c0_i32 = arith.constant 0 : i32
    %c0_i32_0 = arith.constant 0 : i32
    %c0_i32_1 = arith.constant 0 : i32
    return %c0_i32, %c0_i32_0 : i32, i32
  }
  func.func @transform_4(%arg0: i32) -> (i32, i32) {
    %c0_i32 = arith.constant 0 : i32
    %c0_i32_0 = arith.constant 0 : i32
    %c0_i32_1 = arith.constant 0 : i32
    return %c0_i32, %c0_i32_0 : i32, i32
  }
  func.func @transform_5(%arg0: i32) -> (i32, i32) {
    %c0_i32 = arith.constant 0 : i32
    %c0_i32_0 = arith.constant 0 : i32
    %c0_i32_1 = arith.constant 0 : i32
    return %c0_i32, %c0_i32_0 : i32, i32
  }
  func.func @transform_6(%arg0: i32) -> (i32, i32) {
    %c0_i32 = arith.constant 0 : i32
    %c0_i32_0 = arith.constant 0 : i32
    %c0_i32_1 = arith.constant 0 : i32
    return %c0_i32, %c0_i32_0 : i32, i32
  }
  func.func @transform_7(%arg0: i32) -> (i32, i32) {
    %c0_i32 = arith.constant 0 : i32
    %c0_i32_0 = arith.constant 0 : i32
    %c0_i32_1 = arith.constant 0 : i32
    return %c0_i32, %c0_i32_0 : i32, i32
  }
  func.func @transform_8(%arg0: i32) -> (i32, i32) {
    %c0_i32 = arith.constant 0 : i32
    %c0_i32_0 = arith.constant 0 : i32
    %c0_i32_1 = arith.constant 0 : i32
    return %c0_i32, %c0_i32_0 : i32, i32
  }
  func.func @transform_9(%arg0: i32) -> (i32, i32) {
    %c0_i32 = arith.constant 0 : i32
    %c0_i32_0 = arith.constant 0 : i32
    %c0_i32_1 = arith.constant 0 : i32
    return %c0_i32, %c0_i32_0 : i32, i32
  }
  func.func @transform_10(%arg0: i32) -> (i32, i32) {
    %c0_i32 = arith.constant 0 : i32
    %c0_i32_0 = arith.constant 0 : i32
    %c0_i32_1 = arith.constant 0 : i32
    return %c0_i32, %c0_i32_0 : i32, i32
  }
  func.func @transform_11(%arg0: i32) -> (i32, i32) {
    %c0_i32 = arith.constant 0 : i32
    %c0_i32_0 = arith.constant 0 : i32
    %c0_i32_1 = arith.constant 0 : i32
    return %c0_i32, %c0_i32_0 : i32, i32
  }
  func.func @transform_12(%arg0: i32) -> (i32, i32) {
    %c0_i32 = arith.constant 0 : i32
    %c0_i32_0 = arith.constant 0 : i32
    %c0_i32_1 = arith.constant 0 : i32
    return %c0_i32, %c0_i32_0 : i32, i32
  }
  func.func @transform_13(%arg0: i32) -> (i32, i32, i32) {
    %c0_i32 = arith.constant 0 : i32
    %c0_i32_0 = arith.constant 0 : i32
    %c0_i32_1 = arith.constant 0 : i32
    return %arg0, %c0_i32, %c0_i32_0 : i32, i32, i32
  }
}

module attributes {stable_mosaic.version = 11 : i64} {
  func.func @transformer_block_kernel(%arg0: i32, %arg1: memref<1x8x32xf32, #tpu.memory_space<vmem>>, %arg2: memref<1x32xf32, #tpu.memory_space<vmem>>, %arg3: memref<1x32xf32, #tpu.memory_space<vmem>>, %arg4: memref<32x96xf32, #tpu.memory_space<vmem>>, %arg5: memref<1x96xf32, #tpu.memory_space<vmem>>, %arg6: memref<32x32xf32, #tpu.memory_space<vmem>>, %arg7: memref<1x32xf32, #tpu.memory_space<vmem>>, %arg8: memref<1x32xf32, #tpu.memory_space<vmem>>, %arg9: memref<1x32xf32, #tpu.memory_space<vmem>>, %arg10: memref<32x128xf32, #tpu.memory_space<vmem>>, %arg11: memref<1x128xf32, #tpu.memory_space<vmem>>, %arg12: memref<128x32xf32, #tpu.memory_space<vmem>>, %arg13: memref<1x32xf32, #tpu.memory_space<vmem>>, %arg14: memref<1x8x32xf32, #tpu.memory_space<vmem>>) attributes {dimension_semantics = [#tpu.dimension_semantics<parallel>], iteration_bounds = array<i64: 2>, scalar_prefetch = 0 : i64, scratch_operands = 0 : i64, tpu.core_type = #tpu.core_type<tc>, window_params = [{transform_indices = @transform_0, window_bounds = array<i64: 1, 8, 32>}, {pipeline_mode = #tpu.pipeline_mode<synchronous>, transform_indices = @transform_1, window_bounds = array<i64: 1, 32>}, {pipeline_mode = #tpu.pipeline_mode<synchronous>, transform_indices = @transform_2, window_bounds = array<i64: 1, 32>}, {pipeline_mode = #tpu.pipeline_mode<synchronous>, transform_indices = @transform_3, window_bounds = array<i64: 32, 96>}, {pipeline_mode = #tpu.pipeline_mode<synchronous>, transform_indices = @transform_4, window_bounds = array<i64: 1, 96>}, {pipeline_mode = #tpu.pipeline_mode<synchronous>, transform_indices = @transform_5, window_bounds = array<i64: 32, 32>}, {pipeline_mode = #tpu.pipeline_mode<synchronous>, transform_indices = @transform_6, window_bounds = array<i64: 1, 32>}, {pipeline_mode = #tpu.pipeline_mode<synchronous>, transform_indices = @transform_7, window_bounds = array<i64: 1, 32>}, {pipeline_mode = #tpu.pipeline_mode<synchronous>, transform_indices = @transform_8, window_bounds = array<i64: 1, 32>}, {pipeline_mode = #tpu.pipeline_mode<synchronous>, transform_indices = @transform_9, window_bounds = array<i64: 32, 128>}, {pipeline_mode = #tpu.pipeline_mode<synchronous>, transform_indices = @transform_10, window_bounds = array<i64: 1, 128>}, {pipeline_mode = #tpu.pipeline_mode<synchronous>, transform_indices = @transform_11, window_bounds = array<i64: 128, 32>}, {pipeline_mode = #tpu.pipeline_mode<synchronous>, transform_indices = @transform_12, window_bounds = array<i64: 1, 32>}, {transform_indices = @transform_13, window_bounds = array<i64: 1, 8, 32>}]} {
    %c0 = arith.constant 0 : index
    %c0_0 = arith.constant 0 : index
    %c0_1 = arith.constant 0 : index
    %0 = vector.load %arg1[%c0, %c0_0, %c0_1] : memref<1x8x32xf32, #tpu.memory_space<vmem>>, vector<1x8x32xf32>
    %1 = vector.shape_cast %0 : vector<1x8x32xf32> to vector<8x32xf32>
    %c0_2 = arith.constant 0 : index
    %c0_3 = arith.constant 0 : index
    %2 = vector.load %arg2[%c0_2, %c0_3] : memref<1x32xf32, #tpu.memory_space<vmem>>, vector<1x32xf32>
    %c0_4 = arith.constant 0 : index
    %c0_5 = arith.constant 0 : index
    %3 = vector.load %arg3[%c0_4, %c0_5] : memref<1x32xf32, #tpu.memory_space<vmem>>, vector<1x32xf32>
    %cst = arith.constant dense<0.000000e+00> : vector<8xf32>
    %4 = vector.multi_reduction <add>, %1, %cst [1] : vector<8x32xf32> to vector<8xf32>
    %5 = vector.shape_cast %4 : vector<8xf32> to vector<8x1xf32>
    %cst_6 = arith.constant 3.200000e+01 : f32
    %6 = vector.broadcast %cst_6 : f32 to vector<8x1xf32>
    %7 = arith.divf %5, %6 : vector<8x1xf32>
    %8 = vector.broadcast %7 : vector<8x1xf32> to vector<8x32xf32>
    %9 = arith.subf %1, %8 : vector<8x32xf32>
    %10 = arith.mulf %9, %9 : vector<8x32xf32>
    %cst_7 = arith.constant dense<0.000000e+00> : vector<8xf32>
    %11 = vector.multi_reduction <add>, %10, %cst_7 [1] : vector<8x32xf32> to vector<8xf32>
    %12 = vector.shape_cast %11 : vector<8xf32> to vector<8x1xf32>
    %cst_8 = arith.constant 3.200000e+01 : f32
    %13 = vector.broadcast %cst_8 : f32 to vector<8x1xf32>
    %14 = arith.divf %12, %13 : vector<8x1xf32>
    %cst_9 = arith.constant 9.99999974E-6 : f32
    %15 = vector.broadcast %cst_9 : f32 to vector<8x1xf32>
    %16 = arith.addf %14, %15 : vector<8x1xf32>
    %17 = math.rsqrt %16 : vector<8x1xf32>
    %18 = vector.broadcast %17 : vector<8x1xf32> to vector<8x32xf32>
    %19 = arith.mulf %9, %18 : vector<8x32xf32>
    %20 = vector.broadcast %2 : vector<1x32xf32> to vector<8x32xf32>
    %21 = arith.mulf %19, %20 : vector<8x32xf32>
    %22 = vector.broadcast %3 : vector<1x32xf32> to vector<8x32xf32>
    %23 = arith.addf %21, %22 : vector<8x32xf32>
    %c0_10 = arith.constant 0 : index
    %c0_11 = arith.constant 0 : index
    %24 = vector.load %arg4[%c0_10, %c0_11] : memref<32x96xf32, #tpu.memory_space<vmem>>, vector<32x96xf32>
    %cst_12 = arith.constant dense<0.000000e+00> : vector<8x96xf32>
    %25 = tpu.matmul %23, %24, %cst_12 {dimension_numbers = #tpu.dot_dimension_numbers<[1], [0], [0], [1], [0, 0, 1, 1], [], []>} : vector<8x32xf32>, vector<32x96xf32>, vector<8x96xf32> -> vector<8x96xf32>
    %c0_13 = arith.constant 0 : index
    %c0_14 = arith.constant 0 : index
    %26 = vector.load %arg5[%c0_13, %c0_14] : memref<1x96xf32, #tpu.memory_space<vmem>>, vector<1x96xf32>
    %27 = vector.broadcast %26 : vector<1x96xf32> to vector<8x96xf32>
    %28 = arith.addf %25, %27 : vector<8x96xf32>
    %29 = vector.extract_strided_slice %28 {offsets = [0, 0], sizes = [8, 32], strides = [1, 1]} : vector<8x96xf32> to vector<8x32xf32>
    %30 = vector.extract_strided_slice %29 {offsets = [0, 0], sizes = [8, 8], strides = [1, 1]} : vector<8x32xf32> to vector<8x8xf32>
    %31 = vector.extract_strided_slice %29 {offsets = [0, 8], sizes = [8, 8], strides = [1, 1]} : vector<8x32xf32> to vector<8x8xf32>
    %32 = vector.extract_strided_slice %29 {offsets = [0, 16], sizes = [8, 8], strides = [1, 1]} : vector<8x32xf32> to vector<8x8xf32>
    %33 = vector.extract_strided_slice %29 {offsets = [0, 24], sizes = [8, 8], strides = [1, 1]} : vector<8x32xf32> to vector<8x8xf32>
    %34 = vector.shape_cast %30 : vector<8x8xf32> to vector<1x8x8xf32>
    %35 = vector.shape_cast %31 : vector<8x8xf32> to vector<1x8x8xf32>
    %36 = vector.shape_cast %32 : vector<8x8xf32> to vector<1x8x8xf32>
    %37 = vector.shape_cast %33 : vector<8x8xf32> to vector<1x8x8xf32>
    %38 = tpu.concatenate %34, %35, %36, %37 in 0 : vector<1x8x8xf32>, vector<1x8x8xf32>, vector<1x8x8xf32>, vector<1x8x8xf32> -> vector<4x8x8xf32>
    %39 = vector.extract_strided_slice %28 {offsets = [0, 32], sizes = [8, 32], strides = [1, 1]} : vector<8x96xf32> to vector<8x32xf32>
    %40 = vector.extract_strided_slice %39 {offsets = [0, 0], sizes = [8, 8], strides = [1, 1]} : vector<8x32xf32> to vector<8x8xf32>
    %41 = vector.extract_strided_slice %39 {offsets = [0, 8], sizes = [8, 8], strides = [1, 1]} : vector<8x32xf32> to vector<8x8xf32>
    %42 = vector.extract_strided_slice %39 {offsets = [0, 16], sizes = [8, 8], strides = [1, 1]} : vector<8x32xf32> to vector<8x8xf32>
    %43 = vector.extract_strided_slice %39 {offsets = [0, 24], sizes = [8, 8], strides = [1, 1]} : vector<8x32xf32> to vector<8x8xf32>
    %44 = vector.shape_cast %40 : vector<8x8xf32> to vector<1x8x8xf32>
    %45 = vector.shape_cast %41 : vector<8x8xf32> to vector<1x8x8xf32>
    %46 = vector.shape_cast %42 : vector<8x8xf32> to vector<1x8x8xf32>
    %47 = vector.shape_cast %43 : vector<8x8xf32> to vector<1x8x8xf32>
    %48 = tpu.concatenate %44, %45, %46, %47 in 0 : vector<1x8x8xf32>, vector<1x8x8xf32>, vector<1x8x8xf32>, vector<1x8x8xf32> -> vector<4x8x8xf32>
    %49 = vector.extract_strided_slice %28 {offsets = [0, 64], sizes = [8, 32], strides = [1, 1]} : vector<8x96xf32> to vector<8x32xf32>
    %50 = vector.extract_strided_slice %49 {offsets = [0, 0], sizes = [8, 8], strides = [1, 1]} : vector<8x32xf32> to vector<8x8xf32>
    %51 = vector.extract_strided_slice %49 {offsets = [0, 8], sizes = [8, 8], strides = [1, 1]} : vector<8x32xf32> to vector<8x8xf32>
    %52 = vector.extract_strided_slice %49 {offsets = [0, 16], sizes = [8, 8], strides = [1, 1]} : vector<8x32xf32> to vector<8x8xf32>
    %53 = vector.extract_strided_slice %49 {offsets = [0, 24], sizes = [8, 8], strides = [1, 1]} : vector<8x32xf32> to vector<8x8xf32>
    %54 = vector.shape_cast %50 : vector<8x8xf32> to vector<1x8x8xf32>
    %55 = vector.shape_cast %51 : vector<8x8xf32> to vector<1x8x8xf32>
    %56 = vector.shape_cast %52 : vector<8x8xf32> to vector<1x8x8xf32>
    %57 = vector.shape_cast %53 : vector<8x8xf32> to vector<1x8x8xf32>
    %58 = tpu.concatenate %54, %55, %56, %57 in 0 : vector<1x8x8xf32>, vector<1x8x8xf32>, vector<1x8x8xf32>, vector<1x8x8xf32> -> vector<4x8x8xf32>
    "tpu.trace_start"() <{level = 10 : i32, message = "hqd,hkd->hqk"}> : () -> ()
    %cst_15 = arith.constant dense<0.000000e+00> : vector<4x8x8xf32>
    %59 = tpu.matmul %38, %48, %cst_15 {dimension_numbers = #tpu.dot_dimension_numbers<[2], [2], [1], [1], [0, 0, 0, 1, 1, 1], [0], [0]>} : vector<4x8x8xf32>, vector<4x8x8xf32>, vector<4x8x8xf32> -> vector<4x8x8xf32>
    "tpu.trace_stop"() : () -> ()
    %cst_16 = arith.constant dense<0xFF800000> : vector<4x8xf32>
    %60 = vector.multi_reduction <maximumf>, %59, %cst_16 [2] : vector<4x8x8xf32> to vector<4x8xf32>
    %61 = vector.shape_cast %60 : vector<4x8xf32> to vector<4x8x1xf32>
    %62 = vector.broadcast %61 : vector<4x8x1xf32> to vector<4x8x8xf32>
    %63 = arith.subf %59, %62 : vector<4x8x8xf32>
    %64 = math.exp %63 : vector<4x8x8xf32>
    %cst_17 = arith.constant dense<0.000000e+00> : vector<4x8xf32>
    %65 = vector.multi_reduction <add>, %64, %cst_17 [2] : vector<4x8x8xf32> to vector<4x8xf32>
    %66 = vector.shape_cast %65 : vector<4x8xf32> to vector<4x8x1xf32>
    %67 = tpu.reciprocal %66 : vector<4x8x1xf32> -> vector<4x8x1xf32>
    %68 = vector.broadcast %67 : vector<4x8x1xf32> to vector<4x8x8xf32>
    %69 = arith.mulf %64, %68 : vector<4x8x8xf32>
    "tpu.trace_start"() <{level = 10 : i32, message = "hqk,hkd->hqd"}> : () -> ()
    %cst_18 = arith.constant dense<0.000000e+00> : vector<4x8x8xf32>
    %70 = tpu.matmul %69, %58, %cst_18 {dimension_numbers = #tpu.dot_dimension_numbers<[2], [1], [1], [2], [0, 0, 0, 1, 1, 2], [0], [0]>} : vector<4x8x8xf32>, vector<4x8x8xf32>, vector<4x8x8xf32> -> vector<4x8x8xf32>
    "tpu.trace_stop"() : () -> ()
    %71 = vector.extract_strided_slice %70 {offsets = [0, 0, 0], sizes = [1, 8, 8], strides = [1, 1, 1]} : vector<4x8x8xf32> to vector<1x8x8xf32>
    %72 = vector.shape_cast %71 : vector<1x8x8xf32> to vector<8x8xf32>
    %73 = vector.extract_strided_slice %70 {offsets = [1, 0, 0], sizes = [1, 8, 8], strides = [1, 1, 1]} : vector<4x8x8xf32> to vector<1x8x8xf32>
    %74 = vector.shape_cast %73 : vector<1x8x8xf32> to vector<8x8xf32>
    %75 = vector.extract_strided_slice %70 {offsets = [2, 0, 0], sizes = [1, 8, 8], strides = [1, 1, 1]} : vector<4x8x8xf32> to vector<1x8x8xf32>
    %76 = vector.shape_cast %75 : vector<1x8x8xf32> to vector<8x8xf32>
    %77 = vector.extract_strided_slice %70 {offsets = [3, 0, 0], sizes = [1, 8, 8], strides = [1, 1, 1]} : vector<4x8x8xf32> to vector<1x8x8xf32>
    %78 = vector.shape_cast %77 : vector<1x8x8xf32> to vector<8x8xf32>
    %79 = tpu.concatenate %72, %74, %76, %78 in 1 : vector<8x8xf32>, vector<8x8xf32>, vector<8x8xf32>, vector<8x8xf32> -> vector<8x32xf32>
    %c0_19 = arith.constant 0 : index
    %c0_20 = arith.constant 0 : index
    %80 = vector.load %arg6[%c0_19, %c0_20] : memref<32x32xf32, #tpu.memory_space<vmem>>, vector<32x32xf32>
    %cst_21 = arith.constant dense<0.000000e+00> : vector<8x32xf32>
    %81 = tpu.matmul %79, %80, %cst_21 {dimension_numbers = #tpu.dot_dimension_numbers<[1], [0], [0], [1], [0, 0, 1, 1], [], []>} : vector<8x32xf32>, vector<32x32xf32>, vector<8x32xf32> -> vector<8x32xf32>
    %c0_22 = arith.constant 0 : index
    %c0_23 = arith.constant 0 : index
    %82 = vector.load %arg7[%c0_22, %c0_23] : memref<1x32xf32, #tpu.memory_space<vmem>>, vector<1x32xf32>
    %83 = vector.broadcast %82 : vector<1x32xf32> to vector<8x32xf32>
    %84 = arith.addf %81, %83 : vector<8x32xf32>
    %85 = arith.addf %1, %84 : vector<8x32xf32>
    %c0_24 = arith.constant 0 : index
    %c0_25 = arith.constant 0 : index
    %86 = vector.load %arg8[%c0_24, %c0_25] : memref<1x32xf32, #tpu.memory_space<vmem>>, vector<1x32xf32>
    %c0_26 = arith.constant 0 : index
    %c0_27 = arith.constant 0 : index
    %87 = vector.load %arg9[%c0_26, %c0_27] : memref<1x32xf32, #tpu.memory_space<vmem>>, vector<1x32xf32>
    %cst_28 = arith.constant dense<0.000000e+00> : vector<8xf32>
    %88 = vector.multi_reduction <add>, %85, %cst_28 [1] : vector<8x32xf32> to vector<8xf32>
    %89 = vector.shape_cast %88 : vector<8xf32> to vector<8x1xf32>
    %cst_29 = arith.constant 3.200000e+01 : f32
    %90 = vector.broadcast %cst_29 : f32 to vector<8x1xf32>
    %91 = arith.divf %89, %90 : vector<8x1xf32>
    %92 = vector.broadcast %91 : vector<8x1xf32> to vector<8x32xf32>
    %93 = arith.subf %85, %92 : vector<8x32xf32>
    %94 = arith.mulf %93, %93 : vector<8x32xf32>
    %cst_30 = arith.constant dense<0.000000e+00> : vector<8xf32>
    %95 = vector.multi_reduction <add>, %94, %cst_30 [1] : vector<8x32xf32> to vector<8xf32>
    %96 = vector.shape_cast %95 : vector<8xf32> to vector<8x1xf32>
    %cst_31 = arith.constant 3.200000e+01 : f32
    %97 = vector.broadcast %cst_31 : f32 to vector<8x1xf32>
    %98 = arith.divf %96, %97 : vector<8x1xf32>
    %cst_32 = arith.constant 9.99999974E-6 : f32
    %99 = vector.broadcast %cst_32 : f32 to vector<8x1xf32>
    %100 = arith.addf %98, %99 : vector<8x1xf32>
    %101 = math.rsqrt %100 : vector<8x1xf32>
    %102 = vector.broadcast %101 : vector<8x1xf32> to vector<8x32xf32>
    %103 = arith.mulf %93, %102 : vector<8x32xf32>
    %104 = vector.broadcast %86 : vector<1x32xf32> to vector<8x32xf32>
    %105 = arith.mulf %103, %104 : vector<8x32xf32>
    %106 = vector.broadcast %87 : vector<1x32xf32> to vector<8x32xf32>
    %107 = arith.addf %105, %106 : vector<8x32xf32>
    %c0_33 = arith.constant 0 : index
    %c0_34 = arith.constant 0 : index
    %108 = vector.load %arg10[%c0_33, %c0_34] : memref<32x128xf32, #tpu.memory_space<vmem>>, vector<32x128xf32>
    %cst_35 = arith.constant dense<0.000000e+00> : vector<8x128xf32>
    %109 = tpu.matmul %107, %108, %cst_35 {dimension_numbers = #tpu.dot_dimension_numbers<[1], [0], [0], [1], [0, 0, 1, 1], [], []>} : vector<8x32xf32>, vector<32x128xf32>, vector<8x128xf32> -> vector<8x128xf32>
    %c0_36 = arith.constant 0 : index
    %c0_37 = arith.constant 0 : index
    %110 = vector.load %arg11[%c0_36, %c0_37] : memref<1x128xf32, #tpu.memory_space<vmem>>, vector<1x128xf32>
    %111 = vector.broadcast %110 : vector<1x128xf32> to vector<8x128xf32>
    %112 = arith.addf %109, %111 : vector<8x128xf32>
    %cst_38 = arith.constant 5.000000e-01 : f32
    %113 = vector.broadcast %cst_38 : f32 to vector<8x128xf32>
    %114 = arith.mulf %113, %112 : vector<8x128xf32>
    %cst_39 = arith.constant 0.707106769 : f32
    %115 = vector.broadcast %cst_39 : f32 to vector<8x128xf32>
    %116 = arith.mulf %112, %115 : vector<8x128xf32>
    %117 = math.absf %116 : vector<8x128xf32>
    %cst_40 = arith.constant 0.327591091 : f32
    %118 = vector.broadcast %cst_40 : f32 to vector<8x128xf32>
    %119 = arith.mulf %118, %117 : vector<8x128xf32>
    %cst_41 = arith.constant 1.000000e+00 : f32
    %120 = vector.broadcast %cst_41 : f32 to vector<8x128xf32>
    %121 = arith.addf %120, %119 : vector<8x128xf32>
    %cst_42 = arith.constant 1.000000e+00 : f32
    %122 = vector.broadcast %cst_42 : f32 to vector<8x128xf32>
    %123 = arith.divf %122, %121 : vector<8x128xf32>
    %cst_43 = arith.constant 1.06140542 : f32
    %124 = vector.broadcast %cst_43 : f32 to vector<8x128xf32>
    %125 = arith.mulf %124, %123 : vector<8x128xf32>
    %cst_44 = arith.constant -1.45315206 : f32
    %126 = vector.broadcast %cst_44 : f32 to vector<8x128xf32>
    %127 = arith.addf %125, %126 : vector<8x128xf32>
    %128 = arith.mulf %127, %123 : vector<8x128xf32>
    %cst_45 = arith.constant 1.42141378 : f32
    %129 = vector.broadcast %cst_45 : f32 to vector<8x128xf32>
    %130 = arith.addf %128, %129 : vector<8x128xf32>
    %131 = arith.mulf %130, %123 : vector<8x128xf32>
    %cst_46 = arith.constant -0.284496725 : f32
    %132 = vector.broadcast %cst_46 : f32 to vector<8x128xf32>
    %133 = arith.addf %131, %132 : vector<8x128xf32>
    %134 = arith.mulf %133, %123 : vector<8x128xf32>
    %cst_47 = arith.constant 0.254829586 : f32
    %135 = vector.broadcast %cst_47 : f32 to vector<8x128xf32>
    %136 = arith.addf %134, %135 : vector<8x128xf32>
    %137 = arith.mulf %136, %123 : vector<8x128xf32>
    %cst_48 = arith.constant 0.000000e+00 : f32
    %138 = vector.broadcast %cst_48 : f32 to vector<8x128xf32>
    %139 = arith.subf %138, %117 : vector<8x128xf32>
    %140 = arith.mulf %139, %117 : vector<8x128xf32>
    %141 = math.exp %140 : vector<8x128xf32>
    %142 = arith.mulf %137, %141 : vector<8x128xf32>
    %cst_49 = arith.constant 1.000000e+00 : f32
    %143 = vector.broadcast %cst_49 : f32 to vector<8x128xf32>
    %144 = arith.subf %143, %142 : vector<8x128xf32>
    %cst_50 = arith.constant 0.000000e+00 : f32
    %145 = vector.broadcast %cst_50 : f32 to vector<8x128xf32>
    %146 = arith.cmpf oge, %116, %145 : vector<8x128xf32>
    %cst_51 = arith.constant 0.000000e+00 : f32
    %147 = vector.broadcast %cst_51 : f32 to vector<8x128xf32>
    %148 = arith.subf %147, %144 : vector<8x128xf32>
    %149 = arith.select %146, %144, %148 : vector<8x128xi1>, vector<8x128xf32>
    %cst_52 = arith.constant 1.000000e+00 : f32
    %150 = vector.broadcast %cst_52 : f32 to vector<8x128xf32>
    %151 = arith.addf %150, %149 : vector<8x128xf32>
    %152 = arith.mulf %114, %151 : vector<8x128xf32>
    %c0_53 = arith.constant 0 : index
    %c0_54 = arith.constant 0 : index
    %153 = vector.load %arg12[%c0_53, %c0_54] : memref<128x32xf32, #tpu.memory_space<vmem>>, vector<128x32xf32>
    %cst_55 = arith.constant dense<0.000000e+00> : vector<8x32xf32>
    %154 = tpu.matmul %152, %153, %cst_55 {dimension_numbers = #tpu.dot_dimension_numbers<[1], [0], [0], [1], [0, 0, 1, 1], [], []>} : vector<8x128xf32>, vector<128x32xf32>, vector<8x32xf32> -> vector<8x32xf32>
    %c0_56 = arith.constant 0 : index
    %c0_57 = arith.constant 0 : index
    %155 = vector.load %arg13[%c0_56, %c0_57] : memref<1x32xf32, #tpu.memory_space<vmem>>, vector<1x32xf32>
    %156 = vector.broadcast %155 : vector<1x32xf32> to vector<8x32xf32>
    %157 = arith.addf %154, %156 : vector<8x32xf32>
    %158 = arith.addf %85, %157 : vector<8x32xf32>
    %c0_58 = arith.constant 0 : index
    %c0_59 = arith.constant 0 : index
    %c0_60 = arith.constant 0 : index
    %159 = vector.load %arg14[%c0_58, %c0_59, %c0_60] : memref<1x8x32xf32, #tpu.memory_space<vmem>>, vector<1x8x32xf32>
    %160 = vector.shape_cast %159 : vector<1x8x32xf32> to vector<8x32xf32>
    %161 = vector.shape_cast %158 : vector<8x32xf32> to vector<1x8x32xf32>
    tpu.vector_store %arg14[%c0_58, %c0_59, %c0_60], %161 {strides = array<i32>} : memref<1x8x32xf32, #tpu.memory_space<vmem>>, vector<1x8x32xf32>,
    return
  }
  func.func @transform_0(%arg0: i32) -> (i32, i32, i32) {
    %c0_i32 = arith.constant 0 : i32
    %c0_i32_0 = arith.constant 0 : i32
    %c0_i32_1 = arith.constant 0 : i32
    return %arg0, %c0_i32, %c0_i32_0 : i32, i32, i32
  }
  func.func @transform_1(%arg0: i32) -> (i32, i32) {
    %c0_i32 = arith.constant 0 : i32
    %c0_i32_0 = arith.constant 0 : i32
    %c0_i32_1 = arith.constant 0 : i32
    return %c0_i32, %c0_i32_0 : i32, i32
  }
  func.func @transform_2(%arg0: i32) -> (i32, i32) {
    %c0_i32 = arith.constant 0 : i32
    %c0_i32_0 = arith.constant 0 : i32
    %c0_i32_1 = arith.constant 0 : i32
    return %c0_i32, %c0_i32_0 : i32, i32
  }
  func.func @transform_3(%arg0: i32) -> (i32, i32) {
    %c0_i32 = arith.constant 0 : i32
    %c0_i32_0 = arith.constant 0 : i32
    %c0_i32_1 = arith.constant 0 : i32
    return %c0_i32, %c0_i32_0 : i32, i32
  }
  func.func @transform_4(%arg0: i32) -> (i32, i32) {
    %c0_i32 = arith.constant 0 : i32
    %c0_i32_0 = arith.constant 0 : i32
    %c0_i32_1 = arith.constant 0 : i32
    return %c0_i32, %c0_i32_0 : i32, i32
  }
  func.func @transform_5(%arg0: i32) -> (i32, i32) {
    %c0_i32 = arith.constant 0 : i32
    %c0_i32_0 = arith.constant 0 : i32
    %c0_i32_1 = arith.constant 0 : i32
    return %c0_i32, %c0_i32_0 : i32, i32
  }
  func.func @transform_6(%arg0: i32) -> (i32, i32) {
    %c0_i32 = arith.constant 0 : i32
    %c0_i32_0 = arith.constant 0 : i32
    %c0_i32_1 = arith.constant 0 : i32
    return %c0_i32, %c0_i32_0 : i32, i32
  }
  func.func @transform_7(%arg0: i32) -> (i32, i32) {
    %c0_i32 = arith.constant 0 : i32
    %c0_i32_0 = arith.constant 0 : i32
    %c0_i32_1 = arith.constant 0 : i32
    return %c0_i32, %c0_i32_0 : i32, i32
  }
  func.func @transform_8(%arg0: i32) -> (i32, i32) {
    %c0_i32 = arith.constant 0 : i32
    %c0_i32_0 = arith.constant 0 : i32
    %c0_i32_1 = arith.constant 0 : i32
    return %c0_i32, %c0_i32_0 : i32, i32
  }
  func.func @transform_9(%arg0: i32) -> (i32, i32) {
    %c0_i32 = arith.constant 0 : i32
    %c0_i32_0 = arith.constant 0 : i32
    %c0_i32_1 = arith.constant 0 : i32
    return %c0_i32, %c0_i32_0 : i32, i32
  }
  func.func @transform_10(%arg0: i32) -> (i32, i32) {
    %c0_i32 = arith.constant 0 : i32
    %c0_i32_0 = arith.constant 0 : i32
    %c0_i32_1 = arith.constant 0 : i32
    return %c0_i32, %c0_i32_0 : i32, i32
  }
  func.func @transform_11(%arg0: i32) -> (i32, i32) {
    %c0_i32 = arith.constant 0 : i32
    %c0_i32_0 = arith.constant 0 : i32
    %c0_i32_1 = arith.constant 0 : i32
    return %c0_i32, %c0_i32_0 : i32, i32
  }
  func.func @transform_12(%arg0: i32) -> (i32, i32) {
    %c0_i32 = arith.constant 0 : i32
    %c0_i32_0 = arith.constant 0 : i32
    %c0_i32_1 = arith.constant 0 : i32
    return %c0_i32, %c0_i32_0 : i32, i32
  }
  func.func @transform_13(%arg0: i32) -> (i32, i32, i32) {
    %c0_i32 = arith.constant 0 : i32
    %c0_i32_0 = arith.constant 0 : i32
    %c0_i32_1 = arith.constant 0 : i32
    return %arg0, %c0_i32, %c0_i32_0 : i32, i32, i32
  }
}

module attributes {stable_mosaic.version = 11 : i64} {
  func.func @transformer_block_kernel(%arg0: i32, %arg1: memref<1x8x32xf32, #tpu.memory_space<vmem>>, %arg2: memref<1x32xf32, #tpu.memory_space<vmem>>, %arg3: memref<1x32xf32, #tpu.memory_space<vmem>>, %arg4: memref<32x96xf32, #tpu.memory_space<vmem>>, %arg5: memref<1x96xf32, #tpu.memory_space<vmem>>, %arg6: memref<32x32xf32, #tpu.memory_space<vmem>>, %arg7: memref<1x32xf32, #tpu.memory_space<vmem>>, %arg8: memref<1x32xf32, #tpu.memory_space<vmem>>, %arg9: memref<1x32xf32, #tpu.memory_space<vmem>>, %arg10: memref<32x128xf32, #tpu.memory_space<vmem>>, %arg11: memref<1x128xf32, #tpu.memory_space<vmem>>, %arg12: memref<128x32xf32, #tpu.memory_space<vmem>>, %arg13: memref<1x32xf32, #tpu.memory_space<vmem>>, %arg14: memref<1x8x32xf32, #tpu.memory_space<vmem>>) attributes {dimension_semantics = [#tpu.dimension_semantics<parallel>], iteration_bounds = array<i64: 2>, scalar_prefetch = 0 : i64, scratch_operands = 0 : i64, tpu.core_type = #tpu.core_type<tc>, window_params = [{transform_indices = @transform_0, window_bounds = array<i64: 1, 8, 32>}, {pipeline_mode = #tpu.pipeline_mode<synchronous>, transform_indices = @transform_1, window_bounds = array<i64: 1, 32>}, {pipeline_mode = #tpu.pipeline_mode<synchronous>, transform_indices = @transform_2, window_bounds = array<i64: 1, 32>}, {pipeline_mode = #tpu.pipeline_mode<synchronous>, transform_indices = @transform_3, window_bounds = array<i64: 32, 96>}, {pipeline_mode = #tpu.pipeline_mode<synchronous>, transform_indices = @transform_4, window_bounds = array<i64: 1, 96>}, {pipeline_mode = #tpu.pipeline_mode<synchronous>, transform_indices = @transform_5, window_bounds = array<i64: 32, 32>}, {pipeline_mode = #tpu.pipeline_mode<synchronous>, transform_indices = @transform_6, window_bounds = array<i64: 1, 32>}, {pipeline_mode = #tpu.pipeline_mode<synchronous>, transform_indices = @transform_7, window_bounds = array<i64: 1, 32>}, {pipeline_mode = #tpu.pipeline_mode<synchronous>, transform_indices = @transform_8, window_bounds = array<i64: 1, 32>}, {pipeline_mode = #tpu.pipeline_mode<synchronous>, transform_indices = @transform_9, window_bounds = array<i64: 32, 128>}, {pipeline_mode = #tpu.pipeline_mode<synchronous>, transform_indices = @transform_10, window_bounds = array<i64: 1, 128>}, {pipeline_mode = #tpu.pipeline_mode<synchronous>, transform_indices = @transform_11, window_bounds = array<i64: 128, 32>}, {pipeline_mode = #tpu.pipeline_mode<synchronous>, transform_indices = @transform_12, window_bounds = array<i64: 1, 32>}, {transform_indices = @transform_13, window_bounds = array<i64: 1, 8, 32>}]} {
    %c0 = arith.constant 0 : index
    %c0_0 = arith.constant 0 : index
    %c0_1 = arith.constant 0 : index
    %0 = vector.load %arg1[%c0, %c0_0, %c0_1] : memref<1x8x32xf32, #tpu.memory_space<vmem>>, vector<1x8x32xf32>
    %1 = vector.shape_cast %0 : vector<1x8x32xf32> to vector<8x32xf32>
    %c0_2 = arith.constant 0 : index
    %c0_3 = arith.constant 0 : index
    %2 = vector.load %arg2[%c0_2, %c0_3] : memref<1x32xf32, #tpu.memory_space<vmem>>, vector<1x32xf32>
    %c0_4 = arith.constant 0 : index
    %c0_5 = arith.constant 0 : index
    %3 = vector.load %arg3[%c0_4, %c0_5] : memref<1x32xf32, #tpu.memory_space<vmem>>, vector<1x32xf32>
    %cst = arith.constant dense<0.000000e+00> : vector<8xf32>
    %4 = vector.multi_reduction <add>, %1, %cst [1] : vector<8x32xf32> to vector<8xf32>
    %5 = vector.shape_cast %4 : vector<8xf32> to vector<8x1xf32>
    %cst_6 = arith.constant 3.200000e+01 : f32
    %6 = vector.broadcast %cst_6 : f32 to vector<8x1xf32>
    %7 = arith.divf %5, %6 : vector<8x1xf32>
    %8 = vector.broadcast %7 : vector<8x1xf32> to vector<8x32xf32>
    %9 = arith.subf %1, %8 : vector<8x32xf32>
    %10 = arith.mulf %9, %9 : vector<8x32xf32>
    %cst_7 = arith.constant dense<0.000000e+00> : vector<8xf32>
    %11 = vector.multi_reduction <add>, %10, %cst_7 [1] : vector<8x32xf32> to vector<8xf32>
    %12 = vector.shape_cast %11 : vector<8xf32> to vector<8x1xf32>
    %cst_8 = arith.constant 3.200000e+01 : f32
    %13 = vector.broadcast %cst_8 : f32 to vector<8x1xf32>
    %14 = arith.divf %12, %13 : vector<8x1xf32>
    %cst_9 = arith.constant 9.99999974E-6 : f32
    %15 = vector.broadcast %cst_9 : f32 to vector<8x1xf32>
    %16 = arith.addf %14, %15 : vector<8x1xf32>
    %17 = math.rsqrt %16 : vector<8x1xf32>
    %18 = vector.broadcast %17 : vector<8x1xf32> to vector<8x32xf32>
    %19 = arith.mulf %9, %18 : vector<8x32xf32>
    %20 = vector.broadcast %2 : vector<1x32xf32> to vector<8x32xf32>
    %21 = arith.mulf %19, %20 : vector<8x32xf32>
    %22 = vector.broadcast %3 : vector<1x32xf32> to vector<8x32xf32>
    %23 = arith.addf %21, %22 : vector<8x32xf32>
    %c0_10 = arith.constant 0 : index
    %c0_11 = arith.constant 0 : index
    %24 = vector.load %arg4[%c0_10, %c0_11] : memref<32x96xf32, #tpu.memory_space<vmem>>, vector<32x96xf32>
    %cst_12 = arith.constant dense<0.000000e+00> : vector<8x96xf32>
    %25 = tpu.matmul %23, %24, %cst_12 {dimension_numbers = #tpu.dot_dimension_numbers<[1], [0], [0], [1], [0, 0, 1, 1], [], []>} : vector<8x32xf32>, vector<32x96xf32>, vector<8x96xf32> -> vector<8x96xf32>
    %c0_13 = arith.constant 0 : index
    %c0_14 = arith.constant 0 : index
    %26 = vector.load %arg5[%c0_13, %c0_14] : memref<1x96xf32, #tpu.memory_space<vmem>>, vector<1x96xf32>
    %27 = vector.broadcast %26 : vector<1x96xf32> to vector<8x96xf32>
    %28 = arith.addf %25, %27 : vector<8x96xf32>
    %29 = vector.extract_strided_slice %28 {offsets = [0, 0], sizes = [8, 32], strides = [1, 1]} : vector<8x96xf32> to vector<8x32xf32>
    %30 = vector.shape_cast %29 : vector<8x32xf32> to vector<8x4x8xf32>
    %31 = tpu.transpose %30, [1, 0, 2] : vector<8x4x8xf32> -> vector<4x8x8xf32>
    %32 = vector.extract_strided_slice %28 {offsets = [0, 32], sizes = [8, 32], strides = [1, 1]} : vector<8x96xf32> to vector<8x32xf32>
    %33 = vector.shape_cast %32 : vector<8x32xf32> to vector<8x4x8xf32>
    %34 = tpu.transpose %33, [1, 0, 2] : vector<8x4x8xf32> -> vector<4x8x8xf32>
    %35 = vector.extract_strided_slice %28 {offsets = [0, 64], sizes = [8, 32], strides = [1, 1]} : vector<8x96xf32> to vector<8x32xf32>
    %36 = vector.shape_cast %35 : vector<8x32xf32> to vector<8x4x8xf32>
    %37 = tpu.transpose %36, [1, 0, 2] : vector<8x4x8xf32> -> vector<4x8x8xf32>
    "tpu.trace_start"() <{level = 10 : i32, message = "hqd,hkd->hqk"}> : () -> ()
    %cst_15 = arith.constant dense<0.000000e+00> : vector<4x8x8xf32>
    %38 = tpu.matmul %31, %34, %cst_15 {dimension_numbers = #tpu.dot_dimension_numbers<[2], [2], [1], [1], [0, 0, 0, 1, 1, 1], [0], [0]>} : vector<4x8x8xf32>, vector<4x8x8xf32>, vector<4x8x8xf32> -> vector<4x8x8xf32>
    "tpu.trace_stop"() : () -> ()
    %cst_16 = arith.constant dense<0xFF800000> : vector<4x8xf32>
    %39 = vector.multi_reduction <maximumf>, %38, %cst_16 [2] : vector<4x8x8xf32> to vector<4x8xf32>
    %40 = vector.shape_cast %39 : vector<4x8xf32> to vector<4x8x1xf32>
    %41 = vector.broadcast %40 : vector<4x8x1xf32> to vector<4x8x8xf32>
    %42 = arith.subf %38, %41 : vector<4x8x8xf32>
    %43 = math.exp %42 : vector<4x8x8xf32>
    %cst_17 = arith.constant dense<0.000000e+00> : vector<4x8xf32>
    %44 = vector.multi_reduction <add>, %43, %cst_17 [2] : vector<4x8x8xf32> to vector<4x8xf32>
    %45 = vector.shape_cast %44 : vector<4x8xf32> to vector<4x8x1xf32>
    %46 = tpu.reciprocal %45 : vector<4x8x1xf32> -> vector<4x8x1xf32>
    %47 = vector.broadcast %46 : vector<4x8x1xf32> to vector<4x8x8xf32>
    %48 = arith.mulf %43, %47 : vector<4x8x8xf32>
    "tpu.trace_start"() <{level = 10 : i32, message = "hqk,hkd->hqd"}> : () -> ()
    %cst_18 = arith.constant dense<0.000000e+00> : vector<4x8x8xf32>
    %49 = tpu.matmul %48, %37, %cst_18 {dimension_numbers = #tpu.dot_dimension_numbers<[2], [1], [1], [2], [0, 0, 0, 1, 1, 2], [0], [0]>} : vector<4x8x8xf32>, vector<4x8x8xf32>, vector<4x8x8xf32> -> vector<4x8x8xf32>
    "tpu.trace_stop"() : () -> ()
    %50 = tpu.transpose %49, [1, 0, 2] : vector<4x8x8xf32> -> vector<8x4x8xf32>
    %51 = vector.shape_cast %50 : vector<8x4x8xf32> to vector<8x32xf32>
    %c0_19 = arith.constant 0 : index
    %c0_20 = arith.constant 0 : index
    %52 = vector.load %arg6[%c0_19, %c0_20] : memref<32x32xf32, #tpu.memory_space<vmem>>, vector<32x32xf32>
    %cst_21 = arith.constant dense<0.000000e+00> : vector<8x32xf32>
    %53 = tpu.matmul %51, %52, %cst_21 {dimension_numbers = #tpu.dot_dimension_numbers<[1], [0], [0], [1], [0, 0, 1, 1], [], []>} : vector<8x32xf32>, vector<32x32xf32>, vector<8x32xf32> -> vector<8x32xf32>
    %c0_22 = arith.constant 0 : index
    %c0_23 = arith.constant 0 : index
    %54 = vector.load %arg7[%c0_22, %c0_23] : memref<1x32xf32, #tpu.memory_space<vmem>>, vector<1x32xf32>
    %55 = vector.broadcast %54 : vector<1x32xf32> to vector<8x32xf32>
    %56 = arith.addf %53, %55 : vector<8x32xf32>
    %57 = arith.addf %1, %56 : vector<8x32xf32>
    %c0_24 = arith.constant 0 : index
    %c0_25 = arith.constant 0 : index
    %58 = vector.load %arg8[%c0_24, %c0_25] : memref<1x32xf32, #tpu.memory_space<vmem>>, vector<1x32xf32>
    %c0_26 = arith.constant 0 : index
    %c0_27 = arith.constant 0 : index
    %59 = vector.load %arg9[%c0_26, %c0_27] : memref<1x32xf32, #tpu.memory_space<vmem>>, vector<1x32xf32>
    %cst_28 = arith.constant dense<0.000000e+00> : vector<8xf32>
    %60 = vector.multi_reduction <add>, %57, %cst_28 [1] : vector<8x32xf32> to vector<8xf32>
    %61 = vector.shape_cast %60 : vector<8xf32> to vector<8x1xf32>
    %cst_29 = arith.constant 3.200000e+01 : f32
    %62 = vector.broadcast %cst_29 : f32 to vector<8x1xf32>
    %63 = arith.divf %61, %62 : vector<8x1xf32>
    %64 = vector.broadcast %63 : vector<8x1xf32> to vector<8x32xf32>
    %65 = arith.subf %57, %64 : vector<8x32xf32>
    %66 = arith.mulf %65, %65 : vector<8x32xf32>
    %cst_30 = arith.constant dense<0.000000e+00> : vector<8xf32>
    %67 = vector.multi_reduction <add>, %66, %cst_30 [1] : vector<8x32xf32> to vector<8xf32>
    %68 = vector.shape_cast %67 : vector<8xf32> to vector<8x1xf32>
    %cst_31 = arith.constant 3.200000e+01 : f32
    %69 = vector.broadcast %cst_31 : f32 to vector<8x1xf32>
    %70 = arith.divf %68, %69 : vector<8x1xf32>
    %cst_32 = arith.constant 9.99999974E-6 : f32
    %71 = vector.broadcast %cst_32 : f32 to vector<8x1xf32>
    %72 = arith.addf %70, %71 : vector<8x1xf32>
    %73 = math.rsqrt %72 : vector<8x1xf32>
    %74 = vector.broadcast %73 : vector<8x1xf32> to vector<8x32xf32>
    %75 = arith.mulf %65, %74 : vector<8x32xf32>
    %76 = vector.broadcast %58 : vector<1x32xf32> to vector<8x32xf32>
    %77 = arith.mulf %75, %76 : vector<8x32xf32>
    %78 = vector.broadcast %59 : vector<1x32xf32> to vector<8x32xf32>
    %79 = arith.addf %77, %78 : vector<8x32xf32>
    %c0_33 = arith.constant 0 : index
    %c0_34 = arith.constant 0 : index
    %80 = vector.load %arg10[%c0_33, %c0_34] : memref<32x128xf32, #tpu.memory_space<vmem>>, vector<32x128xf32>
    %cst_35 = arith.constant dense<0.000000e+00> : vector<8x128xf32>
    %81 = tpu.matmul %79, %80, %cst_35 {dimension_numbers = #tpu.dot_dimension_numbers<[1], [0], [0], [1], [0, 0, 1, 1], [], []>} : vector<8x32xf32>, vector<32x128xf32>, vector<8x128xf32> -> vector<8x128xf32>
    %c0_36 = arith.constant 0 : index
    %c0_37 = arith.constant 0 : index
    %82 = vector.load %arg11[%c0_36, %c0_37] : memref<1x128xf32, #tpu.memory_space<vmem>>, vector<1x128xf32>
    %83 = vector.broadcast %82 : vector<1x128xf32> to vector<8x128xf32>
    %84 = arith.addf %81, %83 : vector<8x128xf32>
    %cst_38 = arith.constant 5.000000e-01 : f32
    %85 = vector.broadcast %cst_38 : f32 to vector<8x128xf32>
    %86 = arith.mulf %85, %84 : vector<8x128xf32>
    %cst_39 = arith.constant 0.707106769 : f32
    %87 = vector.broadcast %cst_39 : f32 to vector<8x128xf32>
    %88 = arith.mulf %84, %87 : vector<8x128xf32>
    %89 = math.absf %88 : vector<8x128xf32>
    %cst_40 = arith.constant 0.327591091 : f32
    %90 = vector.broadcast %cst_40 : f32 to vector<8x128xf32>
    %91 = arith.mulf %90, %89 : vector<8x128xf32>
    %cst_41 = arith.constant 1.000000e+00 : f32
    %92 = vector.broadcast %cst_41 : f32 to vector<8x128xf32>
    %93 = arith.addf %92, %91 : vector<8x128xf32>
    %cst_42 = arith.constant 1.000000e+00 : f32
    %94 = vector.broadcast %cst_42 : f32 to vector<8x128xf32>
    %95 = arith.divf %94, %93 : vector<8x128xf32>
    %cst_43 = arith.constant 1.06140542 : f32
    %96 = vector.broadcast %cst_43 : f32 to vector<8x128xf32>
    %97 = arith.mulf %96, %95 : vector<8x128xf32>
    %cst_44 = arith.constant -1.45315206 : f32
    %98 = vector.broadcast %cst_44 : f32 to vector<8x128xf32>
    %99 = arith.addf %97, %98 : vector<8x128xf32>
    %100 = arith.mulf %99, %95 : vector<8x128xf32>
    %cst_45 = arith.constant 1.42141378 : f32
    %101 = vector.broadcast %cst_45 : f32 to vector<8x128xf32>
    %102 = arith.addf %100, %101 : vector<8x128xf32>
    %103 = arith.mulf %102, %95 : vector<8x128xf32>
    %cst_46 = arith.constant -0.284496725 : f32
    %104 = vector.broadcast %cst_46 : f32 to vector<8x128xf32>
    %105 = arith.addf %103, %104 : vector<8x128xf32>
    %106 = arith.mulf %105, %95 : vector<8x128xf32>
    %cst_47 = arith.constant 0.254829586 : f32
    %107 = vector.broadcast %cst_47 : f32 to vector<8x128xf32>
    %108 = arith.addf %106, %107 : vector<8x128xf32>
    %109 = arith.mulf %108, %95 : vector<8x128xf32>
    %cst_48 = arith.constant 0.000000e+00 : f32
    %110 = vector.broadcast %cst_48 : f32 to vector<8x128xf32>
    %111 = arith.subf %110, %89 : vector<8x128xf32>
    %112 = arith.mulf %111, %89 : vector<8x128xf32>
    %113 = math.exp %112 : vector<8x128xf32>
    %114 = arith.mulf %109, %113 : vector<8x128xf32>
    %cst_49 = arith.constant 1.000000e+00 : f32
    %115 = vector.broadcast %cst_49 : f32 to vector<8x128xf32>
    %116 = arith.subf %115, %114 : vector<8x128xf32>
    %cst_50 = arith.constant 0.000000e+00 : f32
    %117 = vector.broadcast %cst_50 : f32 to vector<8x128xf32>
    %118 = arith.cmpf oge, %88, %117 : vector<8x128xf32>
    %cst_51 = arith.constant 0.000000e+00 : f32
    %119 = vector.broadcast %cst_51 : f32 to vector<8x128xf32>
    %120 = arith.subf %119, %116 : vector<8x128xf32>
    %121 = arith.select %118, %116, %120 : vector<8x128xi1>, vector<8x128xf32>
    %cst_52 = arith.constant 1.000000e+00 : f32
    %122 = vector.broadcast %cst_52 : f32 to vector<8x128xf32>
    %123 = arith.addf %122, %121 : vector<8x128xf32>
    %124 = arith.mulf %86, %123 : vector<8x128xf32>
    %c0_53 = arith.constant 0 : index
    %c0_54 = arith.constant 0 : index
    %125 = vector.load %arg12[%c0_53, %c0_54] : memref<128x32xf32, #tpu.memory_space<vmem>>, vector<128x32xf32>
    %cst_55 = arith.constant dense<0.000000e+00> : vector<8x32xf32>
    %126 = tpu.matmul %124, %125, %cst_55 {dimension_numbers = #tpu.dot_dimension_numbers<[1], [0], [0], [1], [0, 0, 1, 1], [], []>} : vector<8x128xf32>, vector<128x32xf32>, vector<8x32xf32> -> vector<8x32xf32>
    %c0_56 = arith.constant 0 : index
    %c0_57 = arith.constant 0 : index
    %127 = vector.load %arg13[%c0_56, %c0_57] : memref<1x32xf32, #tpu.memory_space<vmem>>, vector<1x32xf32>
    %128 = vector.broadcast %127 : vector<1x32xf32> to vector<8x32xf32>
    %129 = arith.addf %126, %128 : vector<8x32xf32>
    %130 = arith.addf %57, %129 : vector<8x32xf32>
    %c0_58 = arith.constant 0 : index
    %c0_59 = arith.constant 0 : index
    %c0_60 = arith.constant 0 : index
    %131 = vector.load %arg14[%c0_58, %c0_59, %c0_60] : memref<1x8x32xf32, #tpu.memory_space<vmem>>, vector<1x8x32xf32>
    %132 = vector.shape_cast %131 : vector<1x8x32xf32> to vector<8x32xf32>
    %133 = vector.shape_cast %130 : vector<8x32xf32> to vector<1x8x32xf32>
    tpu.vector_store %arg14[%c0_58, %c0_59, %c0_60], %133 {strides = array<i32>} : memref<1x8x32xf32, #tpu.memory_space<vmem>>, vector<1x8x32xf32>,
    return
  }
  func.func @transform_0(%arg0: i32) -> (i32, i32, i32) {
    %c0_i32 = arith.constant 0 : i32
    %c0_i32_0 = arith.constant 0 : i32
    %c0_i32_1 = arith.constant 0 : i32
    return %arg0, %c0_i32, %c0_i32_0 : i32, i32, i32
  }
  func.func @transform_1(%arg0: i32) -> (i32, i32) {
    %c0_i32 = arith.constant 0 : i32
    %c0_i32_0 = arith.constant 0 : i32
    %c0_i32_1 = arith.constant 0 : i32
    return %c0_i32, %c0_i32_0 : i32, i32
  }
  func.func @transform_2(%arg0: i32) -> (i32, i32) {
    %c0_i32 = arith.constant 0 : i32
    %c0_i32_0 = arith.constant 0 : i32
    %c0_i32_1 = arith.constant 0 : i32
    return %c0_i32, %c0_i32_0 : i32, i32
  }
  func.func @transform_3(%arg0: i32) -> (i32, i32) {
    %c0_i32 = arith.constant 0 : i32
    %c0_i32_0 = arith.constant 0 : i32
    %c0_i32_1 = arith.constant 0 : i32
    return %c0_i32, %c0_i32_0 : i32, i32
  }
  func.func @transform_4(%arg0: i32) -> (i32, i32) {
    %c0_i32 = arith.constant 0 : i32
    %c0_i32_0 = arith.constant 0 : i32
    %c0_i32_1 = arith.constant 0 : i32
    return %c0_i32, %c0_i32_0 : i32, i32
  }
  func.func @transform_5(%arg0: i32) -> (i32, i32) {
    %c0_i32 = arith.constant 0 : i32
    %c0_i32_0 = arith.constant 0 : i32
    %c0_i32_1 = arith.constant 0 : i32
    return %c0_i32, %c0_i32_0 : i32, i32
  }
  func.func @transform_6(%arg0: i32) -> (i32, i32) {
    %c0_i32 = arith.constant 0 : i32
    %c0_i32_0 = arith.constant 0 : i32
    %c0_i32_1 = arith.constant 0 : i32
    return %c0_i32, %c0_i32_0 : i32, i32
  }
  func.func @transform_7(%arg0: i32) -> (i32, i32) {
    %c0_i32 = arith.constant 0 : i32
    %c0_i32_0 = arith.constant 0 : i32
    %c0_i32_1 = arith.constant 0 : i32
    return %c0_i32, %c0_i32_0 : i32, i32
  }
  func.func @transform_8(%arg0: i32) -> (i32, i32) {
    %c0_i32 = arith.constant 0 : i32
    %c0_i32_0 = arith.constant 0 : i32
    %c0_i32_1 = arith.constant 0 : i32
    return %c0_i32, %c0_i32_0 : i32, i32
  }
  func.func @transform_9(%arg0: i32) -> (i32, i32) {
    %c0_i32 = arith.constant 0 : i32
    %c0_i32_0 = arith.constant 0 : i32
    %c0_i32_1 = arith.constant 0 : i32
    return %c0_i32, %c0_i32_0 : i32, i32
  }
  func.func @transform_10(%arg0: i32) -> (i32, i32) {
    %c0_i32 = arith.constant 0 : i32
    %c0_i32_0 = arith.constant 0 : i32
    %c0_i32_1 = arith.constant 0 : i32
    return %c0_i32, %c0_i32_0 : i32, i32
  }
  func.func @transform_11(%arg0: i32) -> (i32, i32) {
    %c0_i32 = arith.constant 0 : i32
    %c0_i32_0 = arith.constant 0 : i32
    %c0_i32_1 = arith.constant 0 : i32
    return %c0_i32, %c0_i32_0 : i32, i32
  }
  func.func @transform_12(%arg0: i32) -> (i32, i32) {
    %c0_i32 = arith.constant 0 : i32
    %c0_i32_0 = arith.constant 0 : i32
    %c0_i32_1 = arith.constant 0 : i32
    return %c0_i32, %c0_i32_0 : i32, i32
  }
  func.func @transform_13(%arg0: i32) -> (i32, i32, i32) {
    %c0_i32 = arith.constant 0 : i32
    %c0_i32_0 = arith.constant 0 : i32
    %c0_i32_1 = arith.constant 0 : i32
    return %arg0, %c0_i32, %c0_i32_0 : i32, i32, i32
  }
}

module attributes {stable_mosaic.version = 11 : i64} {
  func.func @transformer_block_kernel(%arg0: i32, %arg1: memref<1x8x32xf32, #tpu.memory_space<vmem>>, %arg2: memref<1x32xf32, #tpu.memory_space<vmem>>, %arg3: memref<1x32xf32, #tpu.memory_space<vmem>>, %arg4: memref<32x96xf32, #tpu.memory_space<vmem>>, %arg5: memref<1x96xf32, #tpu.memory_space<vmem>>, %arg6: memref<32x32xf32, #tpu.memory_space<vmem>>, %arg7: memref<1x32xf32, #tpu.memory_space<vmem>>, %arg8: memref<1x32xf32, #tpu.memory_space<vmem>>, %arg9: memref<1x32xf32, #tpu.memory_space<vmem>>, %arg10: memref<32x128xf32, #tpu.memory_space<vmem>>, %arg11: memref<1x128xf32, #tpu.memory_space<vmem>>, %arg12: memref<128x32xf32, #tpu.memory_space<vmem>>, %arg13: memref<1x32xf32, #tpu.memory_space<vmem>>, %arg14: memref<1x8x32xf32, #tpu.memory_space<vmem>>) attributes {dimension_semantics = [#tpu.dimension_semantics<parallel>], iteration_bounds = array<i64: 2>, scalar_prefetch = 0 : i64, scratch_operands = 0 : i64, tpu.core_type = #tpu.core_type<tc>, window_params = [{transform_indices = @transform_0, window_bounds = array<i64: 1, 8, 32>}, {pipeline_mode = #tpu.pipeline_mode<synchronous>, transform_indices = @transform_1, window_bounds = array<i64: 1, 32>}, {pipeline_mode = #tpu.pipeline_mode<synchronous>, transform_indices = @transform_2, window_bounds = array<i64: 1, 32>}, {pipeline_mode = #tpu.pipeline_mode<synchronous>, transform_indices = @transform_3, window_bounds = array<i64: 32, 96>}, {pipeline_mode = #tpu.pipeline_mode<synchronous>, transform_indices = @transform_4, window_bounds = array<i64: 1, 96>}, {pipeline_mode = #tpu.pipeline_mode<synchronous>, transform_indices = @transform_5, window_bounds = array<i64: 32, 32>}, {pipeline_mode = #tpu.pipeline_mode<synchronous>, transform_indices = @transform_6, window_bounds = array<i64: 1, 32>}, {pipeline_mode = #tpu.pipeline_mode<synchronous>, transform_indices = @transform_7, window_bounds = array<i64: 1, 32>}, {pipeline_mode = #tpu.pipeline_mode<synchronous>, transform_indices = @transform_8, window_bounds = array<i64: 1, 32>}, {pipeline_mode = #tpu.pipeline_mode<synchronous>, transform_indices = @transform_9, window_bounds = array<i64: 32, 128>}, {pipeline_mode = #tpu.pipeline_mode<synchronous>, transform_indices = @transform_10, window_bounds = array<i64: 1, 128>}, {pipeline_mode = #tpu.pipeline_mode<synchronous>, transform_indices = @transform_11, window_bounds = array<i64: 128, 32>}, {pipeline_mode = #tpu.pipeline_mode<synchronous>, transform_indices = @transform_12, window_bounds = array<i64: 1, 32>}, {transform_indices = @transform_13, window_bounds = array<i64: 1, 8, 32>}]} {
    %c0 = arith.constant 0 : index
    %c0_0 = arith.constant 0 : index
    %c0_1 = arith.constant 0 : index
    %0 = vector.load %arg1[%c0, %c0_0, %c0_1] : memref<1x8x32xf32, #tpu.memory_space<vmem>>, vector<1x8x32xf32>
    %1 = vector.shape_cast %0 : vector<1x8x32xf32> to vector<8x32xf32>
    %c0_2 = arith.constant 0 : index
    %c0_3 = arith.constant 0 : index
    %2 = vector.load %arg2[%c0_2, %c0_3] : memref<1x32xf32, #tpu.memory_space<vmem>>, vector<1x32xf32>
    %c0_4 = arith.constant 0 : index
    %c0_5 = arith.constant 0 : index
    %3 = vector.load %arg3[%c0_4, %c0_5] : memref<1x32xf32, #tpu.memory_space<vmem>>, vector<1x32xf32>
    %cst = arith.constant dense<0.000000e+00> : vector<8xf32>
    %4 = vector.multi_reduction <add>, %1, %cst [1] : vector<8x32xf32> to vector<8xf32>
    %5 = vector.shape_cast %4 : vector<8xf32> to vector<8x1xf32>
    %cst_6 = arith.constant 3.200000e+01 : f32
    %6 = vector.broadcast %cst_6 : f32 to vector<8x1xf32>
    %7 = arith.divf %5, %6 : vector<8x1xf32>
    %8 = vector.broadcast %7 : vector<8x1xf32> to vector<8x32xf32>
    %9 = arith.subf %1, %8 : vector<8x32xf32>
    %10 = arith.mulf %9, %9 : vector<8x32xf32>
    %cst_7 = arith.constant dense<0.000000e+00> : vector<8xf32>
    %11 = vector.multi_reduction <add>, %10, %cst_7 [1] : vector<8x32xf32> to vector<8xf32>
    %12 = vector.shape_cast %11 : vector<8xf32> to vector<8x1xf32>
    %cst_8 = arith.constant 3.200000e+01 : f32
    %13 = vector.broadcast %cst_8 : f32 to vector<8x1xf32>
    %14 = arith.divf %12, %13 : vector<8x1xf32>
    %cst_9 = arith.constant 9.99999974E-6 : f32
    %15 = vector.broadcast %cst_9 : f32 to vector<8x1xf32>
    %16 = arith.addf %14, %15 : vector<8x1xf32>
    %17 = math.rsqrt %16 : vector<8x1xf32>
    %18 = vector.broadcast %17 : vector<8x1xf32> to vector<8x32xf32>
    %19 = arith.mulf %9, %18 : vector<8x32xf32>
    %20 = vector.broadcast %2 : vector<1x32xf32> to vector<8x32xf32>
    %21 = arith.mulf %19, %20 : vector<8x32xf32>
    %22 = vector.broadcast %3 : vector<1x32xf32> to vector<8x32xf32>
    %23 = arith.addf %21, %22 : vector<8x32xf32>
    %c0_10 = arith.constant 0 : index
    %c0_11 = arith.constant 0 : index
    %24 = vector.load %arg4[%c0_10, %c0_11] : memref<32x96xf32, #tpu.memory_space<vmem>>, vector<32x96xf32>
    %cst_12 = arith.constant dense<0.000000e+00> : vector<8x96xf32>
    %25 = tpu.matmul %23, %24, %cst_12 {dimension_numbers = #tpu.dot_dimension_numbers<[1], [0], [0], [1], [0, 0, 1, 1], [], []>} : vector<8x32xf32>, vector<32x96xf32>, vector<8x96xf32> -> vector<8x96xf32>
    %c0_13 = arith.constant 0 : index
    %c0_14 = arith.constant 0 : index
    %26 = vector.load %arg5[%c0_13, %c0_14] : memref<1x96xf32, #tpu.memory_space<vmem>>, vector<1x96xf32>
    %27 = vector.broadcast %26 : vector<1x96xf32> to vector<8x96xf32>
    %28 = arith.addf %25, %27 : vector<8x96xf32>
    %29 = vector.extract_strided_slice %28 {offsets = [0, 0], sizes = [8, 32], strides = [1, 1]} : vector<8x96xf32> to vector<8x32xf32>
    %30 = vector.extract_strided_slice %29 {offsets = [0, 0], sizes = [8, 8], strides = [1, 1]} : vector<8x32xf32> to vector<8x8xf32>
    %31 = vector.extract_strided_slice %29 {offsets = [0, 8], sizes = [8, 8], strides = [1, 1]} : vector<8x32xf32> to vector<8x8xf32>
    %32 = vector.extract_strided_slice %29 {offsets = [0, 16], sizes = [8, 8], strides = [1, 1]} : vector<8x32xf32> to vector<8x8xf32>
    %33 = vector.extract_strided_slice %29 {offsets = [0, 24], sizes = [8, 8], strides = [1, 1]} : vector<8x32xf32> to vector<8x8xf32>
    %34 = vector.shape_cast %30 : vector<8x8xf32> to vector<1x8x8xf32>
    %35 = vector.shape_cast %31 : vector<8x8xf32> to vector<1x8x8xf32>
    %36 = vector.shape_cast %32 : vector<8x8xf32> to vector<1x8x8xf32>
    %37 = vector.shape_cast %33 : vector<8x8xf32> to vector<1x8x8xf32>
    %38 = tpu.concatenate %34, %35, %36, %37 in 0 : vector<1x8x8xf32>, vector<1x8x8xf32>, vector<1x8x8xf32>, vector<1x8x8xf32> -> vector<4x8x8xf32>
    %39 = vector.extract_strided_slice %28 {offsets = [0, 32], sizes = [8, 32], strides = [1, 1]} : vector<8x96xf32> to vector<8x32xf32>
    %40 = vector.extract_strided_slice %39 {offsets = [0, 0], sizes = [8, 8], strides = [1, 1]} : vector<8x32xf32> to vector<8x8xf32>
    %41 = vector.extract_strided_slice %39 {offsets = [0, 8], sizes = [8, 8], strides = [1, 1]} : vector<8x32xf32> to vector<8x8xf32>
    %42 = vector.extract_strided_slice %39 {offsets = [0, 16], sizes = [8, 8], strides = [1, 1]} : vector<8x32xf32> to vector<8x8xf32>
    %43 = vector.extract_strided_slice %39 {offsets = [0, 24], sizes = [8, 8], strides = [1, 1]} : vector<8x32xf32> to vector<8x8xf32>
    %44 = vector.shape_cast %40 : vector<8x8xf32> to vector<1x8x8xf32>
    %45 = vector.shape_cast %41 : vector<8x8xf32> to vector<1x8x8xf32>
    %46 = vector.shape_cast %42 : vector<8x8xf32> to vector<1x8x8xf32>
    %47 = vector.shape_cast %43 : vector<8x8xf32> to vector<1x8x8xf32>
    %48 = tpu.concatenate %44, %45, %46, %47 in 0 : vector<1x8x8xf32>, vector<1x8x8xf32>, vector<1x8x8xf32>, vector<1x8x8xf32> -> vector<4x8x8xf32>
    %49 = vector.extract_strided_slice %28 {offsets = [0, 64], sizes = [8, 32], strides = [1, 1]} : vector<8x96xf32> to vector<8x32xf32>
    %50 = vector.extract_strided_slice %49 {offsets = [0, 0], sizes = [8, 8], strides = [1, 1]} : vector<8x32xf32> to vector<8x8xf32>
    %51 = vector.extract_strided_slice %49 {offsets = [0, 8], sizes = [8, 8], strides = [1, 1]} : vector<8x32xf32> to vector<8x8xf32>
    %52 = vector.extract_strided_slice %49 {offsets = [0, 16], sizes = [8, 8], strides = [1, 1]} : vector<8x32xf32> to vector<8x8xf32>
    %53 = vector.extract_strided_slice %49 {offsets = [0, 24], sizes = [8, 8], strides = [1, 1]} : vector<8x32xf32> to vector<8x8xf32>
    %54 = vector.shape_cast %50 : vector<8x8xf32> to vector<1x8x8xf32>
    %55 = vector.shape_cast %51 : vector<8x8xf32> to vector<1x8x8xf32>
    %56 = vector.shape_cast %52 : vector<8x8xf32> to vector<1x8x8xf32>
    %57 = vector.shape_cast %53 : vector<8x8xf32> to vector<1x8x8xf32>
    %58 = tpu.concatenate %54, %55, %56, %57 in 0 : vector<1x8x8xf32>, vector<1x8x8xf32>, vector<1x8x8xf32>, vector<1x8x8xf32> -> vector<4x8x8xf32>
    "tpu.trace_start"() <{level = 10 : i32, message = "hqd,hkd->hqk"}> : () -> ()
    %cst_15 = arith.constant dense<0.000000e+00> : vector<4x8x8xf32>
    %59 = tpu.matmul %38, %48, %cst_15 {dimension_numbers = #tpu.dot_dimension_numbers<[2], [2], [1], [1], [0, 0, 0, 1, 1, 1], [0], [0]>} : vector<4x8x8xf32>, vector<4x8x8xf32>, vector<4x8x8xf32> -> vector<4x8x8xf32>
    "tpu.trace_stop"() : () -> ()
    %cst_16 = arith.constant dense<0xFF800000> : vector<4x8xf32>
    %60 = vector.multi_reduction <maximumf>, %59, %cst_16 [2] : vector<4x8x8xf32> to vector<4x8xf32>
    %61 = vector.shape_cast %60 : vector<4x8xf32> to vector<4x8x1xf32>
    %62 = vector.broadcast %61 : vector<4x8x1xf32> to vector<4x8x8xf32>
    %63 = arith.subf %59, %62 : vector<4x8x8xf32>
    %64 = math.exp %63 : vector<4x8x8xf32>
    %cst_17 = arith.constant dense<0.000000e+00> : vector<4x8xf32>
    %65 = vector.multi_reduction <add>, %64, %cst_17 [2] : vector<4x8x8xf32> to vector<4x8xf32>
    %66 = vector.shape_cast %65 : vector<4x8xf32> to vector<4x8x1xf32>
    %67 = tpu.reciprocal %66 : vector<4x8x1xf32> -> vector<4x8x1xf32>
    %68 = vector.broadcast %67 : vector<4x8x1xf32> to vector<4x8x8xf32>
    %69 = arith.mulf %64, %68 : vector<4x8x8xf32>
    "tpu.trace_start"() <{level = 10 : i32, message = "hqk,hkd->hqd"}> : () -> ()
    %cst_18 = arith.constant dense<0.000000e+00> : vector<4x8x8xf32>
    %70 = tpu.matmul %69, %58, %cst_18 {dimension_numbers = #tpu.dot_dimension_numbers<[2], [1], [1], [2], [0, 0, 0, 1, 1, 2], [0], [0]>} : vector<4x8x8xf32>, vector<4x8x8xf32>, vector<4x8x8xf32> -> vector<4x8x8xf32>
    "tpu.trace_stop"() : () -> ()
    %71 = vector.extract_strided_slice %70 {offsets = [0, 0, 0], sizes = [1, 8, 8], strides = [1, 1, 1]} : vector<4x8x8xf32> to vector<1x8x8xf32>
    %72 = vector.shape_cast %71 : vector<1x8x8xf32> to vector<8x8xf32>
    %73 = vector.extract_strided_slice %70 {offsets = [1, 0, 0], sizes = [1, 8, 8], strides = [1, 1, 1]} : vector<4x8x8xf32> to vector<1x8x8xf32>
    %74 = vector.shape_cast %73 : vector<1x8x8xf32> to vector<8x8xf32>
    %75 = vector.extract_strided_slice %70 {offsets = [2, 0, 0], sizes = [1, 8, 8], strides = [1, 1, 1]} : vector<4x8x8xf32> to vector<1x8x8xf32>
    %76 = vector.shape_cast %75 : vector<1x8x8xf32> to vector<8x8xf32>
    %77 = vector.extract_strided_slice %70 {offsets = [3, 0, 0], sizes = [1, 8, 8], strides = [1, 1, 1]} : vector<4x8x8xf32> to vector<1x8x8xf32>
    %78 = vector.shape_cast %77 : vector<1x8x8xf32> to vector<8x8xf32>
    %79 = tpu.concatenate %72, %74, %76, %78 in 1 : vector<8x8xf32>, vector<8x8xf32>, vector<8x8xf32>, vector<8x8xf32> -> vector<8x32xf32>
    %c0_19 = arith.constant 0 : index
    %c0_20 = arith.constant 0 : index
    %80 = vector.load %arg6[%c0_19, %c0_20] : memref<32x32xf32, #tpu.memory_space<vmem>>, vector<32x32xf32>
    %cst_21 = arith.constant dense<0.000000e+00> : vector<8x32xf32>
    %81 = tpu.matmul %79, %80, %cst_21 {dimension_numbers = #tpu.dot_dimension_numbers<[1], [0], [0], [1], [0, 0, 1, 1], [], []>} : vector<8x32xf32>, vector<32x32xf32>, vector<8x32xf32> -> vector<8x32xf32>
    %c0_22 = arith.constant 0 : index
    %c0_23 = arith.constant 0 : index
    %82 = vector.load %arg7[%c0_22, %c0_23] : memref<1x32xf32, #tpu.memory_space<vmem>>, vector<1x32xf32>
    %83 = vector.broadcast %82 : vector<1x32xf32> to vector<8x32xf32>
    %84 = arith.addf %81, %83 : vector<8x32xf32>
    %85 = arith.addf %1, %84 : vector<8x32xf32>
    %c0_24 = arith.constant 0 : index
    %c0_25 = arith.constant 0 : index
    %86 = vector.load %arg8[%c0_24, %c0_25] : memref<1x32xf32, #tpu.memory_space<vmem>>, vector<1x32xf32>
    %c0_26 = arith.constant 0 : index
    %c0_27 = arith.constant 0 : index
    %87 = vector.load %arg9[%c0_26, %c0_27] : memref<1x32xf32, #tpu.memory_space<vmem>>, vector<1x32xf32>
    %cst_28 = arith.constant dense<0.000000e+00> : vector<8xf32>
    %88 = vector.multi_reduction <add>, %85, %cst_28 [1] : vector<8x32xf32> to vector<8xf32>
    %89 = vector.shape_cast %88 : vector<8xf32> to vector<8x1xf32>
    %cst_29 = arith.constant 3.200000e+01 : f32
    %90 = vector.broadcast %cst_29 : f32 to vector<8x1xf32>
    %91 = arith.divf %89, %90 : vector<8x1xf32>
    %92 = vector.broadcast %91 : vector<8x1xf32> to vector<8x32xf32>
    %93 = arith.subf %85, %92 : vector<8x32xf32>
    %94 = arith.mulf %93, %93 : vector<8x32xf32>
    %cst_30 = arith.constant dense<0.000000e+00> : vector<8xf32>
    %95 = vector.multi_reduction <add>, %94, %cst_30 [1] : vector<8x32xf32> to vector<8xf32>
    %96 = vector.shape_cast %95 : vector<8xf32> to vector<8x1xf32>
    %cst_31 = arith.constant 3.200000e+01 : f32
    %97 = vector.broadcast %cst_31 : f32 to vector<8x1xf32>
    %98 = arith.divf %96, %97 : vector<8x1xf32>
    %cst_32 = arith.constant 9.99999974E-6 : f32
    %99 = vector.broadcast %cst_32 : f32 to vector<8x1xf32>
    %100 = arith.addf %98, %99 : vector<8x1xf32>
    %101 = math.rsqrt %100 : vector<8x1xf32>
    %102 = vector.broadcast %101 : vector<8x1xf32> to vector<8x32xf32>
    %103 = arith.mulf %93, %102 : vector<8x32xf32>
    %104 = vector.broadcast %86 : vector<1x32xf32> to vector<8x32xf32>
    %105 = arith.mulf %103, %104 : vector<8x32xf32>
    %106 = vector.broadcast %87 : vector<1x32xf32> to vector<8x32xf32>
    %107 = arith.addf %105, %106 : vector<8x32xf32>
    %c0_33 = arith.constant 0 : index
    %c0_34 = arith.constant 0 : index
    %108 = vector.load %arg10[%c0_33, %c0_34] : memref<32x128xf32, #tpu.memory_space<vmem>>, vector<32x128xf32>
    %cst_35 = arith.constant dense<0.000000e+00> : vector<8x128xf32>
    %109 = tpu.matmul %107, %108, %cst_35 {dimension_numbers = #tpu.dot_dimension_numbers<[1], [0], [0], [1], [0, 0, 1, 1], [], []>} : vector<8x32xf32>, vector<32x128xf32>, vector<8x128xf32> -> vector<8x128xf32>
    %c0_36 = arith.constant 0 : index
    %c0_37 = arith.constant 0 : index
    %110 = vector.load %arg11[%c0_36, %c0_37] : memref<1x128xf32, #tpu.memory_space<vmem>>, vector<1x128xf32>
    %111 = vector.broadcast %110 : vector<1x128xf32> to vector<8x128xf32>
    %112 = arith.addf %109, %111 : vector<8x128xf32>
    %cst_38 = arith.constant 5.000000e-01 : f32
    %113 = vector.broadcast %cst_38 : f32 to vector<8x128xf32>
    %114 = arith.mulf %113, %112 : vector<8x128xf32>
    %cst_39 = arith.constant 0.707106769 : f32
    %115 = vector.broadcast %cst_39 : f32 to vector<8x128xf32>
    %116 = arith.mulf %112, %115 : vector<8x128xf32>
    %117 = math.absf %116 : vector<8x128xf32>
    %cst_40 = arith.constant 0.327591091 : f32
    %118 = vector.broadcast %cst_40 : f32 to vector<8x128xf32>
    %119 = arith.mulf %118, %117 : vector<8x128xf32>
    %cst_41 = arith.constant 1.000000e+00 : f32
    %120 = vector.broadcast %cst_41 : f32 to vector<8x128xf32>
    %121 = arith.addf %120, %119 : vector<8x128xf32>
    %cst_42 = arith.constant 1.000000e+00 : f32
    %122 = vector.broadcast %cst_42 : f32 to vector<8x128xf32>
    %123 = arith.divf %122, %121 : vector<8x128xf32>
    %cst_43 = arith.constant 1.06140542 : f32
    %124 = vector.broadcast %cst_43 : f32 to vector<8x128xf32>
    %125 = arith.mulf %124, %123 : vector<8x128xf32>
    %cst_44 = arith.constant -1.45315206 : f32
    %126 = vector.broadcast %cst_44 : f32 to vector<8x128xf32>
    %127 = arith.addf %125, %126 : vector<8x128xf32>
    %128 = arith.mulf %127, %123 : vector<8x128xf32>
    %cst_45 = arith.constant 1.42141378 : f32
    %129 = vector.broadcast %cst_45 : f32 to vector<8x128xf32>
    %130 = arith.addf %128, %129 : vector<8x128xf32>
    %131 = arith.mulf %130, %123 : vector<8x128xf32>
    %cst_46 = arith.constant -0.284496725 : f32
    %132 = vector.broadcast %cst_46 : f32 to vector<8x128xf32>
    %133 = arith.addf %131, %132 : vector<8x128xf32>
    %134 = arith.mulf %133, %123 : vector<8x128xf32>
    %cst_47 = arith.constant 0.254829586 : f32
    %135 = vector.broadcast %cst_47 : f32 to vector<8x128xf32>
    %136 = arith.addf %134, %135 : vector<8x128xf32>
    %137 = arith.mulf %136, %123 : vector<8x128xf32>
    %cst_48 = arith.constant 0.000000e+00 : f32
    %138 = vector.broadcast %cst_48 : f32 to vector<8x128xf32>
    %139 = arith.subf %138, %117 : vector<8x128xf32>
    %140 = arith.mulf %139, %117 : vector<8x128xf32>
    %141 = math.exp %140 : vector<8x128xf32>
    %142 = arith.mulf %137, %141 : vector<8x128xf32>
    %cst_49 = arith.constant 1.000000e+00 : f32
    %143 = vector.broadcast %cst_49 : f32 to vector<8x128xf32>
    %144 = arith.subf %143, %142 : vector<8x128xf32>
    %cst_50 = arith.constant 0.000000e+00 : f32
    %145 = vector.broadcast %cst_50 : f32 to vector<8x128xf32>
    %146 = arith.cmpf oge, %116, %145 : vector<8x128xf32>
    %cst_51 = arith.constant 0.000000e+00 : f32
    %147 = vector.broadcast %cst_51 : f32 to vector<8x128xf32>
    %148 = arith.subf %147, %144 : vector<8x128xf32>
    %149 = arith.select %146, %144, %148 : vector<8x128xi1>, vector<8x128xf32>
    %cst_52 = arith.constant 1.000000e+00 : f32
    %150 = vector.broadcast %cst_52 : f32 to vector<8x128xf32>
    %151 = arith.addf %150, %149 : vector<8x128xf32>
    %152 = arith.mulf %114, %151 : vector<8x128xf32>
    %c0_53 = arith.constant 0 : index
    %c0_54 = arith.constant 0 : index
    %153 = vector.load %arg12[%c0_53, %c0_54] : memref<128x32xf32, #tpu.memory_space<vmem>>, vector<128x32xf32>
    %cst_55 = arith.constant dense<0.000000e+00> : vector<8x32xf32>
    %154 = tpu.matmul %152, %153, %cst_55 {dimension_numbers = #tpu.dot_dimension_numbers<[1], [0], [0], [1], [0, 0, 1, 1], [], []>} : vector<8x128xf32>, vector<128x32xf32>, vector<8x32xf32> -> vector<8x32xf32>
    %c0_56 = arith.constant 0 : index
    %c0_57 = arith.constant 0 : index
    %155 = vector.load %arg13[%c0_56, %c0_57] : memref<1x32xf32, #tpu.memory_space<vmem>>, vector<1x32xf32>
    %156 = vector.broadcast %155 : vector<1x32xf32> to vector<8x32xf32>
    %157 = arith.addf %154, %156 : vector<8x32xf32>
    %158 = arith.addf %85, %157 : vector<8x32xf32>
    %c0_58 = arith.constant 0 : index
    %c0_59 = arith.constant 0 : index
    %c0_60 = arith.constant 0 : index
    %159 = vector.load %arg14[%c0_58, %c0_59, %c0_60] : memref<1x8x32xf32, #tpu.memory_space<vmem>>, vector<1x8x32xf32>
    %160 = vector.shape_cast %159 : vector<1x8x32xf32> to vector<8x32xf32>
    %161 = vector.shape_cast %158 : vector<8x32xf32> to vector<1x8x32xf32>
    tpu.vector_store %arg14[%c0_58, %c0_59, %c0_60], %161 {strides = array<i32>} : memref<1x8x32xf32, #tpu.memory_space<vmem>>, vector<1x8x32xf32>,
    return
  }
  func.func @transform_0(%arg0: i32) -> (i32, i32, i32) {
    %c0_i32 = arith.constant 0 : i32
    %c0_i32_0 = arith.constant 0 : i32
    %c0_i32_1 = arith.constant 0 : i32
    return %arg0, %c0_i32, %c0_i32_0 : i32, i32, i32
  }
  func.func @transform_1(%arg0: i32) -> (i32, i32) {
    %c0_i32 = arith.constant 0 : i32
    %c0_i32_0 = arith.constant 0 : i32
    %c0_i32_1 = arith.constant 0 : i32
    return %c0_i32, %c0_i32_0 : i32, i32
  }
  func.func @transform_2(%arg0: i32) -> (i32, i32) {
    %c0_i32 = arith.constant 0 : i32
    %c0_i32_0 = arith.constant 0 : i32
    %c0_i32_1 = arith.constant 0 : i32
    return %c0_i32, %c0_i32_0 : i32, i32
  }
  func.func @transform_3(%arg0: i32) -> (i32, i32) {
    %c0_i32 = arith.constant 0 : i32
    %c0_i32_0 = arith.constant 0 : i32
    %c0_i32_1 = arith.constant 0 : i32
    return %c0_i32, %c0_i32_0 : i32, i32
  }
  func.func @transform_4(%arg0: i32) -> (i32, i32) {
    %c0_i32 = arith.constant 0 : i32
    %c0_i32_0 = arith.constant 0 : i32
    %c0_i32_1 = arith.constant 0 : i32
    return %c0_i32, %c0_i32_0 : i32, i32
  }
  func.func @transform_5(%arg0: i32) -> (i32, i32) {
    %c0_i32 = arith.constant 0 : i32
    %c0_i32_0 = arith.constant 0 : i32
    %c0_i32_1 = arith.constant 0 : i32
    return %c0_i32, %c0_i32_0 : i32, i32
  }
  func.func @transform_6(%arg0: i32) -> (i32, i32) {
    %c0_i32 = arith.constant 0 : i32
    %c0_i32_0 = arith.constant 0 : i32
    %c0_i32_1 = arith.constant 0 : i32
    return %c0_i32, %c0_i32_0 : i32, i32
  }
  func.func @transform_7(%arg0: i32) -> (i32, i32) {
    %c0_i32 = arith.constant 0 : i32
    %c0_i32_0 = arith.constant 0 : i32
    %c0_i32_1 = arith.constant 0 : i32
    return %c0_i32, %c0_i32_0 : i32, i32
  }
  func.func @transform_8(%arg0: i32) -> (i32, i32) {
    %c0_i32 = arith.constant 0 : i32
    %c0_i32_0 = arith.constant 0 : i32
    %c0_i32_1 = arith.constant 0 : i32
    return %c0_i32, %c0_i32_0 : i32, i32
  }
  func.func @transform_9(%arg0: i32) -> (i32, i32) {
    %c0_i32 = arith.constant 0 : i32
    %c0_i32_0 = arith.constant 0 : i32
    %c0_i32_1 = arith.constant 0 : i32
    return %c0_i32, %c0_i32_0 : i32, i32
  }
  func.func @transform_10(%arg0: i32) -> (i32, i32) {
    %c0_i32 = arith.constant 0 : i32
    %c0_i32_0 = arith.constant 0 : i32
    %c0_i32_1 = arith.constant 0 : i32
    return %c0_i32, %c0_i32_0 : i32, i32
  }
  func.func @transform_11(%arg0: i32) -> (i32, i32) {
    %c0_i32 = arith.constant 0 : i32
    %c0_i32_0 = arith.constant 0 : i32
    %c0_i32_1 = arith.constant 0 : i32
    return %c0_i32, %c0_i32_0 : i32, i32
  }
  func.func @transform_12(%arg0: i32) -> (i32, i32) {
    %c0_i32 = arith.constant 0 : i32
    %c0_i32_0 = arith.constant 0 : i32
    %c0_i32_1 = arith.constant 0 : i32
    return %c0_i32, %c0_i32_0 : i32, i32
  }
  func.func @transform_13(%arg0: i32) -> (i32, i32, i32) {
    %c0_i32 = arith.constant 0 : i32
    %c0_i32_0 = arith.constant 0 : i32
    %c0_i32_1 = arith.constant 0 : i32
    return %arg0, %c0_i32, %c0_i32_0 : i32, i32, i32
  }
}

</mosaic_0001>

<bundles_post_ra>
// kernel: tpu_custom_call.1
= control target key start
LH: loop header
LB: loop body
LE: loop exit
PB: predicated region body
PF: predicated region fallthrough
CT: control target
= control target key end

     0   :  { %s2266_s0 = inlined_call_operand.vmem [shape: f32[2,8,32], index: 0, kind: input, shape index: {}]   ;;  %s2267_s1 = inlined_call_operand.vmem [shape: f32[1,32], index: 1, kind: input, shape index: {}]   ;;  %s2268_s2 = inlined_call_operand.vmem [shape: f32[1,32], index: 2, kind: input, shape index: {}]   ;;  %s2269_s3 = inlined_call_operand.vmem [shape: f32[32,96], index: 3, kind: input, shape index: {}]   ;;  %s2270_s4 = inlined_call_operand.vmem [shape: f32[1,96], index: 4, kind: input, shape index: {}]   ;;  %s2271_s5 = inlined_call_operand.vmem [shape: f32[32,32], index: 5, kind: input, shape index: {}]   ;;  %s2272_s6 = inlined_call_operand.vmem [shape: f32[1,32], index: 6, kind: input, shape index: {}]   ;;  %s2273_s7 = inlined_call_operand.vmem [shape: f32[1,32], index: 7, kind: input, shape index: {}]   ;;  %s2274_s8 = inlined_call_operand.vmem [shape: f32[1,32], index: 8, kind: input, shape index: {}]   ;;  %s2275_s9 = inlined_call_operand.vmem [shape: f32[32,128], index: 9, kind: input, shape index: {}]   ;;  %s2276_s10 = inlined_call_operand.vmem [shape: f32[1,128], index: 10, kind: input, shape index: {}]   ;;  %s2277_s11 = inlined_call_operand.vmem [shape: f32[128,32], index: 11, kind: input, shape index: {}]   ;;  %s2278_s12 = inlined_call_operand.vmem [shape: f32[1,32], index: 12, kind: input, shape index: {}]   ;;  %s2279_s13 = inlined_call_operand.hbm [shape: f32[2,8,32], index: 13, kind: output, shape index: {}]  }
   0x1   :  { %2280 = sst [smem:[#allocation5_spill]] %s2266_s0 }
   0x2   :  { %2281 = sst [smem:[#allocation6_spill]] %s2267_s1 }
   0x3   :  { %2282 = sst [smem:[#allocation7_spill]] %s2268_s2 }
   0x4   :  { %2283 = sst [smem:[#allocation8_spill]] %s2269_s3 }
   0x5   :  { %18 = vsyncpa [#allocation3], 0 }
   0x6   :  { %20 = vsyncpa [#allocation3 + $0x1], 0  ;;  %s1809_s25 = smov 0   ;;  %s1811_s26 = smov 0  }
   0x7   :  { %s1813_s27 = smov 0   ;;  %s1815_s28 = smov 0  }
   0x8 LB: > { %s1830_s29 = sadd.s32 4294967295, %s1726_s28   ;;  %s1545_s30 = sadd.s32 4294967294, %s1726_s28   ;;  %s1726_s28 = sphi %s1815_s28, %s2293_s28   ;;  %s1722_s27 = sphi %s1813_s27, %s2292_s27   ;;  %s1718_s26 = sphi %s1811_s26, %s2291_s26   ;;  %s1714_s25 = sphi %s1809_s25, %s2290_s25  }
   0x9   : > { %s1834_s14 = sadd.s32 1, %s1726_s28   ;;  %s311_s15 = sadd.s32 1, %s1722_s27 }
   0xa   : > { %s308_s16 = ssub.s32 %s1726_s28, %s1834_s14  ;;  %p321_p0 = scmp.ne.s32.totalorder %s1722_s27, %s1718_s26 }
   0xb   : > { %p309_p1 = scmp.eq.s32.totalorder %s308_s16, 0  ;;  %p322_p2 = scmp.eq.s32.totalorder %s1830_s29, 1 }
   0xc   : > { %p327_p3 = scmp.ne.s32.totalorder %s1718_s26, %s1714_s25  ;;  %p328_p4 = scmp.eq.s32.totalorder %s1545_s30, 1 }
   0xd   : > { %s1845_s17 = scalar_select %p309_p1, %s1722_s27, %s311_s15  }
   0xe   : > { %p1847_p5 = por %p322_p2, %p321_p0  ;;  %p1851_p6 = por %p328_p4, %p327_p3 }
   0xf   : > { %p1548_p7 = scmp.ge.s32.totalorder %s1726_s28, 1  ;;  %p389_p8 = scmp.lt.s32.totalorder %s1726_s28, 3 }
  0x11   : > { %p390_p9 = pnand %p1548_p7, %p389_p8 }
  0x12   : > { %p432_p10 = scmp.lt.s32.totalorder (!%p390_p9), %s1830_s29, 1  ;;  %s2286_s0 = sld [smem:[#allocation5_spill]] (!%p390_p9) }
  0x13   : > { %393 = sbr.rel (%p390_p9) target bundleno = 2085 (0x825), region = 72  ;;  %s2287_s3 = sld [smem:[#allocation8_spill]] (!%p390_p9) }
  0x14   : > { %s2288_s1 = sld [smem:[#allocation6_spill]] (!%p390_p9)  ;;  %s1729_s23 = smov (!%p390_p9), 104  }
  0x15   : > { %s2289_s2 = sld [smem:[#allocation7_spill]] (!%p390_p9)  ;;  %s1731_s30 = smov (!%p390_p9), 96  }
  0x16   : > { %s1732_s15 = smov (!%p390_p9), 112   ;;  %s1735_s16 = smov (!%p390_p9), 64  }
  0x17   : > { %s1738_s22 = smov (!%p390_p9), 24  }
  0x18   : > { %s433_s20 = scalar_select %p432_p10, %s1830_s29, 1  ;;  %vm439_vm0 = vcmask 261120   ;;  %v1728_v2 = vmov 32.0   ;;  %v1632_v33 = vld [vmem:[%s2270_s4] ss:$0 sm:$0xff]  ;;  %vm519_vm5 = vcmask 1047556  }
  0x19   : > { %1638 = vrcp.f32 %v1728_v2  ;;  %v480_v14 = vld [vmem:[%s2287_s3 + $0x18] sm:$0xff]  ;;  %v479_v15 = vld [vmem:[%s2287_s3 + $0x10] sm:$0xff]  ;;  %v478_v16 = vld [vmem:[%s2287_s3 + $0x8] sm:$0xff]  ;;  %v1733_v38 = vmov 1983009808   ;;  %vm873_vm6 = vcmask 64512  }
  0x1a   : > { %s1550_s21 = sshll.u32 %s433_s20, 3  ;;  %500 = vmatpush.msra.mxu1 %v480_v14  ;;  %v477_v17 = vld [vmem:[%s2287_s3] sm:$0xff]  ;;  %v524_v39 = vunpack.c.l.s4 %v1733_v38  ;;  %v1734_v45 = vmov 1934713408   ;;  %s1736_s20 = smov 16  }
  0x1b   : > { %s435_s24 = scalar_lea.vmem %s2286_s0, %s1550_s21  ;;  %v1630_v27 = vld [vmem:[%s2288_s1] ss:$0 sm:$0xff]  ;;  %v548_v46 = vunpack.c.l.s4 %v1734_v45  ;;  %s1737_s21 = smov 8  }
  0x1c   : > { %v1862_v0 = vld [vmem:[%s435_s24] sm:$0xff]  ;;  %501 = vmatpush.msra.mxu1 %v479_v15  ;;  %s1730_s24 = smov 120   ;;  %v1912_v44 = vunpack.c.0.s8 %v524_v39  ;;  %s1567_s0 = sshll.u32 %s1830_s29, 3 }
  0x1d   : > { %v440_v1 = vsel %vm439_vm0, %v1862_v0, 0.0  ;;  %v1631_v30 = vld [vmem:[%s2289_s2] ss:$0 sm:$0xff]  ;;  %v1919_v51 = vunpack.c.0.s8 %v548_v46 }
  0x1e   : > { %441 = vadd.xlane.f32.xlu0 %v440_v1  ;;  %502 = vmatpush.msra.mxu1 %v478_v16 }
  0x1f   : > { %v1639_v3 = vpop.eup %1638 }
  0x20   : > { %v444_v4 = vmul.f32 32.0, %v1639_v3  ;;  %vm448_vm1 = vweird.f32 %v1639_v3  ;;  %503 = vmatpush.msra.mxu1 %v477_v17 }
  0x22   : > { %v445_v5 = vsub.f32 1.0, %v444_v4 }
  0x24   : > { %v446_v6 = vmul.f32 %v1639_v3, %v445_v5 }
  0x26   : > { %v447_v7 = vadd.f32 %v1639_v3, %v446_v6 }
  0x28   : > { %v1866_v8 = vsel %vm448_vm1, %v1639_v3, %v447_v7 }
  0x91   : > { %v442_v9 = vpop.xlane.xlu0 %441 }
  0x92   : > { %v450_v10 = vmul.f32 %v1866_v8, %v442_v9 }
  0x94   : > { %v451_v11 = vsub.f32 %v1862_v0, %v450_v10 }
  0x96   : > { %v452_v12 = vmul.f32 %v451_v11, %v451_v11 }
  0x98   : > { %v453_v13 = vsel %vm439_vm0, %v452_v12, 0.0 }
  0x99   : > { %454 = vadd.xlane.f32.xlu0 %v453_v13 }
 0x10c   : > { %v455_v18 = vpop.xlane.xlu0 %454 }
 0x10d   : > { %v456_v19 = vmul.f32 %v455_v18, %v1866_v8 }
 0x10f   : > { %v457_v20 = vadd.f32 1e-05, %v456_v19 }
 0x111   : > { %1640 = vrsqrt.f32 %v457_v20  ;;  %vm464_vm3 = vweird.f32 %v457_v20 }
 0x117   : > { %v1641_v21 = vpop.eup %1640 }
 0x118   : > { %v459_v22 = vmul.f32 %v1641_v21, %v457_v20  ;;  %vm465_vm2 = vweird.f32 %v1641_v21 }
 0x119   : > { %vm466_vm4 = vmor %vm464_vm3, %vm465_vm2 }
 0x11a   : > { %v460_v23 = vmul.f32 %v1641_v21, %v459_v22 }
 0x11c   : > { %v461_v24 = vmul.f32 0.5, %v460_v23 }
 0x11e   : > { %v462_v25 = vsub.f32 1.5, %v461_v24 }
 0x120   : > { %v463_v26 = vmul.f32 %v1641_v21, %v462_v25 }
 0x122   : > { %v467_v28 = vsel %vm466_vm4, %v1641_v21, %v463_v26 }
 0x123   : > { %v468_v29 = vmul.f32 %v467_v28, %v451_v11 }
 0x125   : > { %v472_v31 = vmul.f32 %v1630_v27, %v468_v29 }
 0x127   : > { %v476_v32 = vadd.f32 %v1631_v30, %v472_v31 }
 0x129   : > { %1551 = vmatmul.msk.f32.vlgmr.msra.gmra.mxu1 %vm439_vm0, %v476_v32 }
 0x1a6   : > { %v505_v34 = vpop.f32.mrf.mxu1 }
 0x1a7   : > { %v1894_v35 = vadd.f32 %v1632_v33, %v505_v34 }
 0x1a9   : > { %515 = vrot.lane.b32.xlu2 %v1894_v35, %s1729_s23  ;;  %509 = vrot.lane.b32.xlu1 %v1894_v35, %s1730_s24  ;;  %v521_v48 = vrot.slane %v1894_v35, 4 }
 0x1b1   : > { %629 = vrot.lane.b32.xlu2 %v1894_v35, %s1731_s30  ;;  %512 = vrot.lane.b32.xlu1 %v1894_v35, %s1732_s15 }
 0x203   : > { %v1900_v36 = vpop.permute.xlu2 %515 }
 0x204   : > { %635 = vrot.lane.b32.xlu2 %v1900_v36, %s1731_s30  ;;  %v531_v37 = vrot.slane %v1900_v36, 4 }
 0x21b   : > { %v1904_v40 = vpop.permute.xlu1 %509 }
 0x21c   : > { %v532_v41 = vsel %vm519_vm5, %v531_v37, %v1904_v40  ;;  %v533_v42 = vrot.slane %v1904_v40, 4  ;;  %631 = vrot.lane.b32.xlu0 %v1904_v40, %s1731_s30 }
 0x21d   : > { %v538_v49 = vperm.slane %v532_v41, %v1912_v44 }
 0x21e   : > { %v534_v43 = vsel %vm519_vm5, %v1900_v36, %v533_v42 }
 0x21f   : > { %v542_v47 = vperm.slane %v534_v43, %v1912_v44  ;;  %v543_v57 = vrot.slane %v538_v49, 4 }
 0x221   : > { %v555_v54 = vrot.slane %v542_v47, 4 }
 0x223   : > { %v1917_v50 = vpop.permute.xlu1 %512 }
 0x224   : > { %v518_v52 = vrot.slane %v1917_v50, 4  ;;  %v522_v53 = vsel %vm519_vm5, %v1917_v50, %v521_v48  ;;  %633 = vrot.lane.b32.xlu1 %v1917_v50, %s1731_s30 }
 0x225   : > { %v530_v55 = vperm.slane %v522_v53, %v1912_v44 }
 0x226   : > { %v520_v56 = vsel %vm519_vm5, %v518_v52, %v1894_v35 }
 0x227   : > { %v526_v58 = vperm.slane %v520_v56, %v1912_v44  ;;  %v556_v59 = vsel %vm519_vm5, %v555_v54, %v530_v55  ;;  %v557_v60 = vrot.slane %v530_v55, 4 }
 0x228   : > { %v562_v61 = vperm.slane %v556_v59, %v1919_v51 }
 0x229   : > { %v544_v62 = vsel %vm519_vm5, %v543_v57, %v526_v58  ;;  %v545_v63 = vrot.slane %v526_v58, 4  ;;  %v558_v1 = vsel %vm519_vm5, %v542_v47, %v557_v60 }
 0x22a   : > { %v550_v2 = vperm.slane %v544_v62, %v1919_v51  ;;  %v566_v3 = vperm.slane %v558_v1, %v1919_v51  ;;  %v571_v6 = vrot.slane %v562_v61, 4 }
 0x22b   : > { %v546_v4 = vsel %vm519_vm5, %v538_v49, %v545_v63  ;;  %v630_v49 = vpop.permute.xlu2 %629 }
 0x22c   : > { %v554_v5 = vperm.slane %v546_v4, %v1919_v51  ;;  %v573_v7 = vrot.slane %v566_v3, 4  ;;  %v567_v10 = vrot.slane %v550_v2, 4  ;;  %v572_v15 = vsel %vm519_vm5, 0.0, %v571_v6 }
 0x22d   : > { %v643_v59 = vrot.slane %v630_v49, 4 }
 0x22e   : > { %v574_v9 = vsel %vm519_vm5, 0.0, %v573_v7  ;;  %v569_v11 = vrot.slane %v554_v5, 4  ;;  %v586_v12 = vsel %vm519_vm5, %v573_v7, %v562_v61  ;;  %v568_v22 = vsel %vm519_vm5, 0.0, %v567_v10 }
 0x22f   : > { %v591_v13 = vrot.slane %v574_v9, 4  ;;  %v590_v14 = vperm.slane %v586_v12, %v1912_v44 }
 0x230   : > { %v570_v16 = vsel %vm519_vm5, 0.0, %v569_v11  ;;  %v575_v17 = vsel %vm519_vm5, %v569_v11, %v550_v2 }
 0x231   : > { %v579_v18 = vperm.slane %v575_v17, %v1912_v44  ;;  %v580_v19 = vrot.slane %v570_v16, 4  ;;  %v592_v20 = vsel %vm519_vm5, %v591_v13, %v572_v15  ;;  %v611_v21 = vrot.slane %v590_v14, 4 }
 0x232   : > { %v596_v23 = vperm.slane %v592_v20, %v1912_v44 }
 0x233   : > { %v581_v24 = vsel %vm519_vm5, %v580_v19, %v568_v22  ;;  %v599_v25 = vrot.slane %v579_v18, 4 }
 0x234   : > { %v585_v26 = vperm.slane %v581_v24, %v1912_v44  ;;  %v612_v27 = vsel %vm519_vm5, %v596_v23, %v611_v21  ;;  %v609_v28 = vrot.slane %v596_v23, 4 }
 0x235   : > { %v620_v29 = vperm.slane %v612_v27, %v1919_v51 }
 0x236   : > { %v600_v30 = vsel %vm519_vm5, %v585_v26, %v599_v25  ;;  %v597_v31 = vrot.slane %v585_v26, 4  ;;  %v610_v32 = vsel %vm519_vm5, %v609_v28, %v590_v14 }
 0x237   : > { %v608_v33 = vperm.slane %v600_v30, %v1919_v51  ;;  %v625_v34 = vrot.slane %v620_v29, 4  ;;  %v616_v37 = vperm.slane %v610_v32, %v1919_v51 }
 0x238   : > { %v598_v38 = vsel %vm519_vm5, %v597_v31, %v579_v18 }
 0x239   : > { %v1957_v39 = vsel %vm519_vm5, %v625_v34, %v608_v33  ;;  %v627_v41 = vrot.slane %v608_v33, 4  ;;  %v604_v42 = vperm.slane %v598_v38, %v1919_v51  ;;  %v621_v43 = vrot.slane %v616_v37, 4 }
 0x23b   : > { %v1961_v45 = vsel %vm519_vm5, %v621_v43, %v604_v42  ;;  %v623_v46 = vrot.slane %v604_v42, 4  ;;  %v1964_v47 = vsel %vm519_vm5, %v620_v29, %v627_v41 }
 0x23d   : > { %v1967_v48 = vsel %vm519_vm5, %v616_v37, %v623_v46 }
 0x25e   : > { %v636_v52 = vpop.permute.xlu2 %635 }
 0x25f   : > { %v653_v55 = vrot.slane %v636_v52, 4 }
 0x28e   : > { %v632_v53 = vpop.permute.xlu0 %631 }
 0x28f   : > { %v655_v54 = vrot.slane %v632_v53, 4  ;;  %v654_v57 = vsel %vm519_vm5, %v653_v55, %v632_v53 }
 0x290   : > { %v660_v60 = vperm.slane %v654_v57, %v1912_v44 }
 0x291   : > { %v656_v56 = vsel %vm519_vm5, %v636_v52, %v655_v54 }
 0x292   : > { %v664_v58 = vperm.slane %v656_v56, %v1912_v44  ;;  %v665_v4 = vrot.slane %v660_v60, 4 }
 0x294   : > { %v677_v1 = vrot.slane %v664_v58, 4 }
 0x296   : > { %v634_v61 = vpop.permute.xlu1 %633 }
 0x297   : > { %v641_v62 = vrot.slane %v634_v61, 4  ;;  %v644_v63 = vsel %vm519_vm5, %v634_v61, %v643_v59 }
 0x298   : > { %v652_v2 = vperm.slane %v644_v63, %v1912_v44 }
 0x299   : > { %v642_v3 = vsel %vm519_vm5, %v641_v62, %v630_v49 }
 0x29a   : > { %v648_v5 = vperm.slane %v642_v3, %v1912_v44  ;;  %v678_v6 = vsel %vm519_vm5, %v677_v1, %v652_v2  ;;  %v679_v7 = vrot.slane %v652_v2, 4 }
 0x29b   : > { %v684_v9 = vperm.slane %v678_v6, %v1919_v51 }
 0x29c   : > { %v666_v10 = vsel %vm519_vm5, %v665_v4, %v648_v5  ;;  %v667_v11 = vrot.slane %v648_v5, 4  ;;  %v680_v12 = vsel %vm519_vm5, %v664_v58, %v679_v7 }
 0x29d   : > { %v672_v13 = vperm.slane %v666_v10, %v1919_v51  ;;  %v688_v14 = vperm.slane %v680_v12, %v1919_v51  ;;  %v693_v17 = vrot.slane %v684_v9, 4 }
 0x29e   : > { %v668_v15 = vsel %vm519_vm5, %v660_v60, %v667_v11 }
 0x29f   : > { %v676_v16 = vperm.slane %v668_v15, %v1919_v51  ;;  %v695_v18 = vrot.slane %v688_v14, 4  ;;  %v689_v19 = vrot.slane %v672_v13, 4  ;;  %v694_v25 = vsel %vm519_vm5, 0.0, %v693_v17 }
 0x2a1   : > { %v691_v20 = vrot.slane %v676_v16, 4  ;;  %v696_v21 = vsel %vm519_vm5, 0.0, %v695_v18  ;;  %v708_v22 = vsel %vm519_vm5, %v695_v18, %v684_v9  ;;  %v690_v32 = vsel %vm519_vm5, 0.0, %v689_v19 }
 0x2a2   : > { %v712_v23 = vperm.slane %v708_v22, %v1912_v44  ;;  %v713_v24 = vrot.slane %v696_v21, 4 }
 0x2a3   : > { %v692_v26 = vsel %vm519_vm5, 0.0, %v691_v20  ;;  %v697_v27 = vsel %vm519_vm5, %v691_v20, %v672_v13 }
 0x2a4   : > { %v701_v28 = vperm.slane %v697_v27, %v1912_v44  ;;  %v702_v29 = vrot.slane %v692_v26, 4  ;;  %v714_v30 = vsel %vm519_vm5, %v713_v24, %v694_v25  ;;  %v733_v31 = vrot.slane %v712_v23, 4 }
 0x2a5   : > { %v718_v33 = vperm.slane %v714_v30, %v1912_v44 }
 0x2a6   : > { %v703_v34 = vsel %vm519_vm5, %v702_v29, %v690_v32  ;;  %v721_v37 = vrot.slane %v701_v28, 4 }
 0x2a7   : > { %v707_v38 = vperm.slane %v703_v34, %v1912_v44  ;;  %v734_v41 = vsel %vm519_vm5, %v718_v33, %v733_v31  ;;  %v731_v42 = vrot.slane %v718_v33, 4 }
 0x2a8   : > { %v742_v43 = vperm.slane %v734_v41, %v1919_v51 }
 0x2a9   : > { %v722_v46 = vsel %vm519_vm5, %v707_v38, %v721_v37  ;;  %v719_v49 = vrot.slane %v707_v38, 4  ;;  %v732_v52 = vsel %vm519_vm5, %v731_v42, %v712_v23 }
 0x2aa   : > { %v730_v53 = vperm.slane %v722_v46, %v1919_v51  ;;  %v747_v54 = vrot.slane %v742_v43, 4  ;;  %v738_v55 = vperm.slane %v732_v52, %v1919_v51 }
 0x2ab   : > { %v720_v56 = vsel %vm519_vm5, %v719_v49, %v701_v28 }
 0x2ac   : > { %v748_v57 = vsel %vm519_vm5, %v747_v54, %v730_v53  ;;  %v749_v58 = vrot.slane %v730_v53, 4  ;;  %v726_v59 = vperm.slane %v720_v56, %v1919_v51  ;;  %v743_v60 = vrot.slane %v738_v55, 4 }
 0x2ad   : > { %1556 = vmatpush.xpose.msk.msra.mxu3 %vm873_vm6, %v748_v57 }
 0x2ae   : > { %v744_v61 = vsel %vm519_vm5, %v743_v60, %v726_v59  ;;  %v750_v62 = vsel %vm519_vm5, %v742_v43, %v749_v58  ;;  %v745_v63 = vrot.slane %v726_v59, 4 }
 0x2af   : > { %1552 = vmatpush.xpose.msk.msrb.mxu1 %vm873_vm6, %v744_v61 }
 0x2b0   : > { %1557 = vmatmul.msk.f32.vlgmr.msra.gmra.mxu3 %vm873_vm6, %v1957_v39  ;;  %v746_v1 = vsel %vm519_vm5, %v738_v55, %v745_v63 }
 0x2b1   : > { %1554 = vmatpush.xpose.msk.msra.mxu2 %vm873_vm6, %v746_v1 }
 0x2b2   : > { %1553 = vmatmul.msk.f32.vlgmr.msrb.gmra.mxu1 %vm873_vm6, %v1961_v45 }
 0x2b3   : > { %1558 = vmatpush.xpose.msk.msra.mxu1 %vm873_vm6, %v750_v62 }
 0x2b4   : > { %1555 = vmatmul.msk.f32.vlgmr.msra.gmra.mxu2 %vm873_vm6, %v1967_v48  ;;  %v1620_v48 = vpack.i.bf16 %v1904_v40, %v1894_v35 }
 0x2ba   : > { %1559 = vmatmul.msk.f32.vlgmr.msra.gmra.mxu1 %vm873_vm6, %v1964_v47  ;;  %v1625_v47 = vpack.i.bf16 %v1900_v36, %v1917_v50 }
 0x32f   : > { %v897_v2 = vpop.f32.mrf.mxu1 }
 0x330   : > { %v978_v3 = vsel %vm873_vm6, %v897_v2, -inf }
 0x331   : > { %979 = vmax.xlane.f32.xlu1 %v978_v3 }
 0x333   : > { %v949_v39 = vpop.f32.mrf.mxu3 }
 0x334   : > { %v984_v4 = vsel %vm873_vm6, %v949_v39, -inf }
 0x335   : > { %985 = vmax.xlane.f32.xlu2 %v984_v4 }
 0x337   : > { %v923_v5 = vpop.f32.mrf.mxu2  ;;  %v975_v7 = vpop.f32.mrf.mxu1 }
 0x338   : > { %v981_v6 = vsel %vm873_vm6, %v923_v5, -inf  ;;  %v987_v45 = vsel %vm873_vm6, %v975_v7, -inf }
 0x339   : > { %982 = vmax.xlane.f32.xlu0 %v981_v6 }
 0x33d   : > { %988 = vmax.xlane.f32.xlu2 %v987_v45 }
 0x34a   : > { %1621 = vrot.lane.b32.xlu1 %v1620_v48, %s1735_s16 }
 0x355   : > { %1626 = vrot.lane.b32.xlu2 %v1625_v47, %s1735_s16  ;;  %s1481_s16 = scalar_lea.hbm %s2279_s13, %s1567_s0 }
 0x356   : > { %s1485_s2 = sshll.u32 %s1481_s16, 4  ;;  %s1486_s2 = int_to_ptr.hbm [resolvable:$true] %s1485_s2 }
 0x357   : > { %s1678_s3 = sshra.s32 %s1486_s2, 4  ;;  %s1679_s3 = int_to_ptr.hbm [resolvable:$true] %s1678_s3 }
 0x358   : > { %s1680_s1 = scalar_lea.hbm %s1679_s3, 8  ;;  %p1685_p0 = scmp.lt.s32.totalorder %s1679_s3, %s2279_s13 }
 0x359   : > { %p1681_p11 = scmp.ne.s32.totalorder %s1679_s3, %s1680_s1 }
 0x35b   : > { %p1682_p12 = pnand %p1681_p11, %p1847_p5 }
 0x35d   : > { %p1683_p13 = pneg %p1682_p12 }
 0x3a4   : > { %v980_v9 = vpop.xlane.xlu1 %979 }
 0x3a5   : > { %v990_v10 = vsub.f32 %v897_v2, %v980_v9 }
 0x3a7   : > { %v994_v11 = vmul.f32 1.442695, %v990_v10 }
 0x3a8   : > { %v986_v12 = vpop.xlane.xlu2 %985 }
 0x3a9   : > { %1642 = vpow2.f32 %v994_v11  ;;  %v992_v13 = vsub.f32 %v949_v39, %v986_v12 }
 0x3ab   : > { %v998_v14 = vmul.f32 1.442695, %v992_v13 }
 0x3ac   : > { %v983_v15 = vpop.xlane.xlu0 %982 }
 0x3ad   : > { %v991_v16 = vsub.f32 %v923_v5, %v983_v15  ;;  %1644 = vpow2.f32 %v998_v14 }
 0x3af   : > { %v2029_v17 = vpop.eup %1642  ;;  %v996_v18 = vmul.f32 1.442695, %v991_v16 }
 0x3b0   : > { %v989_v35 = vpop.xlane.xlu2 %988  ;;  %v1002_v40 = vsel %vm873_vm6, %v2029_v17, 0.0 }
 0x3b1   : > { %1646 = vpow2.f32 %v996_v18  ;;  %v993_v36 = vsub.f32 %v975_v7, %v989_v35  ;;  %1003 = vadd.xlane.f32.xlu0 %v1002_v40 }
 0x3b3   : > { %v1000_v50 = vmul.f32 1.442695, %v993_v36  ;;  %v2033_v19 = vpop.eup %1644 }
 0x3b4   : > { %v1008_v23 = vsel %vm873_vm6, %v2033_v19, 0.0 }
 0x3b5   : > { %1648 = vpow2.f32 %v1000_v50 }
 0x3b7   : > { %v2035_v20 = vpop.eup %1646 }
 0x3b8   : > { %v1627_v21 = vpop.permute.xlu2 %1626  ;;  %v1005_v22 = vsel %vm873_vm6, %v2035_v20, 0.0 }
 0x3b9   : > { %v1629_v24 = vunpack.i.h.bf16 %v1627_v21  ;;  %v1628_v25 = vunpack.i.l.bf16 %v1627_v21  ;;  %1006 = vadd.xlane.f32.xlu1 %v1005_v22  ;;  %1009 = vadd.xlane.f32.xlu0 %v1008_v23 }
 0x3bb   : > { %v2041_v27 = vpop.eup %1648  ;;  %v775_v28 = vrot.slane %v1629_v24, 4  ;;  %v763_v29 = vrot.slane %v1628_v25, 4 }
 0x3bc   : > { %v1622_v26 = vpop.permute.xlu1 %1621  ;;  %v1011_v42 = vsel %vm873_vm6, %v2041_v27, 0.0 }
 0x3bd   : > { %v1624_v30 = vunpack.i.h.bf16 %v1622_v26  ;;  %v1623_v31 = vunpack.i.l.bf16 %v1622_v26 }
 0x3bf   : > { %v777_v32 = vrot.slane %v1624_v30, 4  ;;  %v764_v33 = vsel %vm519_vm5, %v763_v29, %v1623_v31  ;;  %v765_v34 = vrot.slane %v1623_v31, 4  ;;  %v776_v37 = vsel %vm519_vm5, %v775_v28, %v1624_v30 }
 0x3c0   : > { %v770_v38 = vperm.slane %v764_v33, %v1912_v44  ;;  %v782_v41 = vperm.slane %v776_v37, %v1912_v44 }
 0x3c1   : > { %v766_v43 = vsel %vm519_vm5, %v1628_v25, %v765_v34  ;;  %v778_v46 = vsel %vm519_vm5, %v1629_v24, %v777_v32  ;;  %1012 = vadd.xlane.f32.xlu0 %v1011_v42 }
 0x3c2   : > { %v774_v49 = vperm.slane %v766_v43, %v1912_v44  ;;  %v786_v52 = vperm.slane %v778_v46, %v1912_v44  ;;  %v787_v53 = vrot.slane %v782_v41, 4  ;;  %v789_v54 = vrot.slane %v770_v38, 4 }
 0x3c4   : > { %v788_v55 = vsel %vm519_vm5, %v787_v53, %v770_v38  ;;  %v790_v56 = vsel %vm519_vm5, %v782_v41, %v789_v54  ;;  %v799_v57 = vrot.slane %v786_v52, 4  ;;  %v801_v58 = vrot.slane %v774_v49, 4 }
 0x3c5   : > { %v794_v59 = vperm.slane %v788_v55, %v1919_v51  ;;  %v798_v60 = vperm.slane %v790_v56, %v1919_v51 }
 0x3c6   : > { %v800_v61 = vsel %vm519_vm5, %v799_v57, %v774_v49  ;;  %v802_v62 = vsel %vm519_vm5, %v786_v52, %v801_v58 }
 0x3c7   : > { %v806_v63 = vperm.slane %v800_v61, %v1919_v51  ;;  %v810_v1 = vperm.slane %v802_v62, %v1919_v51  ;;  %v811_v2 = vrot.slane %v794_v59, 4  ;;  %v813_v3 = vrot.slane %v798_v60, 4 }
 0x3c9   : > { %v814_v39 = vsel %vm519_vm5, 0.0, %v813_v3  ;;  %v815_v4 = vrot.slane %v806_v63, 4  ;;  %v817_v5 = vrot.slane %v810_v1, 4  ;;  %v819_v6 = vsel %vm519_vm5, %v813_v3, %v794_v59 }
 0x3ca   : > { %v824_v7 = vrot.slane %v814_v39, 4  ;;  %v812_v45 = vsel %vm519_vm5, 0.0, %v811_v2  ;;  %v823_v47 = vperm.slane %v819_v6, %v1912_v44 }
 0x3cb   : > { %v818_v48 = vsel %vm519_vm5, 0.0, %v817_v5  ;;  %v830_v9 = vsel %vm519_vm5, %v817_v5, %v806_v63  ;;  %v816_v13 = vsel %vm519_vm5, 0.0, %v815_v4 }
 0x3cc   : > { %v835_v10 = vrot.slane %v818_v48, 4  ;;  %v825_v11 = vsel %vm519_vm5, %v824_v7, %v812_v45  ;;  %v834_v12 = vperm.slane %v830_v9, %v1912_v44  ;;  %v843_v15 = vrot.slane %v823_v47, 4 }
 0x3cd   : > { %v829_v14 = vperm.slane %v825_v11, %v1912_v44 }
 0x3ce   : > { %v836_v16 = vsel %vm519_vm5, %v835_v10, %v816_v13  ;;  %v855_v18 = vrot.slane %v834_v12, 4 }
 0x3cf   : > { %v840_v35 = vperm.slane %v836_v16, %v1912_v44  ;;  %v844_v40 = vsel %vm519_vm5, %v829_v14, %v843_v15  ;;  %v841_v36 = vrot.slane %v829_v14, 4 }
 0x3d0   : > { %v852_v50 = vperm.slane %v844_v40, %v1919_v51 }
 0x3d1   : > { %v856_v21 = vsel %vm519_vm5, %v840_v35, %v855_v18  ;;  %v842_v22 = vsel %vm519_vm5, %v841_v36, %v823_v47  ;;  %v853_v23 = vrot.slane %v840_v35, 4 }
 0x3d2   : > { %v864_v24 = vperm.slane %v856_v21, %v1919_v51  ;;  %v871_v25 = vrot.slane %v852_v50, 4  ;;  %v848_v26 = vperm.slane %v842_v22, %v1919_v51 }
 0x3d3   : > { %v854_v28 = vsel %vm519_vm5, %v853_v23, %v834_v12 }
 0x3d4   : > { %v872_v29 = vsel %vm519_vm5, %v864_v24, %v871_v25  ;;  %v860_v30 = vperm.slane %v854_v28, %v1919_v51  ;;  %v867_v31 = vrot.slane %v848_v26, 4  ;;  %v869_v32 = vrot.slane %v864_v24, 4 }
 0x3d5   : > { %1161 = vmatpush.msrb.mxu1 %v872_v29 }
 0x3d6   : > { %v868_v33 = vsel %vm519_vm5, %v860_v30, %v867_v31  ;;  %v865_v34 = vrot.slane %v860_v30, 4  ;;  %v870_v38 = vsel %vm519_vm5, %v869_v32, %v852_v50 }
 0x3d7   : > { %1115 = vmatpush.msrb.mxu3 %v868_v33 }
 0x3d8   : > { %v866_v37 = vsel %vm519_vm5, %v865_v34, %v848_v26 }
 0x3d9   : > { %1092 = vmatpush.msrb.mxu2 %v866_v37 }
 0x3db   : > { %1138 = vmatpush.msra.mxu2 %v870_v38 }
 0x424   : > { %v1004_v41 = vpop.xlane.xlu0 %1003 }
 0x425   : > { %1650 = vrcp.f32 %v1004_v41  ;;  %v1025_v54 = vand.u32 2147483648, %v1004_v41  ;;  %v1023_v55 = vand.u32 2147483647, %v1004_v41  ;;  %vm1019_vm8 = vweird.f32 %v1004_v41 }
 0x427   : > { %v1026_v59 = vor.u32 1.1754944e-38, %v1025_v54  ;;  %vm1024_vm10 = vcmp.eq.f32.partialorder %v1023_v55, 8.507059e+37 }
 0x42b   : > { %v1651_v42 = vpop.eup %1650 }
 0x42c   : > { %v1015_v43 = vmul.f32 %v1651_v42, %v1004_v41  ;;  %v1010_v46 = vpop.xlane.xlu0 %1009  ;;  %v1007_v49 = vpop.xlane.xlu1 %1006  ;;  %vm1020_vm7 = vweird.f32 %v1651_v42 }
 0x42d   : > { %1652 = vrcp.f32 %v1010_v46  ;;  %vm1021_vm9 = vmor %vm1019_vm8, %vm1020_vm7  ;;  %v1053_v3 = vand.u32 2147483648, %v1010_v46  ;;  %v1051_v6 = vand.u32 2147483647, %v1010_v46  ;;  %v1039_v7 = vand.u32 2147483648, %v1007_v49 }
 0x42e   : > { %v1016_v52 = vsub.f32 1.0, %v1015_v43  ;;  %1654 = vrcp.f32 %v1007_v49  ;;  %v1037_v48 = vand.u32 2147483647, %v1007_v49  ;;  %vm1047_vm13 = vweird.f32 %v1010_v46 }
 0x42f   : > { %v1054_v10 = vor.u32 1.1754944e-38, %v1053_v3  ;;  %vm1033_vm15 = vweird.f32 %v1007_v49  ;;  %vm1052_vm1 = vcmp.eq.f32.partialorder %v1051_v6, 8.507059e+37 }
 0x430   : > { %v1017_v53 = vmul.f32 %v1651_v42, %v1016_v52  ;;  %vm1038_vm3 = vcmp.eq.f32.partialorder %v1037_v48, 8.507059e+37 }
 0x432   : > { %v1018_v56 = vadd.f32 %v1651_v42, %v1017_v53 }
 0x433   : > { %v1653_v57 = vpop.eup %1652 }
 0x434   : > { %v1655_v58 = vpop.eup %1654  ;;  %v1043_v60 = vmul.f32 %v1653_v57, %v1010_v46  ;;  %v1013_v61 = vpop.xlane.xlu0 %1012  ;;  %v1022_v62 = vsel %vm1021_vm9, %v1651_v42, %v1018_v56  ;;  %vm1048_vm11 = vweird.f32 %v1653_v57 }
 0x435   : > { %v1029_v63 = vmul.f32 %v1655_v58, %v1007_v49  ;;  %1656 = vrcp.f32 %v1013_v61  ;;  %v1027_v2 = vsel %vm1024_vm10, %v1026_v59, %v1022_v62  ;;  %vm1034_vm12 = vweird.f32 %v1655_v58  ;;  %vm1049_vm14 = vmor %vm1047_vm13, %vm1048_vm11 }
 0x436   : > { %v1044_v1 = vsub.f32 1.0, %v1043_v60  ;;  %v1070_v4 = vmul.f32 %v2029_v17, %v1027_v2  ;;  %vm1035_vm2 = vmor %vm1033_vm15, %vm1034_vm12  ;;  %v1040_v17 = vor.u32 1.1754944e-38, %v1039_v7  ;;  %v1067_v40 = vand.u32 2147483648, %v1013_v61 }
 0x437   : > { %v1030_v39 = vsub.f32 1.0, %v1029_v63  ;;  %v1065_v21 = vand.u32 2147483647, %v1013_v61  ;;  %vm1061_vm7 = vweird.f32 %v1013_v61  ;;  %vm1291_vm10 = vcmask 195584  }
 0x438   : > { %v1045_v5 = vmul.f32 %v1653_v57, %v1044_v1  ;;  %1560 = vmatmul.msk.f32.vlgmr.msrb.gmra.mxu2 %vm873_vm6, %v1070_v4  ;;  %v1068_v23 = vor.u32 1.1754944e-38, %v1067_v40 }
 0x439   : > { %v1031_v45 = vmul.f32 %v1655_v58, %v1030_v39  ;;  %vm1066_vm9 = vcmp.eq.f32.partialorder %v1065_v21, 8.507059e+37 }
 0x43a   : > { %v1046_v47 = vadd.f32 %v1653_v57, %v1045_v5 }
 0x43b   : > { %v1657_v9 = vpop.eup %1656  ;;  %v1032_v11 = vadd.f32 %v1655_v58, %v1031_v45 }
 0x43c   : > { %v1050_v12 = vsel %vm1049_vm14, %v1653_v57, %v1046_v47  ;;  %v1057_v13 = vmul.f32 %v1657_v9, %v1013_v61  ;;  %vm1062_vm4 = vweird.f32 %v1657_v9 }
 0x43d   : > { %v1055_v14 = vsel %vm1052_vm1, %v1054_v10, %v1050_v12  ;;  %v1036_v15 = vsel %vm1035_vm2, %v1655_v58, %v1032_v11  ;;  %vm1063_vm8 = vmor %vm1061_vm7, %vm1062_vm4 }
 0x43e   : > { %v1058_v16 = vsub.f32 1.0, %v1057_v13  ;;  %v1041_v18 = vsel %vm1038_vm3, %v1040_v17, %v1036_v15  ;;  %v1072_v35 = vmul.f32 %v2033_v19, %v1055_v14 }
 0x43f   : > { %v1071_v36 = vmul.f32 %v2035_v20, %v1041_v18 }
 0x440   : > { %v1059_v50 = vmul.f32 %v1657_v9, %v1058_v16  ;;  %1562 = vmatmul.msk.f32.vlgmr.msra.gmra.mxu2 %vm873_vm6, %v1072_v35 }
 0x441   : > { %1561 = vmatmul.msk.f32.vlgmr.msrb.gmra.mxu3 %vm873_vm6, %v1071_v36 }
 0x442   : > { %v1060_v22 = vadd.f32 %v1657_v9, %v1059_v50 }
 0x444   : > { %v1064_v24 = vsel %vm1063_vm8, %v1657_v9, %v1060_v22 }
 0x445   : > { %v1069_v25 = vsel %vm1066_vm9, %v1068_v23, %v1064_v24 }
 0x446   : > { %v1073_v26 = vmul.f32 %v2041_v27, %v1069_v25 }
 0x448   : > { %1563 = vmatmul.msk.f32.vlgmr.msrb.gmra.mxu1 %vm873_vm6, %v1073_v26 }
 0x4bb   : > { %v1094_v19 = vpop.f32.mrf.mxu2 }
 0x4bc   : > { %v1168_v20 = vrot.slane %v1094_v19, 4 }
 0x4c3   : > { %v1140_v29 = vpop.f32.mrf.mxu2 }
 0x4c4   : > { %v1117_v28 = vpop.f32.mrf.mxu3  ;;  %v1166_v31 = vrot.slane %v1140_v29, 4  ;;  %v1169_v32 = vsel %vm519_vm5, %v1140_v29, %v1168_v20 }
 0x4c5   : > { %v1180_v30 = vrot.slane %v1117_v28, 4  ;;  %v1163_v33 = vpop.f32.mrf.mxu1  ;;  %v1177_v34 = vperm.slane %v1169_v32, %v1912_v44  ;;  %v1294_v32 = vld [vmem:[%s2271_s5 + $0x8] sm:$0xff] }
 0x4c6   : > { %v1178_v37 = vrot.slane %v1163_v33, 4  ;;  %v1167_v38 = vsel %vm519_vm5, %v1166_v31, %v1094_v19  ;;  %v1296_v31 = vld [vmem:[%s2271_s5 + $0x18] sm:$0xff] }
 0x4c7   : > { %v1181_v41 = vsel %vm519_vm5, %v1163_v33, %v1180_v30  ;;  %v1173_v27 = vperm.slane %v1167_v38, %v1912_v44  ;;  %v1204_v42 = vrot.slane %v1177_v34, 4  ;;  %1316 = vmatpush.msrb.mxu2 %v1296_v31  ;;  %v1293_v33 = vld [vmem:[%s2271_s5] sm:$0xff] }
 0x4c8   : > { %v1179_v43 = vsel %vm519_vm5, %v1178_v37, %v1117_v28  ;;  %v1189_v46 = vperm.slane %v1181_v41, %v1912_v44 }
 0x4c9   : > { %v1185_v49 = vperm.slane %v1179_v43, %v1912_v44  ;;  %v1192_v52 = vrot.slane %v1173_v27, 4  ;;  %v1633_v43 = vld [vmem:[%s2272_s6] ss:$0 sm:$0xff] }
 0x4ca   : > { %v1202_v53 = vrot.slane %v1189_v46, 4  ;;  %v1205_v54 = vsel %vm519_vm5, %v1189_v46, %v1204_v42 }
 0x4cb   : > { %v1190_v55 = vrot.slane %v1185_v49, 4  ;;  %v1213_v56 = vperm.slane %v1205_v54, %v1919_v51  ;;  %v1193_v57 = vsel %vm519_vm5, %v1185_v49, %v1192_v52 }
 0x4cc   : > { %v1203_v58 = vsel %vm519_vm5, %v1202_v53, %v1177_v34  ;;  %v1201_v60 = vperm.slane %v1193_v57, %v1919_v51 }
 0x4cd   : > { %v1191_v59 = vsel %vm519_vm5, %v1190_v55, %v1173_v27  ;;  %v1209_v61 = vperm.slane %v1203_v58, %v1919_v51  ;;  %v1220_v62 = vrot.slane %v1213_v56, 4 }
 0x4ce   : > { %v1197_v63 = vperm.slane %v1191_v59, %v1919_v51  ;;  %v1216_v1 = vrot.slane %v1201_v60, 4  ;;  %v1360_v59 = vld [vmem:[%s2275_s9 + $0x18] sm:$0xff]  ;;  %v1358_v60 = vld [vmem:[%s2275_s9 + $0x8] sm:$0xff] }
 0x4cf   : > { %v1218_v2 = vrot.slane %v1209_v61, 4  ;;  %v1221_v3 = vsel %vm519_vm5, 0.0, %v1220_v62  ;;  %v1233_v39 = vsel %vm519_vm5, %v1220_v62, %v1209_v61  ;;  %1380 = vmatpush.msra.mxu3 %v1360_v59  ;;  %v1357_v61 = vld [vmem:[%s2275_s9] sm:$0xff] }
 0x4d0   : > { %v1214_v4 = vrot.slane %v1197_v63, 4  ;;  %v1237_v5 = vperm.slane %v1233_v39, %v1912_v44  ;;  %v1238_v6 = vrot.slane %v1221_v3, 4  ;;  %v1217_v7 = vsel %vm519_vm5, 0.0, %v1216_v1 }
 0x4d1   : > { %v1219_v45 = vsel %vm519_vm5, 0.0, %v1218_v2  ;;  %v1222_v48 = vsel %vm519_vm5, %v1216_v1, %v1197_v63  ;;  %v1227_v47 = vrot.slane %v1217_v7, 4  ;;  %v1634_v7 = vld [vmem:[%s2273_s7] ss:$0 sm:$0xff] }
 0x4d2   : > { %v1215_v9 = vsel %vm519_vm5, 0.0, %v1214_v4  ;;  %v1226_v10 = vperm.slane %v1222_v48, %v1912_v44  ;;  %v1239_v11 = vsel %vm519_vm5, %v1238_v6, %v1219_v45  ;;  %v1258_v17 = vrot.slane %v1237_v5, 4 }
 0x4d3   : > { %v1243_v12 = vperm.slane %v1239_v11, %v1912_v44  ;;  %v1228_v13 = vsel %vm519_vm5, %v1227_v47, %v1215_v9  ;;  %v1442_v11 = vld [vmem:[%s2277_s11 + $0x70] sm:$0xff] }
 0x4d4   : > { %v1246_v14 = vrot.slane %v1226_v10, 4  ;;  %v1232_v15 = vperm.slane %v1228_v13, %v1912_v44  ;;  %v1439_v13 = vld [vmem:[%s2277_s11 + $0x58] sm:$0xff] }
 0x4d5   : > { %v1259_v16 = vsel %vm519_vm5, %v1243_v12, %v1258_v17  ;;  %v1256_v18 = vrot.slane %v1243_v12, 4  ;;  %v1441_v12 = vld [vmem:[%s2277_s11 + $0x68] sm:$0xff]  ;;  %v1440_v17 = vld [vmem:[%s2277_s11 + $0x60] sm:$0xff] }
 0x4d6   : > { %v1267_v35 = vperm.slane %v1259_v16, %v1919_v51  ;;  %v1247_v40 = vsel %vm519_vm5, %v1232_v15, %v1246_v14  ;;  %v1244_v36 = vrot.slane %v1232_v15, 4  ;;  %v1636_v14 = vld [vmem:[%s2276_s10] ss:$0 sm:$0xff]  ;;  %v1438_v15 = vld [vmem:[%s2277_s11 + $0x50] sm:$0xff] }
 0x4d7   : > { %v1257_v50 = vsel %vm519_vm5, %v1256_v18, %v1237_v5  ;;  %v1255_v21 = vperm.slane %v1247_v40, %v1919_v51  ;;  %v1437_v18 = vld [vmem:[%s2277_s11 + $0x48] sm:$0xff]  ;;  %v1436_v40 = vld [vmem:[%s2277_s11 + $0x40] sm:$0xff] }
 0x4d8   : > { %v1272_v22 = vrot.slane %v1267_v35, 4  ;;  %v1263_v23 = vperm.slane %v1257_v50, %v1919_v51  ;;  %v1245_v24 = vsel %vm519_vm5, %v1244_v36, %v1226_v10  ;;  %v1443_v10 = vld [vmem:[%s2277_s11 + $0x78] sm:$0xff] }
 0x4d9   : > { %v1251_v44 = vperm.slane %v1245_v24, %v1919_v51  ;;  %v1274_v29 = vrot.slane %v1255_v21, 4  ;;  %v1295_v51 = vld [vmem:[%s2271_s5 + $0x10] sm:$0xff]  ;;  %1448 = vmatpush.msra.mxu0 %v1443_v10  ;;  %v1435_v50 = vld [vmem:[%s2277_s11 + $0x38] sm:$0xff]  ;;  %v1433_v24 = vld [vmem:[%s2277_s11 + $0x28] sm:$0xff] }
 0x4da   : > { %v1273_v25 = vsel %vm519_vm5, %v1272_v22, %v1255_v21  ;;  %v1268_v26 = vrot.slane %v1263_v23, 4  ;;  %1317 = vmatpush.msrb.mxu2 %v1295_v51  ;;  %v1434_v22 = vld [vmem:[%s2277_s11 + $0x30] sm:$0xff] }
 0x4db   : > { %1281 = vrot.lane.b32.xlu0 %v1273_v25, %s1736_s20  ;;  %v1270_v19 = vrot.slane %v1251_v44, 4  ;;  %v1275_v30 = vsel %vm519_vm5, %v1267_v35, %v1274_v29  ;;  %1449 = vmatpush.msra.mxu0 %v1442_v11 }
 0x4dc   : > { %v1269_v20 = vsel %vm519_vm5, %v1268_v26, %v1251_v44  ;;  %1318 = vmatpush.msrb.mxu2 %v1294_v32  ;;  %v1432_v44 = vld [vmem:[%s2277_s11 + $0x20] sm:$0xff]  ;;  %v1431_v26 = vld [vmem:[%s2277_s11 + $0x18] sm:$0xff] }
 0x4dd   : > { %v1271_v28 = vsel %vm519_vm5, %v1263_v23, %v1270_v19  ;;  %vm1289_vm5 = vcmask 130048   ;;  %1450 = vmatpush.msra.mxu0 %v1441_v12  ;;  %v1430_v19 = vld [vmem:[%s2277_s11 + $0x10] sm:$0xff] }
 0x4de   : > { %1277 = vrot.lane.b32.xlu2 %v1271_v28, %s1737_s21  ;;  %1319 = vmatpush.msrb.mxu2 %v1293_v33 }
 0x4df   : > { %1451 = vmatpush.msra.mxu0 %v1440_v17 }
 0x4e1   : > { %1452 = vmatpush.msra.mxu0 %v1439_v13 }
 0x4e3   : > { %1453 = vmatpush.msra.mxu0 %v1438_v15 }
 0x4e5   : > { %1454 = vmatpush.msra.mxu0 %v1437_v18 }
 0x4e6   : > { %1285 = vrot.lane.b32.xlu2 %v1275_v30, %s1738_s22  ;;  %v1428_v30 = vld [vmem:[%s2277_s11] sm:$0xff]  ;;  %s429_s22 = sand.u32 1, %s1718_s26  }
 0x4e7   : > { %1455 = vmatpush.msra.mxu0 %v1436_v40  ;;  %s1549_s23 = sshll.u32 %s429_s22, 3  ;;  %s1471_s29 = scalar_lea.sflag [#allocation3], %s429_s22 }
 0x4e8   : > { %s431_s20 = scalar_lea.vmem [#allocation2], %s1549_s23  ;;  %s1684_s23 = scalar_lea.hbm %s2279_s13, 16 }
 0x4e9   : > { %1456 = vmatpush.msra.mxu0 %v1435_v50  ;;  %s1483_s21 = sshll.u32 %s431_s20, 4  ;;  %p1686_p1 = scmp.lt.s32.totalorder %s1684_s23, %s1680_s1  ;;  %s1484_s21 = int_to_ptr.vmem [resolvable:$true] %s1483_s21 }
 0x4eb   : > { %1457 = vmatpush.msra.mxu0 %v1434_v22  ;;  %p1687_p2 = por %p1686_p1, %p1685_p0 }
 0x4ed   : > { %1458 = vmatpush.msra.mxu0 %v1433_v24  ;;  %p1688_p3 = pnand %p1687_p2, %p1683_p13 }
 0x4ef   : > { %1459 = vmatpush.msra.mxu0 %v1432_v44 }
 0x4f1   : > { %1460 = vmatpush.msra.mxu0 %v1431_v26 }
 0x4f3   : > { %1461 = vmatpush.msra.mxu0 %v1430_v19 }
 0x538   : > { %v1278_v34 = vpop.permute.xlu2 %1277 }
 0x539   : > { %v1288_v37 = vsel %vm873_vm6, %v1269_v20, %v1278_v34  ;;  %v1429_v20 = vld [vmem:[%s2277_s11 + $0x8] sm:$0xff] }
 0x53a   : > { %1462 = vmatpush.msra.mxu0 %v1429_v20 }
 0x53c   : > { %1463 = vmatpush.msra.mxu0 %v1428_v30 }
 0x540   : > { %v1286_v41 = vpop.permute.xlu2 %1285 }
 0x54d   : > { %v1282_v38 = vpop.permute.xlu0 %1281 }
 0x54e   : > { %v1290_v27 = vsel %vm1289_vm5, %v1288_v37, %v1282_v38 }
 0x54f   : > { %v1292_v42 = vsel %vm1291_vm10, %v1290_v27, %v1286_v41 }
 0x550   : > { %1564 = vmatmul.msk.f32.vlgmr.msrb.gmra.mxu2 %vm439_vm0, %v1292_v42 }
 0x5d3   : > { %v1321_v46 = vpop.f32.mrf.mxu2 }
 0x5d4   : > { %v1322_v49 = vadd.f32 %v1633_v43, %v1321_v46 }
 0x5d6   : > { %v2151_v52 = vadd.f32 %v1322_v49, %v1862_v0  ;;  %v1359_v0 = vld [vmem:[%s2275_s9 + $0x10] sm:$0xff] }
 0x5d7   : > { %1381 = vmatpush.msra.mxu3 %v1359_v0 }
 0x5d8   : > { %v1327_v53 = vsel %vm439_vm0, %v2151_v52, 0.0 }
 0x5d9   : > { %1328 = vadd.xlane.f32.xlu2 %v1327_v53  ;;  %1382 = vmatpush.msra.mxu3 %v1358_v60 }
 0x5db   : > { %1383 = vmatpush.msra.mxu3 %v1357_v61 }
 0x64c   : > { %v1329_v54 = vpop.xlane.xlu2 %1328 }
 0x64d   : > { %v1330_v55 = vmul.f32 %v1329_v54, %v1866_v8 }
 0x64f   : > { %v1331_v56 = vsub.f32 %v2151_v52, %v1330_v55 }
 0x651   : > { %v1332_v57 = vmul.f32 %v1331_v56, %v1331_v56 }
 0x653   : > { %v1333_v58 = vsel %vm439_vm0, %v1332_v57, 0.0 }
 0x654   : > { %1334 = vadd.xlane.f32.xlu0 %v1333_v58 }
 0x6c7   : > { %v1335_v62 = vpop.xlane.xlu0 %1334 }
 0x6c8   : > { %v1336_v63 = vmul.f32 %v1335_v62, %v1866_v8  ;;  %v1635_v8 = vld [vmem:[%s2274_s8] ss:$0 sm:$0xff] }
 0x6ca   : > { %v1337_v1 = vadd.f32 1e-05, %v1336_v63 }
 0x6cc   : > { %1658 = vrsqrt.f32 %v1337_v1  ;;  %vm1344_vm11 = vweird.f32 %v1337_v1 }
 0x6d2   : > { %v1659_v2 = vpop.eup %1658 }
 0x6d3   : > { %v1339_v3 = vmul.f32 %v1659_v2, %v1337_v1  ;;  %vm1345_vm6 = vweird.f32 %v1659_v2 }
 0x6d4   : > { %vm1346_vm12 = vmor %vm1344_vm11, %vm1345_vm6 }
 0x6d5   : > { %v1340_v39 = vmul.f32 %v1659_v2, %v1339_v3 }
 0x6d7   : > { %v1341_v4 = vmul.f32 0.5, %v1340_v39  ;;  %v1637_v39 = vld [vmem:[%s2278_s12] ss:$0 sm:$0xff] }
 0x6d9   : > { %v1342_v5 = vsub.f32 1.5, %v1341_v4 }
 0x6db   : > { %v1343_v6 = vmul.f32 %v1659_v2, %v1342_v5 }
 0x6dd   : > { %v1347_v45 = vsel %vm1346_vm12, %v1659_v2, %v1343_v6 }
 0x6de   : > { %v1348_v48 = vmul.f32 %v1347_v45, %v1331_v56 }
 0x6e0   : > { %v1352_v47 = vmul.f32 %v1634_v7, %v1348_v48 }
 0x6e2   : > { %v1356_v9 = vadd.f32 %v1635_v8, %v1352_v47 }
 0x6e4   : > { %1565 = vmatmul.msk.f32.vlgmr.msra.gmra.mxu3 %vm439_vm0, %v1356_v9 }
 0x767   : > { %v1385_v16 = vpop.f32.mrf.mxu3 }
 0x768   : > { %v1386_v35 = vadd.f32 %v1636_v14, %v1385_v16 }
 0x76a   : > { %v1389_v36 = vmul.f32 0.70710677, %v1386_v35  ;;  %v1388_v1 = vmul.f32 0.5, %v1386_v35 }
 0x76c   : > { %v1390_v21 = vand.u32 2147483647, %v1389_v36  ;;  %vm1423_vm2 = vcmp.ge.f32.partialorder %v1389_v36, 0.0 }
 0x76e   : > { %v1391_v23 = vmul.f32 0.3275911, %v1390_v21  ;;  %v1417_v41 = vsub.f32 0.0, %v1390_v21 }
 0x770   : > { %v1392_v25 = vadd.f32 1.0, %v1391_v23  ;;  %v1418_v46 = vmul.f32 %v1417_v41, %v1390_v21 }
 0x772   : > { %1660 = vrcp.f32 %v1392_v25  ;;  %v1404_v51 = vand.u32 2147483648, %v1392_v25  ;;  %v1402_v33 = vand.u32 2147483647, %v1392_v25  ;;  %vm1398_vm14 = vweird.f32 %v1392_v25 }
 0x773   : > { %v1419_v54 = vmul.f32 1.442695, %v1418_v46 }
 0x774   : > { %v1405_v37 = vor.u32 1.1754944e-38, %v1404_v51  ;;  %vm1403_vm1 = vcmp.eq.f32.partialorder %v1402_v33, 8.507059e+37 }
 0x775   : > { %1662 = vpow2.f32 %v1419_v54 }
 0x778   : > { %v1661_v28 = vpop.eup %1660 }
 0x779   : > { %v1394_v29 = vmul.f32 %v1661_v28, %v1392_v25  ;;  %vm1399_vm13 = vweird.f32 %v1661_v28 }
 0x77a   : > { %vm1400_vm15 = vmor %vm1398_vm14, %vm1399_vm13 }
 0x77b   : > { %v1395_v31 = vsub.f32 1.0, %v1394_v29  ;;  %v1663_v0 = vpop.eup %1662 }
 0x77d   : > { %v1396_v32 = vmul.f32 %v1661_v28, %v1395_v31 }
 0x77f   : > { %v1397_v34 = vadd.f32 %v1661_v28, %v1396_v32 }
 0x781   : > { %v1401_v38 = vsel %vm1400_vm15, %v1661_v28, %v1397_v34 }
 0x782   : > { %v1406_v27 = vsel %vm1403_vm1, %v1405_v37, %v1401_v38 }
 0x783   : > { %v1408_v42 = vmul.f32 1.0614054, %v1406_v27 }
 0x785   : > { %v1409_v43 = vadd.f32 -1.4531521, %v1408_v42 }
 0x787   : > { %v1410_v49 = vmul.f32 %v1409_v43, %v1406_v27 }
 0x789   : > { %v1411_v53 = vadd.f32 1.4214138, %v1410_v49 }
 0x78b   : > { %v1412_v55 = vmul.f32 %v1411_v53, %v1406_v27 }
 0x78d   : > { %v1413_v56 = vadd.f32 -0.28449672, %v1412_v55 }
 0x78f   : > { %v1414_v57 = vmul.f32 %v1413_v56, %v1406_v27 }
 0x791   : > { %v1415_v58 = vadd.f32 0.2548296, %v1414_v57 }
 0x793   : > { %v1416_v59 = vmul.f32 %v1415_v58, %v1406_v27 }
 0x795   : > { %v1421_v60 = vmul.f32 %v1663_v0, %v1416_v59 }
 0x797   : > { %v1422_v61 = vsub.f32 1.0, %v1421_v60 }
 0x799   : > { %v1424_v62 = vsub.f32 0.0, %v1422_v61 }
 0x79b   : > { %v1425_v63 = vsel %vm1423_vm2, %v1422_v61, %v1424_v62 }
 0x79c   : > { %v1426_v2 = vadd.f32 1.0, %v1425_v63 }
 0x79e   : > { %v1427_v3 = vmul.f32 %v1426_v2, %v1388_v1 }
 0x7a0   : > { %1464 = vmatmul.f32.vlgmr.msra.gmra.mxu0 %v1427_v3 }
 0x81d   : > { %v1465_v4 = vpop.f32.mrf.mxu0 }
 0x81e   : > { %v1466_v5 = vadd.f32 %v1637_v39, %v1465_v4 }
 0x820   : > { %v1468_v6 = vadd.f32 %v1466_v5, %v2151_v52 }
 0x822   : > { %1469 = vst.msk [vmem:[%s431_s20] sm:$0xff] %vm439_vm0, %v1468_v6 }
 0x823   : > { %1691 = shalt.err (!%p1688_p3)
}
 0x824   : > { %1570 = dma.vmem_to_hbm [thread:$0]  (%p1847_p5), %s1484_s21, 128, %s1486_s2, %s1471_s29  }
 0x825 PF: > { %p1576_p4 = scmp.ge.s32.totalorder %s1726_s28, 2  ;;  %s1497_s22 = sand.u32 1, %s1714_s25  }
 0x826   : > { %s1498_s16 = scalar_lea.sflag [#allocation3], %s1497_s22 }
 0x827   : > { %p1573_p7 = pnand %p1576_p4, %p1851_p6 }
 0x829   : > { %p1574_p8 = pneg %p1573_p7 }
 0x82b   : > { %1709 = dma.done.wait (%p1574_p8), %s1498_s16, 128  }
 0x82c   : > { %1711 = vsyncadd (%p1574_p8), %s1498_s16, 4294967168  ;;  %p23_p9 = scmp.ge.s32.totalorder %s1834_s14, 4   ;;  %s2290_s25 = smov %s1718_s26 }
 0x82d   : > { %s2291_s26 = smov %s1722_s27  ;;  %s2292_s27 = smov %s1845_s17 }
 0x82e   : > { %s2293_s28 = smov %s1834_s14  ;;  %25 = sbr.rel (!%p23_p9) target bundleno = 8 (0x8), region = 107 }
 0x833   :  { %1504 = vsyncpa [#allocation3], 1 }
 0x834   :  { %1506 = vsyncpa [#allocation3 + $0x1], 1 }

// kernel: tpu_custom_call.1
= control target key start
LH: loop header
LB: loop body
LE: loop exit
PB: predicated region body
PF: predicated region fallthrough
CT: control target
= control target key end

     0   :  { %s1608_s0 = inlined_call_operand.vmem [shape: f32[2,8,32], index: 0, kind: input, shape index: {}]   ;;  %s1609_s1 = inlined_call_operand.vmem [shape: f32[1,32], index: 1, kind: input, shape index: {}]   ;;  %s1610_s2 = inlined_call_operand.vmem [shape: f32[1,32], index: 2, kind: input, shape index: {}]   ;;  %s1611_s3 = inlined_call_operand.vmem [shape: f32[32,96], index: 3, kind: input, shape index: {}]   ;;  %s1612_s4 = inlined_call_operand.vmem [shape: f32[1,96], index: 4, kind: input, shape index: {}]   ;;  %s1613_s5 = inlined_call_operand.vmem [shape: f32[32,32], index: 5, kind: input, shape index: {}]   ;;  %s1614_s6 = inlined_call_operand.vmem [shape: f32[1,32], index: 6, kind: input, shape index: {}]   ;;  %s1615_s7 = inlined_call_operand.vmem [shape: f32[1,32], index: 7, kind: input, shape index: {}]   ;;  %s1616_s8 = inlined_call_operand.vmem [shape: f32[1,32], index: 8, kind: input, shape index: {}]   ;;  %s1617_s9 = inlined_call_operand.vmem [shape: f32[32,128], index: 9, kind: input, shape index: {}]   ;;  %s1618_s10 = inlined_call_operand.vmem [shape: f32[1,128], index: 10, kind: input, shape index: {}]   ;;  %s1619_s11 = inlined_call_operand.vmem [shape: f32[128,32], index: 11, kind: input, shape index: {}]   ;;  %s1620_s12 = inlined_call_operand.vmem [shape: f32[1,32], index: 12, kind: input, shape index: {}]   ;;  %s1621_s13 = inlined_call_operand.hbm [shape: f32[2,8,32], index: 13, kind: output, shape index: {}]  }
   0x1   :  { %1622 = sst [smem:[#allocation5_spill]] %s1608_s0 }
   0x2   :  { %1623 = sst [smem:[#allocation6_spill]] %s1609_s1 }
   0x3   :  { %1624 = sst [smem:[#allocation7_spill]] %s1610_s2 }
   0x4   :  { %1625 = sst [smem:[#allocation8_spill]] %s1611_s3 }
   0x5   :  { %18 = vsyncpa [#allocation3], 0 }
   0x6   :  { %20 = vsyncpa [#allocation3 + $0x1], 0  ;;  %s1344_s25 = smov 0   ;;  %s1346_s26 = smov 0  }
   0x7   :  { %s1348_s27 = smov 0   ;;  %s1350_s28 = smov 0  }
   0x8 LB: > { %s1365_s29 = sadd.s32 4294967295, %s1263_s28   ;;  %s1089_s30 = sadd.s32 4294967294, %s1263_s28   ;;  %s1263_s28 = sphi %s1350_s28, %s1637_s28   ;;  %s1259_s27 = sphi %s1348_s27, %s1636_s27   ;;  %s1255_s26 = sphi %s1346_s26, %s1635_s26   ;;  %s1251_s25 = sphi %s1344_s25, %s1634_s25  }
   0x9   : > { %s1369_s14 = sadd.s32 1, %s1263_s28   ;;  %s311_s15 = sadd.s32 1, %s1259_s27 }
   0xa   : > { %s308_s16 = ssub.s32 %s1263_s28, %s1369_s14  ;;  %p321_p0 = scmp.ne.s32.totalorder %s1259_s27, %s1255_s26 }
   0xb   : > { %p309_p1 = scmp.eq.s32.totalorder %s308_s16, 0  ;;  %p322_p2 = scmp.eq.s32.totalorder %s1365_s29, 1 }
   0xc   : > { %p327_p3 = scmp.ne.s32.totalorder %s1255_s26, %s1251_s25  ;;  %p328_p4 = scmp.eq.s32.totalorder %s1089_s30, 1 }
   0xd   : > { %s1380_s17 = scalar_select %p309_p1, %s1259_s27, %s311_s15  }
   0xe   : > { %p1382_p5 = por %p322_p2, %p321_p0  ;;  %p1386_p6 = por %p328_p4, %p327_p3 }
   0xf   : > { %p1092_p7 = scmp.ge.s32.totalorder %s1263_s28, 1  ;;  %p389_p8 = scmp.lt.s32.totalorder %s1263_s28, 3 }
  0x11   : > { %p390_p9 = pnand %p1092_p7, %p389_p8 }
  0x12   : > { %p432_p10 = scmp.lt.s32.totalorder (!%p390_p9), %s1365_s29, 1  ;;  %s1628_s0 = sld [smem:[#allocation5_spill]] (!%p390_p9) }
  0x13   : > { %393 = sbr.rel (%p390_p9) target bundleno = 2045 (0x7fd), region = 72  ;;  %s1629_s3 = sld [smem:[#allocation8_spill]] (!%p390_p9) }
  0x14   : > { %s1630_s1 = sld [smem:[#allocation6_spill]] (!%p390_p9)  ;;  %s1266_s23 = smov (!%p390_p9), 104  }
  0x15   : > { %s1631_s2 = sld [smem:[#allocation7_spill]] (!%p390_p9)  ;;  %s1268_s30 = smov (!%p390_p9), 96  }
  0x16   : > { %s1269_s15 = smov (!%p390_p9), 112   ;;  %s1270_s16 = smov (!%p390_p9), 64  }
  0x17   : > { %s1273_s22 = smov (!%p390_p9), 8  }
  0x18   : > { %s433_s20 = scalar_select %p432_p10, %s1365_s29, 1  ;;  %vm439_vm0 = vcmask 261120   ;;  %v1265_v2 = vmov 32.0   ;;  %v1169_v33 = vld [vmem:[%s1612_s4] ss:$0 sm:$0xff]  ;;  %vm517_vm5 = vcmask 64512  }
  0x19   : > { %1175 = vrcp.f32 %v1265_v2  ;;  %v480_v14 = vld [vmem:[%s1629_s3 + $0x18] sm:$0xff]  ;;  %v479_v15 = vld [vmem:[%s1629_s3 + $0x10] sm:$0xff]  ;;  %v478_v16 = vld [vmem:[%s1629_s3 + $0x8] sm:$0xff] }
  0x1a   : > { %s1094_s21 = sshll.u32 %s433_s20, 3  ;;  %500 = vmatpush.msra.mxu1 %v480_v14  ;;  %v477_v17 = vld [vmem:[%s1629_s3] sm:$0xff]  ;;  %s1271_s20 = smov 24  }
  0x1b   : > { %s435_s24 = scalar_lea.vmem %s1628_s0, %s1094_s21  ;;  %v1167_v27 = vld [vmem:[%s1630_s1] ss:$0 sm:$0xff]  ;;  %s1272_s21 = smov 16  }
  0x1c   : > { %v1397_v0 = vld [vmem:[%s435_s24] sm:$0xff]  ;;  %501 = vmatpush.msra.mxu1 %v479_v15  ;;  %s1267_s24 = smov 120   ;;  %s1111_s0 = sshll.u32 %s1365_s29, 3 }
  0x1d   : > { %v440_v1 = vsel %vm439_vm0, %v1397_v0, 0.0  ;;  %v1168_v30 = vld [vmem:[%s1631_s2] ss:$0 sm:$0xff] }
  0x1e   : > { %441 = vadd.xlane.f32.xlu0 %v440_v1  ;;  %502 = vmatpush.msra.mxu1 %v478_v16 }
  0x1f   : > { %v1176_v3 = vpop.eup %1175 }
  0x20   : > { %v444_v4 = vmul.f32 32.0, %v1176_v3  ;;  %vm448_vm1 = vweird.f32 %v1176_v3  ;;  %503 = vmatpush.msra.mxu1 %v477_v17 }
  0x22   : > { %v445_v5 = vsub.f32 1.0, %v444_v4 }
  0x24   : > { %v446_v6 = vmul.f32 %v1176_v3, %v445_v5 }
  0x26   : > { %v447_v7 = vadd.f32 %v1176_v3, %v446_v6 }
  0x28   : > { %v1401_v8 = vsel %vm448_vm1, %v1176_v3, %v447_v7 }
  0x91   : > { %v442_v9 = vpop.xlane.xlu0 %441 }
  0x92   : > { %v450_v10 = vmul.f32 %v1401_v8, %v442_v9 }
  0x94   : > { %v451_v11 = vsub.f32 %v1397_v0, %v450_v10 }
  0x96   : > { %v452_v12 = vmul.f32 %v451_v11, %v451_v11 }
  0x98   : > { %v453_v13 = vsel %vm439_vm0, %v452_v12, 0.0 }
  0x99   : > { %454 = vadd.xlane.f32.xlu0 %v453_v13 }
 0x10c   : > { %v455_v18 = vpop.xlane.xlu0 %454 }
 0x10d   : > { %v456_v19 = vmul.f32 %v455_v18, %v1401_v8 }
 0x10f   : > { %v457_v20 = vadd.f32 1e-05, %v456_v19 }
 0x111   : > { %1177 = vrsqrt.f32 %v457_v20  ;;  %vm464_vm3 = vweird.f32 %v457_v20 }
 0x117   : > { %v1178_v21 = vpop.eup %1177 }
 0x118   : > { %v459_v22 = vmul.f32 %v1178_v21, %v457_v20  ;;  %vm465_vm2 = vweird.f32 %v1178_v21 }
 0x119   : > { %vm466_vm4 = vmor %vm464_vm3, %vm465_vm2 }
 0x11a   : > { %v460_v23 = vmul.f32 %v1178_v21, %v459_v22 }
 0x11c   : > { %v461_v24 = vmul.f32 0.5, %v460_v23 }
 0x11e   : > { %v462_v25 = vsub.f32 1.5, %v461_v24 }
 0x120   : > { %v463_v26 = vmul.f32 %v1178_v21, %v462_v25 }
 0x122   : > { %v467_v28 = vsel %vm466_vm4, %v1178_v21, %v463_v26 }
 0x123   : > { %v468_v29 = vmul.f32 %v467_v28, %v451_v11 }
 0x125   : > { %v472_v31 = vmul.f32 %v1167_v27, %v468_v29 }
 0x127   : > { %v476_v32 = vadd.f32 %v1168_v30, %v472_v31 }
 0x129   : > { %1095 = vmatmul.msk.f32.vlgmr.msra.gmra.mxu1 %vm439_vm0, %v476_v32 }
 0x1a6   : > { %v505_v34 = vpop.f32.mrf.mxu1 }
 0x1a7   : > { %v1429_v35 = vadd.f32 %v1169_v33, %v505_v34 }
 0x1a9   : > { %513 = vrot.lane.b32.xlu2 %v1429_v35, %s1266_s23  ;;  %509 = vrot.lane.b32.xlu1 %v1429_v35, %s1267_s24  ;;  %s1025_s24 = scalar_lea.hbm %s1621_s13, %s1111_s0 }
 0x1aa   : > { %s1029_s2 = sshll.u32 %s1025_s24, 4  ;;  %s1030_s2 = int_to_ptr.hbm [resolvable:$true] %s1029_s2 }
 0x1ab   : > { %s1215_s3 = sshra.s32 %s1030_s2, 4  ;;  %s1216_s3 = int_to_ptr.hbm [resolvable:$true] %s1215_s3 }
 0x1ac   : > { %p1222_p0 = scmp.lt.s32.totalorder %s1216_s3, %s1621_s13 }
 0x1b1   : > { %515 = vrot.lane.b32.xlu2 %v1429_v35, %s1268_s30  ;;  %511 = vrot.lane.b32.xlu1 %v1429_v35, %s1269_s15 }
 0x203   : > { %v514_v36 = vpop.permute.xlu2 %513 }
 0x204   : > { %594 = vrot.lane.b32.xlu2 %v514_v36, %s1268_s30 }
 0x20b   : > { %v516_v37 = vpop.permute.xlu2 %515 }
 0x20c   : > { %1096 = vmatpush.xpose.msk.msrb.mxu1 %vm517_vm5, %v516_v37 }
 0x20f   : > { %1097 = vmatmul.msk.f32.vlgmr.msrb.gmra.mxu1 %vm517_vm5, %v1429_v35 }
 0x21b   : > { %v510_v38 = vpop.permute.xlu1 %509 }
 0x21c   : > { %542 = vrot.lane.b32.xlu0 %v510_v38, %s1268_s30 }
 0x223   : > { %v512_v39 = vpop.permute.xlu1 %511 }
 0x224   : > { %568 = vrot.lane.b32.xlu1 %v512_v39, %s1268_s30  ;;  %v1162_v9 = vpack.i.bf16 %v512_v39, %v510_v38 }
 0x25e   : > { %v595_v40 = vpop.permute.xlu2 %594 }
 0x25f   : > { %1102 = vmatpush.xpose.msk.msra.mxu1 %vm517_vm5, %v595_v40 }
 0x262   : > { %1103 = vmatmul.msk.f32.vlgmr.msra.gmra.mxu1 %vm517_vm5, %v514_v36 }
 0x28c   : > { %v539_v41 = vpop.f32.mrf.mxu1 }
 0x28d   : > { %v620_v42 = vsel %vm517_vm5, %v539_v41, -inf }
 0x28e   : > { %v543_v43 = vpop.permute.xlu0 %542  ;;  %621 = vmax.xlane.f32.xlu1 %v620_v42 }
 0x28f   : > { %1098 = vmatpush.xpose.msk.msra.mxu2 %vm517_vm5, %v543_v43 }
 0x292   : > { %1099 = vmatmul.msk.f32.vlgmr.msra.gmra.mxu2 %vm517_vm5, %v510_v38 }
 0x296   : > { %v569_v44 = vpop.permute.xlu1 %568 }
 0x297   : > { %1100 = vmatpush.xpose.msk.msra.mxu3 %vm517_vm5, %v569_v44 }
 0x29a   : > { %1101 = vmatmul.msk.f32.vlgmr.msra.gmra.mxu3 %vm517_vm5, %v512_v39 }
 0x2df   : > { %v617_v52 = vpop.f32.mrf.mxu1 }
 0x2e0   : > { %v629_v54 = vsel %vm517_vm5, %v617_v52, -inf }
 0x301   : > { %v622_v45 = vpop.xlane.xlu1 %621 }
 0x302   : > { %v632_v46 = vsub.f32 %v539_v41, %v622_v45 }
 0x304   : > { %v636_v47 = vmul.f32 1.442695, %v632_v46 }
 0x306   : > { %1179 = vpow2.f32 %v636_v47 }
 0x30c   : > { %v1180_v48 = vpop.eup %1179 }
 0x30d   : > { %v644_v49 = vsel %vm517_vm5, %v1180_v48, 0.0 }
 0x30e   : > { %645 = vadd.xlane.f32.xlu1 %v644_v49  ;;  %v982_v49 = vld [vmem:[%s1619_s11 + $0x50] sm:$0xff] }
 0x315   : > { %v565_v50 = vpop.f32.mrf.mxu2 }
 0x316   : > { %v623_v51 = vsel %vm517_vm5, %v565_v50, -inf }
 0x317   : > { %624 = vmax.xlane.f32.xlu2 %v623_v51 }
 0x31d   : > { %v591_v53 = vpop.f32.mrf.mxu3 }
 0x31e   : > { %v626_v55 = vsel %vm517_vm5, %v591_v53, -inf }
 0x31f   : > { %630 = vmax.xlane.f32.xlu2 %v629_v54  ;;  %627 = vmax.xlane.f32.xlu0 %v626_v55 }
 0x381   : > { %v646_v10 = vpop.xlane.xlu1 %645 }
 0x382   : > { %v667_v16 = vand.u32 2147483648, %v646_v10  ;;  %vm661_vm7 = vweird.f32 %v646_v10  ;;  %v665_v17 = vand.u32 2147483647, %v646_v10 }
 0x384   : > { %v668_v20 = vor.u32 1.1754944e-38, %v667_v16  ;;  %vm666_vm9 = vcmp.eq.f32.partialorder %v665_v17, 8.507059e+37  ;;  %v1170_v16 = vld [vmem:[%s1614_s6] ss:$0 sm:$0xff] }
 0x38a   : > { %v625_v56 = vpop.xlane.xlu2 %624 }
 0x38b   : > { %v633_v57 = vsub.f32 %v565_v50, %v625_v56 }
 0x38d   : > { %v638_v58 = vmul.f32 1.442695, %v633_v57 }
 0x38f   : > { %1181 = vpow2.f32 %v638_v58 }
 0x392   : > { %v631_v59 = vpop.xlane.xlu2 %630  ;;  %v628_v60 = vpop.xlane.xlu0 %627 }
 0x393   : > { %v635_v61 = vsub.f32 %v617_v52, %v631_v59  ;;  %v634_v62 = vsub.f32 %v591_v53, %v628_v60 }
 0x395   : > { %v1449_v63 = vpop.eup %1181  ;;  %v642_v1 = vmul.f32 1.442695, %v635_v61  ;;  %v640_v2 = vmul.f32 1.442695, %v634_v62 }
 0x396   : > { %v647_v3 = vsel %vm517_vm5, %v1449_v63, 0.0 }
 0x397   : > { %1183 = vpow2.f32 %v642_v1  ;;  %648 = vadd.xlane.f32.xlu2 %v647_v3 }
 0x398   : > { %1185 = vpow2.f32 %v640_v2 }
 0x399   : > { %1187 = vrcp.f32 %v646_v10 }
 0x39d   : > { %v1453_v4 = vpop.eup %1183 }
 0x39e   : > { %v1455_v5 = vpop.eup %1185  ;;  %v653_v6 = vsel %vm517_vm5, %v1453_v4, 0.0 }
 0x39f   : > { %654 = vadd.xlane.f32.xlu0 %v653_v6  ;;  %v650_v7 = vsel %vm517_vm5, %v1455_v5, 0.0  ;;  %v1188_v11 = vpop.eup %1187 }
 0x3a0   : > { %651 = vadd.xlane.f32.xlu1 %v650_v7  ;;  %v657_v12 = vmul.f32 %v1188_v11, %v646_v10  ;;  %vm662_vm6 = vweird.f32 %v1188_v11  ;;  %v838_v7 = vld [vmem:[%s1613_s5 + $0x8] sm:$0xff] }
 0x3a1   : > { %vm663_vm8 = vmor %vm661_vm7, %vm662_vm6 }
 0x3a2   : > { %v658_v13 = vsub.f32 1.0, %v657_v12 }
 0x3a4   : > { %v659_v14 = vmul.f32 %v1188_v11, %v658_v13 }
 0x3a6   : > { %v660_v15 = vadd.f32 %v1188_v11, %v659_v14 }
 0x3a8   : > { %v664_v19 = vsel %vm663_vm8, %v1188_v11, %v660_v15  ;;  %vm833_vm8 = vcmask 130048  }
 0x3a9   : > { %v669_v21 = vsel %vm666_vm9, %v668_v20, %v664_v19  ;;  %vm835_vm9 = vcmask 195584  }
 0x3aa   : > { %v712_v24 = vmul.f32 %v1180_v48, %v669_v21 }
 0x3af   : > { %716 = vrot.lane.b32.xlu2 %v1429_v35, %s1270_s16 }
 0x3b3   : > { %794 = vrot.lane.b32.xlu0 %v514_v36, %s1270_s16 }
 0x3b9   : > { %1163 = vrot.lane.b32.xlu1 %v1162_v9, %s1270_s16  ;;  %v837_v9 = vld [vmem:[%s1613_s5] sm:$0xff]  ;;  %s429_s16 = sand.u32 1, %s1255_s26  }
 0x3ba   : > { %s1015_s29 = scalar_lea.sflag [#allocation3], %s429_s16 }
 0x40a   : > { %v649_v18 = vpop.xlane.xlu2 %648 }
 0x40b   : > { %1189 = vrcp.f32 %v649_v18  ;;  %vm675_vm1 = vweird.f32 %v649_v18  ;;  %v681_v46 = vand.u32 2147483648, %v649_v18  ;;  %v679_v50 = vand.u32 2147483647, %v649_v18 }
 0x40d   : > { %v682_v55 = vor.u32 1.1754944e-38, %v681_v46  ;;  %vm680_vm6 = vcmp.eq.f32.partialorder %v679_v50, 8.507059e+37  ;;  %v984_v46 = vld [vmem:[%s1619_s11 + $0x60] sm:$0xff] }
 0x411   : > { %v1190_v26 = vpop.eup %1189 }
 0x412   : > { %v717_v22 = vpop.permute.xlu2 %716  ;;  %v655_v23 = vpop.xlane.xlu0 %654  ;;  %v671_v27 = vmul.f32 %v1190_v26, %v649_v18  ;;  %vm676_vm13 = vweird.f32 %v1190_v26 }
 0x413   : > { %1191 = vrcp.f32 %v655_v23  ;;  %v652_v25 = vpop.xlane.xlu1 %651  ;;  %737 = vmatpush.msrb.mxu2 %v717_v22  ;;  %v709_v34 = vand.u32 2147483648, %v655_v23  ;;  %v707_v37 = vand.u32 2147483647, %v655_v23  ;;  %vm703_vm11 = vweird.f32 %v655_v23  ;;  %vm1464_vm2 = vmor %vm675_vm1, %vm676_vm13 }
 0x414   : > { %1193 = vrcp.f32 %v652_v25  ;;  %1104 = vmatmul.msk.f32.vlgmr.msrb.gmra.mxu2 %vm517_vm5, %v712_v24  ;;  %v672_v31 = vsub.f32 1.0, %v671_v27  ;;  %v695_v47 = vand.u32 2147483648, %v652_v25  ;;  %vm689_vm3 = vweird.f32 %v652_v25  ;;  %v902_v27 = vld [vmem:[%s1617_s9 + $0x8] sm:$0xff] }
 0x415   : > { %v710_v41 = vor.u32 1.1754944e-38, %v709_v34  ;;  %vm708_vm14 = vcmp.eq.f32.partialorder %v707_v37, 8.507059e+37  ;;  %v693_v51 = vand.u32 2147483647, %v652_v25 }
 0x416   : > { %v673_v38 = vmul.f32 %v1190_v26, %v672_v31  ;;  %v696_v56 = vor.u32 1.1754944e-38, %v695_v47  ;;  %v983_v47 = vld [vmem:[%s1619_s11 + $0x58] sm:$0xff] }
 0x417   : > { %vm694_vm7 = vcmp.eq.f32.partialorder %v693_v51, 8.507059e+37  ;;  %v981_v51 = vld [vmem:[%s1619_s11 + $0x48] sm:$0xff] }
 0x418   : > { %v674_v43 = vadd.f32 %v1190_v26, %v673_v38  ;;  %v1171_v38 = vld [vmem:[%s1615_s7] ss:$0 sm:$0xff] }
 0x419   : > { %v1192_v28 = vpop.eup %1191 }
 0x41a   : > { %v1194_v29 = vpop.eup %1193  ;;  %v699_v30 = vmul.f32 %v1192_v28, %v655_v23  ;;  %vm704_vm10 = vweird.f32 %v1192_v28  ;;  %v678_v54 = vsel %vm1464_vm2, %v1190_v26, %v674_v43  ;;  %v904_v26 = vld [vmem:[%s1617_s9 + $0x18] sm:$0xff] }
 0x41b   : > { %v685_v32 = vmul.f32 %v1194_v29, %v652_v25  ;;  %vm705_vm12 = vmor %vm703_vm11, %vm704_vm10  ;;  %vm690_vm15 = vweird.f32 %v1194_v29  ;;  %v683_v58 = vsel %vm680_vm6, %v682_v55, %v678_v54  ;;  %v987_v43 = vld [vmem:[%s1619_s11 + $0x78] sm:$0xff] }
 0x41c   : > { %v700_v33 = vsub.f32 1.0, %v699_v30  ;;  %vm691_vm4 = vmor %vm689_vm3, %vm690_vm15  ;;  %v713_v62 = vmul.f32 %v1449_v63, %v683_v58  ;;  %v840_v63 = vld [vmem:[%s1613_s5 + $0x18] sm:$0xff]  ;;  %992 = vmatpush.msra.mxu0 %v987_v43 }
 0x41d   : > { %v686_v35 = vsub.f32 1.0, %v685_v32  ;;  %v979_v55 = vld [vmem:[%s1619_s11 + $0x38] sm:$0xff] }
 0x41e   : > { %v701_v36 = vmul.f32 %v1192_v28, %v700_v33 }
 0x41f   : > { %v687_v39 = vmul.f32 %v1194_v29, %v686_v35 }
 0x420   : > { %v702_v40 = vadd.f32 %v1192_v28, %v701_v36 }
 0x421   : > { %v688_v45 = vadd.f32 %v1194_v29, %v687_v39 }
 0x422   : > { %v706_v42 = vsel %vm705_vm12, %v1192_v28, %v702_v40  ;;  %v901_v28 = vld [vmem:[%s1617_s9] sm:$0xff] }
 0x423   : > { %v711_v44 = vsel %vm708_vm14, %v710_v41, %v706_v42  ;;  %v692_v53 = vsel %vm691_vm4, %v1194_v29, %v688_v45  ;;  %v985_v45 = vld [vmem:[%s1619_s11 + $0x68] sm:$0xff] }
 0x424   : > { %v715_v48 = vmul.f32 %v1453_v4, %v711_v44  ;;  %v697_v57 = vsel %vm694_vm7, %v696_v56, %v692_v53  ;;  %v986_v44 = vld [vmem:[%s1619_s11 + $0x70] sm:$0xff]  ;;  %v980_v53 = vld [vmem:[%s1619_s11 + $0x40] sm:$0xff] }
 0x425   : > { %v795_v52 = vpop.permute.xlu0 %794  ;;  %v714_v1 = vmul.f32 %v1455_v5, %v697_v57  ;;  %v839_v5 = vld [vmem:[%s1613_s5 + $0x10] sm:$0xff]  ;;  %993 = vmatpush.msra.mxu0 %v986_v44 }
 0x426   : > { %815 = vmatpush.msrb.mxu1 %v795_v52  ;;  %v978_v57 = vld [vmem:[%s1619_s11 + $0x30] sm:$0xff] }
 0x427   : > { %1107 = vmatmul.msk.f32.vlgmr.msrb.gmra.mxu1 %vm517_vm5, %v715_v48  ;;  %994 = vmatpush.msra.mxu0 %v985_v45  ;;  %v1173_v48 = vld [vmem:[%s1618_s10] ss:$0 sm:$0xff] }
 0x429   : > { %995 = vmatpush.msra.mxu0 %v984_v46 }
 0x42b   : > { %v1164_v59 = vpop.permute.xlu1 %1163  ;;  %996 = vmatpush.msra.mxu0 %v983_v47 }
 0x42c   : > { %v1166_v60 = vunpack.i.h.bf16 %v1164_v59  ;;  %v1165_v61 = vunpack.i.l.bf16 %v1164_v59  ;;  %v977_v59 = vld [vmem:[%s1619_s11 + $0x28] sm:$0xff] }
 0x42d   : > { %997 = vmatpush.msra.mxu0 %v982_v49 }
 0x42e   : > { %763 = vmatpush.msrb.mxu3 %v1165_v61  ;;  %789 = vmatpush.msra.mxu2 %v1166_v60  ;;  %v976_v61 = vld [vmem:[%s1619_s11 + $0x20] sm:$0xff] }
 0x42f   : > { %1105 = vmatmul.msk.f32.vlgmr.msrb.gmra.mxu3 %vm517_vm5, %v713_v62  ;;  %1106 = vmatmul.msk.f32.vlgmr.msra.gmra.mxu2 %vm517_vm5, %v714_v1  ;;  %v975_v62 = vld [vmem:[%s1619_s11 + $0x18] sm:$0xff]  ;;  %v974_v1 = vld [vmem:[%s1619_s11 + $0x10] sm:$0xff] }
 0x430   : > { %860 = vmatpush.msrb.mxu2 %v840_v63  ;;  %924 = vmatpush.msra.mxu3 %v904_v26 }
 0x431   : > { %998 = vmatpush.msra.mxu0 %v981_v51 }
 0x432   : > { %861 = vmatpush.msrb.mxu2 %v839_v5 }
 0x433   : > { %999 = vmatpush.msra.mxu0 %v980_v53 }
 0x434   : > { %862 = vmatpush.msrb.mxu2 %v838_v7 }
 0x435   : > { %1000 = vmatpush.msra.mxu0 %v979_v55 }
 0x436   : > { %863 = vmatpush.msrb.mxu2 %v837_v9 }
 0x437   : > { %1001 = vmatpush.msra.mxu0 %v978_v57 }
 0x439   : > { %1002 = vmatpush.msra.mxu0 %v977_v59 }
 0x43b   : > { %1003 = vmatpush.msra.mxu0 %v976_v61 }
 0x43d   : > { %1004 = vmatpush.msra.mxu0 %v975_v62 }
 0x43f   : > { %1005 = vmatpush.msra.mxu0 %v974_v1 }
 0x497   : > { %v739_v3 = vpop.f32.mrf.mxu2 }
 0x4a4   : > { %v817_v2 = vpop.f32.mrf.mxu1 }
 0x4a5   : > { %829 = vrot.lane.b32.xlu1 %v817_v2, %s1271_s20  ;;  %v973_v2 = vld [vmem:[%s1619_s11 + $0x8] sm:$0xff]  ;;  %s1093_s20 = sshll.u32 %s429_s16, 3 }
 0x4a6   : > { %1006 = vmatpush.msra.mxu0 %v973_v2  ;;  %s431_s30 = scalar_lea.vmem [#allocation2], %s1093_s20  ;;  %s1221_s20 = scalar_lea.hbm %s1621_s13, 16 }
 0x4a7   : > { %s1027_s15 = sshll.u32 %s431_s30, 4  ;;  %s1028_s15 = int_to_ptr.vmem [resolvable:$true] %s1027_s15 }
 0x4b2   : > { %v765_v4 = vpop.f32.mrf.mxu3  ;;  %v791_v6 = vpop.f32.mrf.mxu2 }
 0x4b3   : > { %825 = vrot.lane.b32.xlu0 %v791_v6, %s1272_s21  ;;  %821 = vrot.lane.b32.xlu2 %v765_v4, %s1273_s22  ;;  %v972_v6 = vld [vmem:[%s1619_s11] sm:$0xff]  ;;  %s1217_s21 = scalar_lea.hbm %s1216_s3, 8 }
 0x4b4   : > { %1007 = vmatpush.msra.mxu0 %v972_v6  ;;  %p1218_p11 = scmp.ne.s32.totalorder %s1216_s3, %s1217_s21  ;;  %p1223_p1 = scmp.lt.s32.totalorder %s1221_s20, %s1217_s21 }
 0x4b6   : > { %p1219_p12 = pnand %p1218_p11, %p1382_p5  ;;  %p1224_p2 = por %p1223_p1, %p1222_p0 }
 0x4b8   : > { %p1220_p13 = pneg %p1219_p12 }
 0x4ba   : > { %p1225_p3 = pnand %p1224_p2, %p1220_p13 }
 0x50d   : > { %v822_v10 = vpop.permute.xlu2 %821 }
 0x50e   : > { %v832_v11 = vsel %vm517_vm5, %v739_v3, %v822_v10 }
 0x517   : > { %v830_v13 = vpop.permute.xlu1 %829 }
 0x525   : > { %v826_v12 = vpop.permute.xlu0 %825 }
 0x526   : > { %v834_v14 = vsel %vm833_vm8, %v832_v11, %v826_v12 }
 0x527   : > { %v836_v15 = vsel %vm835_vm9, %v834_v14, %v830_v13 }
 0x528   : > { %1108 = vmatmul.msk.f32.vlgmr.msrb.gmra.mxu2 %vm439_vm0, %v836_v15 }
 0x5ab   : > { %v865_v17 = vpop.f32.mrf.mxu2 }
 0x5ac   : > { %v866_v18 = vadd.f32 %v1170_v16, %v865_v17 }
 0x5ae   : > { %v1493_v19 = vadd.f32 %v866_v18, %v1397_v0  ;;  %v903_v0 = vld [vmem:[%s1617_s9 + $0x10] sm:$0xff] }
 0x5af   : > { %925 = vmatpush.msra.mxu3 %v903_v0 }
 0x5b0   : > { %v871_v20 = vsel %vm439_vm0, %v1493_v19, 0.0 }
 0x5b1   : > { %872 = vadd.xlane.f32.xlu2 %v871_v20  ;;  %926 = vmatpush.msra.mxu3 %v902_v27 }
 0x5b3   : > { %927 = vmatpush.msra.mxu3 %v901_v28 }
 0x624   : > { %v873_v21 = vpop.xlane.xlu2 %872 }
 0x625   : > { %v874_v22 = vmul.f32 %v873_v21, %v1401_v8 }
 0x627   : > { %v875_v23 = vsub.f32 %v1493_v19, %v874_v22 }
 0x629   : > { %v876_v24 = vmul.f32 %v875_v23, %v875_v23 }
 0x62b   : > { %v877_v25 = vsel %vm439_vm0, %v876_v24, 0.0 }
 0x62c   : > { %878 = vadd.xlane.f32.xlu0 %v877_v25 }
 0x69f   : > { %v879_v29 = vpop.xlane.xlu0 %878 }
 0x6a0   : > { %v880_v30 = vmul.f32 %v879_v29, %v1401_v8  ;;  %v1172_v8 = vld [vmem:[%s1616_s8] ss:$0 sm:$0xff] }
 0x6a2   : > { %v881_v31 = vadd.f32 1e-05, %v880_v30 }
 0x6a4   : > { %1195 = vrsqrt.f32 %v881_v31  ;;  %vm888_vm10 = vweird.f32 %v881_v31 }
 0x6aa   : > { %v1196_v32 = vpop.eup %1195 }
 0x6ab   : > { %v883_v33 = vmul.f32 %v1196_v32, %v881_v31  ;;  %vm889_vm5 = vweird.f32 %v1196_v32 }
 0x6ac   : > { %vm890_vm11 = vmor %vm888_vm10, %vm889_vm5 }
 0x6ad   : > { %v884_v34 = vmul.f32 %v1196_v32, %v883_v33 }
 0x6af   : > { %v885_v35 = vmul.f32 0.5, %v884_v34  ;;  %v1174_v34 = vld [vmem:[%s1620_s12] ss:$0 sm:$0xff] }
 0x6b1   : > { %v886_v36 = vsub.f32 1.5, %v885_v35 }
 0x6b3   : > { %v887_v37 = vmul.f32 %v1196_v32, %v886_v36 }
 0x6b5   : > { %v891_v39 = vsel %vm890_vm11, %v1196_v32, %v887_v37 }
 0x6b6   : > { %v892_v40 = vmul.f32 %v891_v39, %v875_v23 }
 0x6b8   : > { %v896_v41 = vmul.f32 %v1171_v38, %v892_v40 }
 0x6ba   : > { %v900_v42 = vadd.f32 %v1172_v8, %v896_v41 }
 0x6bc   : > { %1109 = vmatmul.msk.f32.vlgmr.msra.gmra.mxu3 %vm439_vm0, %v900_v42 }
 0x73f   : > { %v929_v50 = vpop.f32.mrf.mxu3 }
 0x740   : > { %v930_v52 = vadd.f32 %v1173_v48, %v929_v50 }
 0x742   : > { %v933_v54 = vmul.f32 0.70710677, %v930_v52  ;;  %v932_v31 = vmul.f32 0.5, %v930_v52 }
 0x744   : > { %v934_v56 = vand.u32 2147483647, %v933_v54  ;;  %vm967_vm1 = vcmp.ge.f32.partialorder %v933_v54, 0.0 }
 0x746   : > { %v935_v58 = vmul.f32 0.3275911, %v934_v56  ;;  %v961_v13 = vsub.f32 0.0, %v934_v56 }
 0x748   : > { %v936_v60 = vadd.f32 1.0, %v935_v58  ;;  %v962_v17 = vmul.f32 %v961_v13, %v934_v56 }
 0x74a   : > { %1197 = vrcp.f32 %v936_v60  ;;  %v948_v5 = vand.u32 2147483648, %v936_v60  ;;  %v946_v9 = vand.u32 2147483647, %v936_v60  ;;  %vm942_vm13 = vweird.f32 %v936_v60 }
 0x74b   : > { %v963_v21 = vmul.f32 1.442695, %v962_v17 }
 0x74c   : > { %v949_v11 = vor.u32 1.1754944e-38, %v948_v5  ;;  %vm947_vm15 = vcmp.eq.f32.partialorder %v946_v9, 8.507059e+37 }
 0x74d   : > { %1199 = vpow2.f32 %v963_v21 }
 0x750   : > { %v1198_v3 = vpop.eup %1197 }
 0x751   : > { %v938_v4 = vmul.f32 %v1198_v3, %v936_v60  ;;  %vm943_vm12 = vweird.f32 %v1198_v3 }
 0x752   : > { %vm944_vm14 = vmor %vm942_vm13, %vm943_vm12 }
 0x753   : > { %v939_v63 = vsub.f32 1.0, %v938_v4  ;;  %v1200_v0 = vpop.eup %1199 }
 0x755   : > { %v940_v7 = vmul.f32 %v1198_v3, %v939_v63 }
 0x757   : > { %v941_v10 = vadd.f32 %v1198_v3, %v940_v7 }
 0x759   : > { %v945_v12 = vsel %vm944_vm14, %v1198_v3, %v941_v10 }
 0x75a   : > { %v950_v14 = vsel %vm947_vm15, %v949_v11, %v945_v12 }
 0x75b   : > { %v952_v15 = vmul.f32 1.0614054, %v950_v14 }
 0x75d   : > { %v953_v16 = vadd.f32 -1.4531521, %v952_v15 }
 0x75f   : > { %v954_v18 = vmul.f32 %v953_v16, %v950_v14 }
 0x761   : > { %v955_v20 = vadd.f32 1.4214138, %v954_v18 }
 0x763   : > { %v956_v22 = vmul.f32 %v955_v20, %v950_v14 }
 0x765   : > { %v957_v23 = vadd.f32 -0.28449672, %v956_v22 }
 0x767   : > { %v958_v24 = vmul.f32 %v957_v23, %v950_v14 }
 0x769   : > { %v959_v25 = vadd.f32 0.2548296, %v958_v24 }
 0x76b   : > { %v960_v26 = vmul.f32 %v959_v25, %v950_v14 }
 0x76d   : > { %v965_v27 = vmul.f32 %v1200_v0, %v960_v26 }
 0x76f   : > { %v966_v28 = vsub.f32 1.0, %v965_v27 }
 0x771   : > { %v968_v29 = vsub.f32 0.0, %v966_v28 }
 0x773   : > { %v969_v30 = vsel %vm967_vm1, %v966_v28, %v968_v29 }
 0x774   : > { %v970_v32 = vadd.f32 1.0, %v969_v30 }
 0x776   : > { %v971_v33 = vmul.f32 %v970_v32, %v932_v31 }
 0x778   : > { %1008 = vmatmul.f32.vlgmr.msra.gmra.mxu0 %v971_v33 }
 0x7f5   : > { %v1009_v35 = vpop.f32.mrf.mxu0 }
 0x7f6   : > { %v1010_v36 = vadd.f32 %v1174_v34, %v1009_v35 }
 0x7f8   : > { %v1012_v37 = vadd.f32 %v1010_v36, %v1493_v19 }
 0x7fa   : > { %1013 = vst.msk [vmem:[%s431_s30] sm:$0xff] %vm439_vm0, %v1012_v37 }
 0x7fb   : > { %1228 = shalt.err (!%p1225_p3)
}
 0x7fc   : > { %1114 = dma.vmem_to_hbm [thread:$0]  (%p1382_p5), %s1028_s15, 128, %s1030_s2, %s1015_s29  }
 0x7fd PF: > { %p1120_p4 = scmp.ge.s32.totalorder %s1263_s28, 2  ;;  %s1041_s16 = sand.u32 1, %s1251_s25  }
 0x7fe   : > { %s1042_s24 = scalar_lea.sflag [#allocation3], %s1041_s16 }
 0x7ff   : > { %p1117_p7 = pnand %p1120_p4, %p1386_p6 }
 0x801   : > { %p1118_p8 = pneg %p1117_p7 }
 0x803   : > { %1246 = dma.done.wait (%p1118_p8), %s1042_s24, 128  }
 0x804   : > { %1248 = vsyncadd (%p1118_p8), %s1042_s24, 4294967168  ;;  %p23_p9 = scmp.ge.s32.totalorder %s1369_s14, 4   ;;  %s1634_s25 = smov %s1255_s26 }
 0x805   : > { %s1635_s26 = smov %s1259_s27  ;;  %s1636_s27 = smov %s1380_s17 }
 0x806   : > { %s1637_s28 = smov %s1369_s14  ;;  %25 = sbr.rel (!%p23_p9) target bundleno = 8 (0x8), region = 107 }
 0x80b   :  { %1048 = vsyncpa [#allocation3], 1 }
 0x80c   :  { %1050 = vsyncpa [#allocation3 + $0x1], 1 }

// kernel: tpu_custom_call.1
= control target key start
LH: loop header
LB: loop body
LE: loop exit
PB: predicated region body
PF: predicated region fallthrough
CT: control target
= control target key end

     0   :  { %s2266_s0 = inlined_call_operand.vmem [shape: f32[2,8,32], index: 0, kind: input, shape index: {}]   ;;  %s2267_s1 = inlined_call_operand.vmem [shape: f32[1,32], index: 1, kind: input, shape index: {}]   ;;  %s2268_s2 = inlined_call_operand.vmem [shape: f32[1,32], index: 2, kind: input, shape index: {}]   ;;  %s2269_s3 = inlined_call_operand.vmem [shape: f32[32,96], index: 3, kind: input, shape index: {}]   ;;  %s2270_s4 = inlined_call_operand.vmem [shape: f32[1,96], index: 4, kind: input, shape index: {}]   ;;  %s2271_s5 = inlined_call_operand.vmem [shape: f32[32,32], index: 5, kind: input, shape index: {}]   ;;  %s2272_s6 = inlined_call_operand.vmem [shape: f32[1,32], index: 6, kind: input, shape index: {}]   ;;  %s2273_s7 = inlined_call_operand.vmem [shape: f32[1,32], index: 7, kind: input, shape index: {}]   ;;  %s2274_s8 = inlined_call_operand.vmem [shape: f32[1,32], index: 8, kind: input, shape index: {}]   ;;  %s2275_s9 = inlined_call_operand.vmem [shape: f32[32,128], index: 9, kind: input, shape index: {}]   ;;  %s2276_s10 = inlined_call_operand.vmem [shape: f32[1,128], index: 10, kind: input, shape index: {}]   ;;  %s2277_s11 = inlined_call_operand.vmem [shape: f32[128,32], index: 11, kind: input, shape index: {}]   ;;  %s2278_s12 = inlined_call_operand.vmem [shape: f32[1,32], index: 12, kind: input, shape index: {}]   ;;  %s2279_s13 = inlined_call_operand.hbm [shape: f32[2,8,32], index: 13, kind: output, shape index: {}]  }
   0x1   :  { %2280 = sst [smem:[#allocation5_spill]] %s2266_s0 }
   0x2   :  { %2281 = sst [smem:[#allocation6_spill]] %s2267_s1 }
   0x3   :  { %2282 = sst [smem:[#allocation7_spill]] %s2268_s2 }
   0x4   :  { %2283 = sst [smem:[#allocation8_spill]] %s2269_s3 }
   0x5   :  { %18 = vsyncpa [#allocation3], 0 }
   0x6   :  { %20 = vsyncpa [#allocation3 + $0x1], 0  ;;  %s1809_s25 = smov 0   ;;  %s1811_s26 = smov 0  }
   0x7   :  { %s1813_s27 = smov 0   ;;  %s1815_s28 = smov 0  }
   0x8 LB: > { %s1830_s29 = sadd.s32 4294967295, %s1726_s28   ;;  %s1545_s30 = sadd.s32 4294967294, %s1726_s28   ;;  %s1726_s28 = sphi %s1815_s28, %s2293_s28   ;;  %s1722_s27 = sphi %s1813_s27, %s2292_s27   ;;  %s1718_s26 = sphi %s1811_s26, %s2291_s26   ;;  %s1714_s25 = sphi %s1809_s25, %s2290_s25  }
   0x9   : > { %s1834_s14 = sadd.s32 1, %s1726_s28   ;;  %s311_s15 = sadd.s32 1, %s1722_s27 }
   0xa   : > { %s308_s16 = ssub.s32 %s1726_s28, %s1834_s14  ;;  %p321_p0 = scmp.ne.s32.totalorder %s1722_s27, %s1718_s26 }
   0xb   : > { %p309_p1 = scmp.eq.s32.totalorder %s308_s16, 0  ;;  %p322_p2 = scmp.eq.s32.totalorder %s1830_s29, 1 }
   0xc   : > { %p327_p3 = scmp.ne.s32.totalorder %s1718_s26, %s1714_s25  ;;  %p328_p4 = scmp.eq.s32.totalorder %s1545_s30, 1 }
   0xd   : > { %s1845_s17 = scalar_select %p309_p1, %s1722_s27, %s311_s15  }
   0xe   : > { %p1847_p5 = por %p322_p2, %p321_p0  ;;  %p1851_p6 = por %p328_p4, %p327_p3 }
   0xf   : > { %p1548_p7 = scmp.ge.s32.totalorder %s1726_s28, 1  ;;  %p389_p8 = scmp.lt.s32.totalorder %s1726_s28, 3 }
  0x11   : > { %p390_p9 = pnand %p1548_p7, %p389_p8 }
  0x12   : > { %p432_p10 = scmp.lt.s32.totalorder (!%p390_p9), %s1830_s29, 1  ;;  %s2286_s0 = sld [smem:[#allocation5_spill]] (!%p390_p9) }
  0x13   : > { %393 = sbr.rel (%p390_p9) target bundleno = 2085 (0x825), region = 72  ;;  %s2287_s3 = sld [smem:[#allocation8_spill]] (!%p390_p9) }
  0x14   : > { %s2288_s1 = sld [smem:[#allocation6_spill]] (!%p390_p9)  ;;  %s1729_s23 = smov (!%p390_p9), 104  }
  0x15   : > { %s2289_s2 = sld [smem:[#allocation7_spill]] (!%p390_p9)  ;;  %s1731_s30 = smov (!%p390_p9), 96  }
  0x16   : > { %s1732_s15 = smov (!%p390_p9), 112   ;;  %s1735_s16 = smov (!%p390_p9), 64  }
  0x17   : > { %s1738_s22 = smov (!%p390_p9), 24  }
  0x18   : > { %s433_s20 = scalar_select %p432_p10, %s1830_s29, 1  ;;  %vm439_vm0 = vcmask 261120   ;;  %v1728_v2 = vmov 32.0   ;;  %v1632_v33 = vld [vmem:[%s2270_s4] ss:$0 sm:$0xff]  ;;  %vm519_vm5 = vcmask 1047556  }
  0x19   : > { %1638 = vrcp.f32 %v1728_v2  ;;  %v480_v14 = vld [vmem:[%s2287_s3 + $0x18] sm:$0xff]  ;;  %v479_v15 = vld [vmem:[%s2287_s3 + $0x10] sm:$0xff]  ;;  %v478_v16 = vld [vmem:[%s2287_s3 + $0x8] sm:$0xff]  ;;  %v1733_v38 = vmov 1983009808   ;;  %vm873_vm6 = vcmask 64512  }
  0x1a   : > { %s1550_s21 = sshll.u32 %s433_s20, 3  ;;  %500 = vmatpush.msra.mxu1 %v480_v14  ;;  %v477_v17 = vld [vmem:[%s2287_s3] sm:$0xff]  ;;  %v524_v39 = vunpack.c.l.s4 %v1733_v38  ;;  %v1734_v45 = vmov 1934713408   ;;  %s1736_s20 = smov 16  }
  0x1b   : > { %s435_s24 = scalar_lea.vmem %s2286_s0, %s1550_s21  ;;  %v1630_v27 = vld [vmem:[%s2288_s1] ss:$0 sm:$0xff]  ;;  %v548_v46 = vunpack.c.l.s4 %v1734_v45  ;;  %s1737_s21 = smov 8  }
  0x1c   : > { %v1862_v0 = vld [vmem:[%s435_s24] sm:$0xff]  ;;  %501 = vmatpush.msra.mxu1 %v479_v15  ;;  %s1730_s24 = smov 120   ;;  %v1912_v44 = vunpack.c.0.s8 %v524_v39  ;;  %s1567_s0 = sshll.u32 %s1830_s29, 3 }
  0x1d   : > { %v440_v1 = vsel %vm439_vm0, %v1862_v0, 0.0  ;;  %v1631_v30 = vld [vmem:[%s2289_s2] ss:$0 sm:$0xff]  ;;  %v1919_v51 = vunpack.c.0.s8 %v548_v46 }
  0x1e   : > { %441 = vadd.xlane.f32.xlu0 %v440_v1  ;;  %502 = vmatpush.msra.mxu1 %v478_v16 }
  0x1f   : > { %v1639_v3 = vpop.eup %1638 }
  0x20   : > { %v444_v4 = vmul.f32 32.0, %v1639_v3  ;;  %vm448_vm1 = vweird.f32 %v1639_v3  ;;  %503 = vmatpush.msra.mxu1 %v477_v17 }
  0x22   : > { %v445_v5 = vsub.f32 1.0, %v444_v4 }
  0x24   : > { %v446_v6 = vmul.f32 %v1639_v3, %v445_v5 }
  0x26   : > { %v447_v7 = vadd.f32 %v1639_v3, %v446_v6 }
  0x28   : > { %v1866_v8 = vsel %vm448_vm1, %v1639_v3, %v447_v7 }
  0x91   : > { %v442_v9 = vpop.xlane.xlu0 %441 }
  0x92   : > { %v450_v10 = vmul.f32 %v1866_v8, %v442_v9 }
  0x94   : > { %v451_v11 = vsub.f32 %v1862_v0, %v450_v10 }
  0x96   : > { %v452_v12 = vmul.f32 %v451_v11, %v451_v11 }
  0x98   : > { %v453_v13 = vsel %vm439_vm0, %v452_v12, 0.0 }
  0x99   : > { %454 = vadd.xlane.f32.xlu0 %v453_v13 }
 0x10c   : > { %v455_v18 = vpop.xlane.xlu0 %454 }
 0x10d   : > { %v456_v19 = vmul.f32 %v455_v18, %v1866_v8 }
 0x10f   : > { %v457_v20 = vadd.f32 1e-05, %v456_v19 }
 0x111   : > { %1640 = vrsqrt.f32 %v457_v20  ;;  %vm464_vm3 = vweird.f32 %v457_v20 }
 0x117   : > { %v1641_v21 = vpop.eup %1640 }
 0x118   : > { %v459_v22 = vmul.f32 %v1641_v21, %v457_v20  ;;  %vm465_vm2 = vweird.f32 %v1641_v21 }
 0x119   : > { %vm466_vm4 = vmor %vm464_vm3, %vm465_vm2 }
 0x11a   : > { %v460_v23 = vmul.f32 %v1641_v21, %v459_v22 }
 0x11c   : > { %v461_v24 = vmul.f32 0.5, %v460_v23 }
 0x11e   : > { %v462_v25 = vsub.f32 1.5, %v461_v24 }
 0x120   : > { %v463_v26 = vmul.f32 %v1641_v21, %v462_v25 }
 0x122   : > { %v467_v28 = vsel %vm466_vm4, %v1641_v21, %v463_v26 }
 0x123   : > { %v468_v29 = vmul.f32 %v467_v28, %v451_v11 }
 0x125   : > { %v472_v31 = vmul.f32 %v1630_v27, %v468_v29 }
 0x127   : > { %v476_v32 = vadd.f32 %v1631_v30, %v472_v31 }
 0x129   : > { %1551 = vmatmul.msk.f32.vlgmr.msra.gmra.mxu1 %vm439_vm0, %v476_v32 }
 0x1a6   : > { %v505_v34 = vpop.f32.mrf.mxu1 }
 0x1a7   : > { %v1894_v35 = vadd.f32 %v1632_v33, %v505_v34 }
 0x1a9   : > { %515 = vrot.lane.b32.xlu2 %v1894_v35, %s1729_s23  ;;  %509 = vrot.lane.b32.xlu1 %v1894_v35, %s1730_s24  ;;  %v521_v48 = vrot.slane %v1894_v35, 4 }
 0x1b1   : > { %629 = vrot.lane.b32.xlu2 %v1894_v35, %s1731_s30  ;;  %512 = vrot.lane.b32.xlu1 %v1894_v35, %s1732_s15 }
 0x203   : > { %v1900_v36 = vpop.permute.xlu2 %515 }
 0x204   : > { %635 = vrot.lane.b32.xlu2 %v1900_v36, %s1731_s30  ;;  %v531_v37 = vrot.slane %v1900_v36, 4 }
 0x21b   : > { %v1904_v40 = vpop.permute.xlu1 %509 }
 0x21c   : > { %v532_v41 = vsel %vm519_vm5, %v531_v37, %v1904_v40  ;;  %v533_v42 = vrot.slane %v1904_v40, 4  ;;  %631 = vrot.lane.b32.xlu0 %v1904_v40, %s1731_s30 }
 0x21d   : > { %v538_v49 = vperm.slane %v532_v41, %v1912_v44 }
 0x21e   : > { %v534_v43 = vsel %vm519_vm5, %v1900_v36, %v533_v42 }
 0x21f   : > { %v542_v47 = vperm.slane %v534_v43, %v1912_v44  ;;  %v543_v57 = vrot.slane %v538_v49, 4 }
 0x221   : > { %v555_v54 = vrot.slane %v542_v47, 4 }
 0x223   : > { %v1917_v50 = vpop.permute.xlu1 %512 }
 0x224   : > { %v518_v52 = vrot.slane %v1917_v50, 4  ;;  %v522_v53 = vsel %vm519_vm5, %v1917_v50, %v521_v48  ;;  %633 = vrot.lane.b32.xlu1 %v1917_v50, %s1731_s30 }
 0x225   : > { %v530_v55 = vperm.slane %v522_v53, %v1912_v44 }
 0x226   : > { %v520_v56 = vsel %vm519_vm5, %v518_v52, %v1894_v35 }
 0x227   : > { %v526_v58 = vperm.slane %v520_v56, %v1912_v44  ;;  %v556_v59 = vsel %vm519_vm5, %v555_v54, %v530_v55  ;;  %v557_v60 = vrot.slane %v530_v55, 4 }
 0x228   : > { %v562_v61 = vperm.slane %v556_v59, %v1919_v51 }
 0x229   : > { %v544_v62 = vsel %vm519_vm5, %v543_v57, %v526_v58  ;;  %v545_v63 = vrot.slane %v526_v58, 4  ;;  %v558_v1 = vsel %vm519_vm5, %v542_v47, %v557_v60 }
 0x22a   : > { %v550_v2 = vperm.slane %v544_v62, %v1919_v51  ;;  %v566_v3 = vperm.slane %v558_v1, %v1919_v51  ;;  %v571_v6 = vrot.slane %v562_v61, 4 }
 0x22b   : > { %v546_v4 = vsel %vm519_vm5, %v538_v49, %v545_v63  ;;  %v630_v49 = vpop.permute.xlu2 %629 }
 0x22c   : > { %v554_v5 = vperm.slane %v546_v4, %v1919_v51  ;;  %v573_v7 = vrot.slane %v566_v3, 4  ;;  %v567_v10 = vrot.slane %v550_v2, 4  ;;  %v572_v15 = vsel %vm519_vm5, 0.0, %v571_v6 }
 0x22d   : > { %v643_v59 = vrot.slane %v630_v49, 4 }
 0x22e   : > { %v574_v9 = vsel %vm519_vm5, 0.0, %v573_v7  ;;  %v569_v11 = vrot.slane %v554_v5, 4  ;;  %v586_v12 = vsel %vm519_vm5, %v573_v7, %v562_v61  ;;  %v568_v22 = vsel %vm519_vm5, 0.0, %v567_v10 }
 0x22f   : > { %v591_v13 = vrot.slane %v574_v9, 4  ;;  %v590_v14 = vperm.slane %v586_v12, %v1912_v44 }
 0x230   : > { %v570_v16 = vsel %vm519_vm5, 0.0, %v569_v11  ;;  %v575_v17 = vsel %vm519_vm5, %v569_v11, %v550_v2 }
 0x231   : > { %v579_v18 = vperm.slane %v575_v17, %v1912_v44  ;;  %v580_v19 = vrot.slane %v570_v16, 4  ;;  %v592_v20 = vsel %vm519_vm5, %v591_v13, %v572_v15  ;;  %v611_v21 = vrot.slane %v590_v14, 4 }
 0x232   : > { %v596_v23 = vperm.slane %v592_v20, %v1912_v44 }
 0x233   : > { %v581_v24 = vsel %vm519_vm5, %v580_v19, %v568_v22  ;;  %v599_v25 = vrot.slane %v579_v18, 4 }
 0x234   : > { %v585_v26 = vperm.slane %v581_v24, %v1912_v44  ;;  %v612_v27 = vsel %vm519_vm5, %v596_v23, %v611_v21  ;;  %v609_v28 = vrot.slane %v596_v23, 4 }
 0x235   : > { %v620_v29 = vperm.slane %v612_v27, %v1919_v51 }
 0x236   : > { %v600_v30 = vsel %vm519_vm5, %v585_v26, %v599_v25  ;;  %v597_v31 = vrot.slane %v585_v26, 4  ;;  %v610_v32 = vsel %vm519_vm5, %v609_v28, %v590_v14 }
 0x237   : > { %v608_v33 = vperm.slane %v600_v30, %v1919_v51  ;;  %v625_v34 = vrot.slane %v620_v29, 4  ;;  %v616_v37 = vperm.slane %v610_v32, %v1919_v51 }
 0x238   : > { %v598_v38 = vsel %vm519_vm5, %v597_v31, %v579_v18 }
 0x239   : > { %v1957_v39 = vsel %vm519_vm5, %v625_v34, %v608_v33  ;;  %v627_v41 = vrot.slane %v608_v33, 4  ;;  %v604_v42 = vperm.slane %v598_v38, %v1919_v51  ;;  %v621_v43 = vrot.slane %v616_v37, 4 }
 0x23b   : > { %v1961_v45 = vsel %vm519_vm5, %v621_v43, %v604_v42  ;;  %v623_v46 = vrot.slane %v604_v42, 4  ;;  %v1964_v47 = vsel %vm519_vm5, %v620_v29, %v627_v41 }
 0x23d   : > { %v1967_v48 = vsel %vm519_vm5, %v616_v37, %v623_v46 }
 0x25e   : > { %v636_v52 = vpop.permute.xlu2 %635 }
 0x25f   : > { %v653_v55 = vrot.slane %v636_v52, 4 }
 0x28e   : > { %v632_v53 = vpop.permute.xlu0 %631 }
 0x28f   : > { %v655_v54 = vrot.slane %v632_v53, 4  ;;  %v654_v57 = vsel %vm519_vm5, %v653_v55, %v632_v53 }
 0x290   : > { %v660_v60 = vperm.slane %v654_v57, %v1912_v44 }
 0x291   : > { %v656_v56 = vsel %vm519_vm5, %v636_v52, %v655_v54 }
 0x292   : > { %v664_v58 = vperm.slane %v656_v56, %v1912_v44  ;;  %v665_v4 = vrot.slane %v660_v60, 4 }
 0x294   : > { %v677_v1 = vrot.slane %v664_v58, 4 }
 0x296   : > { %v634_v61 = vpop.permute.xlu1 %633 }
 0x297   : > { %v641_v62 = vrot.slane %v634_v61, 4  ;;  %v644_v63 = vsel %vm519_vm5, %v634_v61, %v643_v59 }
 0x298   : > { %v652_v2 = vperm.slane %v644_v63, %v1912_v44 }
 0x299   : > { %v642_v3 = vsel %vm519_vm5, %v641_v62, %v630_v49 }
 0x29a   : > { %v648_v5 = vperm.slane %v642_v3, %v1912_v44  ;;  %v678_v6 = vsel %vm519_vm5, %v677_v1, %v652_v2  ;;  %v679_v7 = vrot.slane %v652_v2, 4 }
 0x29b   : > { %v684_v9 = vperm.slane %v678_v6, %v1919_v51 }
 0x29c   : > { %v666_v10 = vsel %vm519_vm5, %v665_v4, %v648_v5  ;;  %v667_v11 = vrot.slane %v648_v5, 4  ;;  %v680_v12 = vsel %vm519_vm5, %v664_v58, %v679_v7 }
 0x29d   : > { %v672_v13 = vperm.slane %v666_v10, %v1919_v51  ;;  %v688_v14 = vperm.slane %v680_v12, %v1919_v51  ;;  %v693_v17 = vrot.slane %v684_v9, 4 }
 0x29e   : > { %v668_v15 = vsel %vm519_vm5, %v660_v60, %v667_v11 }
 0x29f   : > { %v676_v16 = vperm.slane %v668_v15, %v1919_v51  ;;  %v695_v18 = vrot.slane %v688_v14, 4  ;;  %v689_v19 = vrot.slane %v672_v13, 4  ;;  %v694_v25 = vsel %vm519_vm5, 0.0, %v693_v17 }
 0x2a1   : > { %v691_v20 = vrot.slane %v676_v16, 4  ;;  %v696_v21 = vsel %vm519_vm5, 0.0, %v695_v18  ;;  %v708_v22 = vsel %vm519_vm5, %v695_v18, %v684_v9  ;;  %v690_v32 = vsel %vm519_vm5, 0.0, %v689_v19 }
 0x2a2   : > { %v712_v23 = vperm.slane %v708_v22, %v1912_v44  ;;  %v713_v24 = vrot.slane %v696_v21, 4 }
 0x2a3   : > { %v692_v26 = vsel %vm519_vm5, 0.0, %v691_v20  ;;  %v697_v27 = vsel %vm519_vm5, %v691_v20, %v672_v13 }
 0x2a4   : > { %v701_v28 = vperm.slane %v697_v27, %v1912_v44  ;;  %v702_v29 = vrot.slane %v692_v26, 4  ;;  %v714_v30 = vsel %vm519_vm5, %v713_v24, %v694_v25  ;;  %v733_v31 = vrot.slane %v712_v23, 4 }
 0x2a5   : > { %v718_v33 = vperm.slane %v714_v30, %v1912_v44 }
 0x2a6   : > { %v703_v34 = vsel %vm519_vm5, %v702_v29, %v690_v32  ;;  %v721_v37 = vrot.slane %v701_v28, 4 }
 0x2a7   : > { %v707_v38 = vperm.slane %v703_v34, %v1912_v44  ;;  %v734_v41 = vsel %vm519_vm5, %v718_v33, %v733_v31  ;;  %v731_v42 = vrot.slane %v718_v33, 4 }
 0x2a8   : > { %v742_v43 = vperm.slane %v734_v41, %v1919_v51 }
 0x2a9   : > { %v722_v46 = vsel %vm519_vm5, %v707_v38, %v721_v37  ;;  %v719_v49 = vrot.slane %v707_v38, 4  ;;  %v732_v52 = vsel %vm519_vm5, %v731_v42, %v712_v23 }
 0x2aa   : > { %v730_v53 = vperm.slane %v722_v46, %v1919_v51  ;;  %v747_v54 = vrot.slane %v742_v43, 4  ;;  %v738_v55 = vperm.slane %v732_v52, %v1919_v51 }
 0x2ab   : > { %v720_v56 = vsel %vm519_vm5, %v719_v49, %v701_v28 }
 0x2ac   : > { %v748_v57 = vsel %vm519_vm5, %v747_v54, %v730_v53  ;;  %v749_v58 = vrot.slane %v730_v53, 4  ;;  %v726_v59 = vperm.slane %v720_v56, %v1919_v51  ;;  %v743_v60 = vrot.slane %v738_v55, 4 }
 0x2ad   : > { %1556 = vmatpush.xpose.msk.msra.mxu3 %vm873_vm6, %v748_v57 }
 0x2ae   : > { %v744_v61 = vsel %vm519_vm5, %v743_v60, %v726_v59  ;;  %v750_v62 = vsel %vm519_vm5, %v742_v43, %v749_v58  ;;  %v745_v63 = vrot.slane %v726_v59, 4 }
 0x2af   : > { %1552 = vmatpush.xpose.msk.msrb.mxu1 %vm873_vm6, %v744_v61 }
 0x2b0   : > { %1557 = vmatmul.msk.f32.vlgmr.msra.gmra.mxu3 %vm873_vm6, %v1957_v39  ;;  %v746_v1 = vsel %vm519_vm5, %v738_v55, %v745_v63 }
 0x2b1   : > { %1554 = vmatpush.xpose.msk.msra.mxu2 %vm873_vm6, %v746_v1 }
 0x2b2   : > { %1553 = vmatmul.msk.f32.vlgmr.msrb.gmra.mxu1 %vm873_vm6, %v1961_v45 }
 0x2b3   : > { %1558 = vmatpush.xpose.msk.msra.mxu1 %vm873_vm6, %v750_v62 }
 0x2b4   : > { %1555 = vmatmul.msk.f32.vlgmr.msra.gmra.mxu2 %vm873_vm6, %v1967_v48  ;;  %v1620_v48 = vpack.i.bf16 %v1904_v40, %v1894_v35 }
 0x2ba   : > { %1559 = vmatmul.msk.f32.vlgmr.msra.gmra.mxu1 %vm873_vm6, %v1964_v47  ;;  %v1625_v47 = vpack.i.bf16 %v1900_v36, %v1917_v50 }
 0x32f   : > { %v897_v2 = vpop.f32.mrf.mxu1 }
 0x330   : > { %v978_v3 = vsel %vm873_vm6, %v897_v2, -inf }
 0x331   : > { %979 = vmax.xlane.f32.xlu1 %v978_v3 }
 0x333   : > { %v949_v39 = vpop.f32.mrf.mxu3 }
 0x334   : > { %v984_v4 = vsel %vm873_vm6, %v949_v39, -inf }
 0x335   : > { %985 = vmax.xlane.f32.xlu2 %v984_v4 }
 0x337   : > { %v923_v5 = vpop.f32.mrf.mxu2  ;;  %v975_v7 = vpop.f32.mrf.mxu1 }
 0x338   : > { %v981_v6 = vsel %vm873_vm6, %v923_v5, -inf  ;;  %v987_v45 = vsel %vm873_vm6, %v975_v7, -inf }
 0x339   : > { %982 = vmax.xlane.f32.xlu0 %v981_v6 }
 0x33d   : > { %988 = vmax.xlane.f32.xlu2 %v987_v45 }
 0x34a   : > { %1621 = vrot.lane.b32.xlu1 %v1620_v48, %s1735_s16 }
 0x355   : > { %1626 = vrot.lane.b32.xlu2 %v1625_v47, %s1735_s16  ;;  %s1481_s16 = scalar_lea.hbm %s2279_s13, %s1567_s0 }
 0x356   : > { %s1485_s2 = sshll.u32 %s1481_s16, 4  ;;  %s1486_s2 = int_to_ptr.hbm [resolvable:$true] %s1485_s2 }
 0x357   : > { %s1678_s3 = sshra.s32 %s1486_s2, 4  ;;  %s1679_s3 = int_to_ptr.hbm [resolvable:$true] %s1678_s3 }
 0x358   : > { %s1680_s1 = scalar_lea.hbm %s1679_s3, 8  ;;  %p1685_p0 = scmp.lt.s32.totalorder %s1679_s3, %s2279_s13 }
 0x359   : > { %p1681_p11 = scmp.ne.s32.totalorder %s1679_s3, %s1680_s1 }
 0x35b   : > { %p1682_p12 = pnand %p1681_p11, %p1847_p5 }
 0x35d   : > { %p1683_p13 = pneg %p1682_p12 }
 0x3a4   : > { %v980_v9 = vpop.xlane.xlu1 %979 }
 0x3a5   : > { %v990_v10 = vsub.f32 %v897_v2, %v980_v9 }
 0x3a7   : > { %v994_v11 = vmul.f32 1.442695, %v990_v10 }
 0x3a8   : > { %v986_v12 = vpop.xlane.xlu2 %985 }
 0x3a9   : > { %1642 = vpow2.f32 %v994_v11  ;;  %v992_v13 = vsub.f32 %v949_v39, %v986_v12 }
 0x3ab   : > { %v998_v14 = vmul.f32 1.442695, %v992_v13 }
 0x3ac   : > { %v983_v15 = vpop.xlane.xlu0 %982 }
 0x3ad   : > { %v991_v16 = vsub.f32 %v923_v5, %v983_v15  ;;  %1644 = vpow2.f32 %v998_v14 }
 0x3af   : > { %v2029_v17 = vpop.eup %1642  ;;  %v996_v18 = vmul.f32 1.442695, %v991_v16 }
 0x3b0   : > { %v989_v35 = vpop.xlane.xlu2 %988  ;;  %v1002_v40 = vsel %vm873_vm6, %v2029_v17, 0.0 }
 0x3b1   : > { %1646 = vpow2.f32 %v996_v18  ;;  %v993_v36 = vsub.f32 %v975_v7, %v989_v35  ;;  %1003 = vadd.xlane.f32.xlu0 %v1002_v40 }
 0x3b3   : > { %v1000_v50 = vmul.f32 1.442695, %v993_v36  ;;  %v2033_v19 = vpop.eup %1644 }
 0x3b4   : > { %v1008_v23 = vsel %vm873_vm6, %v2033_v19, 0.0 }
 0x3b5   : > { %1648 = vpow2.f32 %v1000_v50 }
 0x3b7   : > { %v2035_v20 = vpop.eup %1646 }
 0x3b8   : > { %v1627_v21 = vpop.permute.xlu2 %1626  ;;  %v1005_v22 = vsel %vm873_vm6, %v2035_v20, 0.0 }
 0x3b9   : > { %v1629_v24 = vunpack.i.h.bf16 %v1627_v21  ;;  %v1628_v25 = vunpack.i.l.bf16 %v1627_v21  ;;  %1006 = vadd.xlane.f32.xlu1 %v1005_v22  ;;  %1009 = vadd.xlane.f32.xlu0 %v1008_v23 }
 0x3bb   : > { %v2041_v27 = vpop.eup %1648  ;;  %v775_v28 = vrot.slane %v1629_v24, 4  ;;  %v763_v29 = vrot.slane %v1628_v25, 4 }
 0x3bc   : > { %v1622_v26 = vpop.permute.xlu1 %1621  ;;  %v1011_v42 = vsel %vm873_vm6, %v2041_v27, 0.0 }
 0x3bd   : > { %v1624_v30 = vunpack.i.h.bf16 %v1622_v26  ;;  %v1623_v31 = vunpack.i.l.bf16 %v1622_v26 }
 0x3bf   : > { %v777_v32 = vrot.slane %v1624_v30, 4  ;;  %v764_v33 = vsel %vm519_vm5, %v763_v29, %v1623_v31  ;;  %v765_v34 = vrot.slane %v1623_v31, 4  ;;  %v776_v37 = vsel %vm519_vm5, %v775_v28, %v1624_v30 }
 0x3c0   : > { %v770_v38 = vperm.slane %v764_v33, %v1912_v44  ;;  %v782_v41 = vperm.slane %v776_v37, %v1912_v44 }
 0x3c1   : > { %v766_v43 = vsel %vm519_vm5, %v1628_v25, %v765_v34  ;;  %v778_v46 = vsel %vm519_vm5, %v1629_v24, %v777_v32  ;;  %1012 = vadd.xlane.f32.xlu0 %v1011_v42 }
 0x3c2   : > { %v774_v49 = vperm.slane %v766_v43, %v1912_v44  ;;  %v786_v52 = vperm.slane %v778_v46, %v1912_v44  ;;  %v787_v53 = vrot.slane %v782_v41, 4  ;;  %v789_v54 = vrot.slane %v770_v38, 4 }
 0x3c4   : > { %v788_v55 = vsel %vm519_vm5, %v787_v53, %v770_v38  ;;  %v790_v56 = vsel %vm519_vm5, %v782_v41, %v789_v54  ;;  %v799_v57 = vrot.slane %v786_v52, 4  ;;  %v801_v58 = vrot.slane %v774_v49, 4 }
 0x3c5   : > { %v794_v59 = vperm.slane %v788_v55, %v1919_v51  ;;  %v798_v60 = vperm.slane %v790_v56, %v1919_v51 }
 0x3c6   : > { %v800_v61 = vsel %vm519_vm5, %v799_v57, %v774_v49  ;;  %v802_v62 = vsel %vm519_vm5, %v786_v52, %v801_v58 }
 0x3c7   : > { %v806_v63 = vperm.slane %v800_v61, %v1919_v51  ;;  %v810_v1 = vperm.slane %v802_v62, %v1919_v51  ;;  %v811_v2 = vrot.slane %v794_v59, 4  ;;  %v813_v3 = vrot.slane %v798_v60, 4 }
 0x3c9   : > { %v814_v39 = vsel %vm519_vm5, 0.0, %v813_v3  ;;  %v815_v4 = vrot.slane %v806_v63, 4  ;;  %v817_v5 = vrot.slane %v810_v1, 4  ;;  %v819_v6 = vsel %vm519_vm5, %v813_v3, %v794_v59 }
 0x3ca   : > { %v824_v7 = vrot.slane %v814_v39, 4  ;;  %v812_v45 = vsel %vm519_vm5, 0.0, %v811_v2  ;;  %v823_v47 = vperm.slane %v819_v6, %v1912_v44 }
 0x3cb   : > { %v818_v48 = vsel %vm519_vm5, 0.0, %v817_v5  ;;  %v830_v9 = vsel %vm519_vm5, %v817_v5, %v806_v63  ;;  %v816_v13 = vsel %vm519_vm5, 0.0, %v815_v4 }
 0x3cc   : > { %v835_v10 = vrot.slane %v818_v48, 4  ;;  %v825_v11 = vsel %vm519_vm5, %v824_v7, %v812_v45  ;;  %v834_v12 = vperm.slane %v830_v9, %v1912_v44  ;;  %v843_v15 = vrot.slane %v823_v47, 4 }
 0x3cd   : > { %v829_v14 = vperm.slane %v825_v11, %v1912_v44 }
 0x3ce   : > { %v836_v16 = vsel %vm519_vm5, %v835_v10, %v816_v13  ;;  %v855_v18 = vrot.slane %v834_v12, 4 }
 0x3cf   : > { %v840_v35 = vperm.slane %v836_v16, %v1912_v44  ;;  %v844_v40 = vsel %vm519_vm5, %v829_v14, %v843_v15  ;;  %v841_v36 = vrot.slane %v829_v14, 4 }
 0x3d0   : > { %v852_v50 = vperm.slane %v844_v40, %v1919_v51 }
 0x3d1   : > { %v856_v21 = vsel %vm519_vm5, %v840_v35, %v855_v18  ;;  %v842_v22 = vsel %vm519_vm5, %v841_v36, %v823_v47  ;;  %v853_v23 = vrot.slane %v840_v35, 4 }
 0x3d2   : > { %v864_v24 = vperm.slane %v856_v21, %v1919_v51  ;;  %v871_v25 = vrot.slane %v852_v50, 4  ;;  %v848_v26 = vperm.slane %v842_v22, %v1919_v51 }
 0x3d3   : > { %v854_v28 = vsel %vm519_vm5, %v853_v23, %v834_v12 }
 0x3d4   : > { %v872_v29 = vsel %vm519_vm5, %v864_v24, %v871_v25  ;;  %v860_v30 = vperm.slane %v854_v28, %v1919_v51  ;;  %v867_v31 = vrot.slane %v848_v26, 4  ;;  %v869_v32 = vrot.slane %v864_v24, 4 }
 0x3d5   : > { %1161 = vmatpush.msrb.mxu1 %v872_v29 }
 0x3d6   : > { %v868_v33 = vsel %vm519_vm5, %v860_v30, %v867_v31  ;;  %v865_v34 = vrot.slane %v860_v30, 4  ;;  %v870_v38 = vsel %vm519_vm5, %v869_v32, %v852_v50 }
 0x3d7   : > { %1115 = vmatpush.msrb.mxu3 %v868_v33 }
 0x3d8   : > { %v866_v37 = vsel %vm519_vm5, %v865_v34, %v848_v26 }
 0x3d9   : > { %1092 = vmatpush.msrb.mxu2 %v866_v37 }
 0x3db   : > { %1138 = vmatpush.msra.mxu2 %v870_v38 }
 0x424   : > { %v1004_v41 = vpop.xlane.xlu0 %1003 }
 0x425   : > { %1650 = vrcp.f32 %v1004_v41  ;;  %v1025_v54 = vand.u32 2147483648, %v1004_v41  ;;  %v1023_v55 = vand.u32 2147483647, %v1004_v41  ;;  %vm1019_vm8 = vweird.f32 %v1004_v41 }
 0x427   : > { %v1026_v59 = vor.u32 1.1754944e-38, %v1025_v54  ;;  %vm1024_vm10 = vcmp.eq.f32.partialorder %v1023_v55, 8.507059e+37 }
 0x42b   : > { %v1651_v42 = vpop.eup %1650 }
 0x42c   : > { %v1015_v43 = vmul.f32 %v1651_v42, %v1004_v41  ;;  %v1010_v46 = vpop.xlane.xlu0 %1009  ;;  %v1007_v49 = vpop.xlane.xlu1 %1006  ;;  %vm1020_vm7 = vweird.f32 %v1651_v42 }
 0x42d   : > { %1652 = vrcp.f32 %v1010_v46  ;;  %vm1021_vm9 = vmor %vm1019_vm8, %vm1020_vm7  ;;  %v1053_v3 = vand.u32 2147483648, %v1010_v46  ;;  %v1051_v6 = vand.u32 2147483647, %v1010_v46  ;;  %v1039_v7 = vand.u32 2147483648, %v1007_v49 }
 0x42e   : > { %v1016_v52 = vsub.f32 1.0, %v1015_v43  ;;  %1654 = vrcp.f32 %v1007_v49  ;;  %v1037_v48 = vand.u32 2147483647, %v1007_v49  ;;  %vm1047_vm13 = vweird.f32 %v1010_v46 }
 0x42f   : > { %v1054_v10 = vor.u32 1.1754944e-38, %v1053_v3  ;;  %vm1033_vm15 = vweird.f32 %v1007_v49  ;;  %vm1052_vm1 = vcmp.eq.f32.partialorder %v1051_v6, 8.507059e+37 }
 0x430   : > { %v1017_v53 = vmul.f32 %v1651_v42, %v1016_v52  ;;  %vm1038_vm3 = vcmp.eq.f32.partialorder %v1037_v48, 8.507059e+37 }
 0x432   : > { %v1018_v56 = vadd.f32 %v1651_v42, %v1017_v53 }
 0x433   : > { %v1653_v57 = vpop.eup %1652 }
 0x434   : > { %v1655_v58 = vpop.eup %1654  ;;  %v1043_v60 = vmul.f32 %v1653_v57, %v1010_v46  ;;  %v1013_v61 = vpop.xlane.xlu0 %1012  ;;  %v1022_v62 = vsel %vm1021_vm9, %v1651_v42, %v1018_v56  ;;  %vm1048_vm11 = vweird.f32 %v1653_v57 }
 0x435   : > { %v1029_v63 = vmul.f32 %v1655_v58, %v1007_v49  ;;  %1656 = vrcp.f32 %v1013_v61  ;;  %v1027_v2 = vsel %vm1024_vm10, %v1026_v59, %v1022_v62  ;;  %vm1034_vm12 = vweird.f32 %v1655_v58  ;;  %vm1049_vm14 = vmor %vm1047_vm13, %vm1048_vm11 }
 0x436   : > { %v1044_v1 = vsub.f32 1.0, %v1043_v60  ;;  %v1070_v4 = vmul.f32 %v2029_v17, %v1027_v2  ;;  %vm1035_vm2 = vmor %vm1033_vm15, %vm1034_vm12  ;;  %v1040_v17 = vor.u32 1.1754944e-38, %v1039_v7  ;;  %v1067_v40 = vand.u32 2147483648, %v1013_v61 }
 0x437   : > { %v1030_v39 = vsub.f32 1.0, %v1029_v63  ;;  %v1065_v21 = vand.u32 2147483647, %v1013_v61  ;;  %vm1061_vm7 = vweird.f32 %v1013_v61  ;;  %vm1291_vm10 = vcmask 195584  }
 0x438   : > { %v1045_v5 = vmul.f32 %v1653_v57, %v1044_v1  ;;  %1560 = vmatmul.msk.f32.vlgmr.msrb.gmra.mxu2 %vm873_vm6, %v1070_v4  ;;  %v1068_v23 = vor.u32 1.1754944e-38, %v1067_v40 }
 0x439   : > { %v1031_v45 = vmul.f32 %v1655_v58, %v1030_v39  ;;  %vm1066_vm9 = vcmp.eq.f32.partialorder %v1065_v21, 8.507059e+37 }
 0x43a   : > { %v1046_v47 = vadd.f32 %v1653_v57, %v1045_v5 }
 0x43b   : > { %v1657_v9 = vpop.eup %1656  ;;  %v1032_v11 = vadd.f32 %v1655_v58, %v1031_v45 }
 0x43c   : > { %v1050_v12 = vsel %vm1049_vm14, %v1653_v57, %v1046_v47  ;;  %v1057_v13 = vmul.f32 %v1657_v9, %v1013_v61  ;;  %vm1062_vm4 = vweird.f32 %v1657_v9 }
 0x43d   : > { %v1055_v14 = vsel %vm1052_vm1, %v1054_v10, %v1050_v12  ;;  %v1036_v15 = vsel %vm1035_vm2, %v1655_v58, %v1032_v11  ;;  %vm1063_vm8 = vmor %vm1061_vm7, %vm1062_vm4 }
 0x43e   : > { %v1058_v16 = vsub.f32 1.0, %v1057_v13  ;;  %v1041_v18 = vsel %vm1038_vm3, %v1040_v17, %v1036_v15  ;;  %v1072_v35 = vmul.f32 %v2033_v19, %v1055_v14 }
 0x43f   : > { %v1071_v36 = vmul.f32 %v2035_v20, %v1041_v18 }
 0x440   : > { %v1059_v50 = vmul.f32 %v1657_v9, %v1058_v16  ;;  %1562 = vmatmul.msk.f32.vlgmr.msra.gmra.mxu2 %vm873_vm6, %v1072_v35 }
 0x441   : > { %1561 = vmatmul.msk.f32.vlgmr.msrb.gmra.mxu3 %vm873_vm6, %v1071_v36 }
 0x442   : > { %v1060_v22 = vadd.f32 %v1657_v9, %v1059_v50 }
 0x444   : > { %v1064_v24 = vsel %vm1063_vm8, %v1657_v9, %v1060_v22 }
 0x445   : > { %v1069_v25 = vsel %vm1066_vm9, %v1068_v23, %v1064_v24 }
 0x446   : > { %v1073_v26 = vmul.f32 %v2041_v27, %v1069_v25 }
 0x448   : > { %1563 = vmatmul.msk.f32.vlgmr.msrb.gmra.mxu1 %vm873_vm6, %v1073_v26 }
 0x4bb   : > { %v1094_v19 = vpop.f32.mrf.mxu2 }
 0x4bc   : > { %v1168_v20 = vrot.slane %v1094_v19, 4 }
 0x4c3   : > { %v1140_v29 = vpop.f32.mrf.mxu2 }
 0x4c4   : > { %v1117_v28 = vpop.f32.mrf.mxu3  ;;  %v1166_v31 = vrot.slane %v1140_v29, 4  ;;  %v1169_v32 = vsel %vm519_vm5, %v1140_v29, %v1168_v20 }
 0x4c5   : > { %v1180_v30 = vrot.slane %v1117_v28, 4  ;;  %v1163_v33 = vpop.f32.mrf.mxu1  ;;  %v1177_v34 = vperm.slane %v1169_v32, %v1912_v44  ;;  %v1294_v32 = vld [vmem:[%s2271_s5 + $0x8] sm:$0xff] }
 0x4c6   : > { %v1178_v37 = vrot.slane %v1163_v33, 4  ;;  %v1167_v38 = vsel %vm519_vm5, %v1166_v31, %v1094_v19  ;;  %v1296_v31 = vld [vmem:[%s2271_s5 + $0x18] sm:$0xff] }
 0x4c7   : > { %v1181_v41 = vsel %vm519_vm5, %v1163_v33, %v1180_v30  ;;  %v1173_v27 = vperm.slane %v1167_v38, %v1912_v44  ;;  %v1204_v42 = vrot.slane %v1177_v34, 4  ;;  %1316 = vmatpush.msrb.mxu2 %v1296_v31  ;;  %v1293_v33 = vld [vmem:[%s2271_s5] sm:$0xff] }
 0x4c8   : > { %v1179_v43 = vsel %vm519_vm5, %v1178_v37, %v1117_v28  ;;  %v1189_v46 = vperm.slane %v1181_v41, %v1912_v44 }
 0x4c9   : > { %v1185_v49 = vperm.slane %v1179_v43, %v1912_v44  ;;  %v1192_v52 = vrot.slane %v1173_v27, 4  ;;  %v1633_v43 = vld [vmem:[%s2272_s6] ss:$0 sm:$0xff] }
 0x4ca   : > { %v1202_v53 = vrot.slane %v1189_v46, 4  ;;  %v1205_v54 = vsel %vm519_vm5, %v1189_v46, %v1204_v42 }
 0x4cb   : > { %v1190_v55 = vrot.slane %v1185_v49, 4  ;;  %v1213_v56 = vperm.slane %v1205_v54, %v1919_v51  ;;  %v1193_v57 = vsel %vm519_vm5, %v1185_v49, %v1192_v52 }
 0x4cc   : > { %v1203_v58 = vsel %vm519_vm5, %v1202_v53, %v1177_v34  ;;  %v1201_v60 = vperm.slane %v1193_v57, %v1919_v51 }
 0x4cd   : > { %v1191_v59 = vsel %vm519_vm5, %v1190_v55, %v1173_v27  ;;  %v1209_v61 = vperm.slane %v1203_v58, %v1919_v51  ;;  %v1220_v62 = vrot.slane %v1213_v56, 4 }
 0x4ce   : > { %v1197_v63 = vperm.slane %v1191_v59, %v1919_v51  ;;  %v1216_v1 = vrot.slane %v1201_v60, 4  ;;  %v1360_v59 = vld [vmem:[%s2275_s9 + $0x18] sm:$0xff]  ;;  %v1358_v60 = vld [vmem:[%s2275_s9 + $0x8] sm:$0xff] }
 0x4cf   : > { %v1218_v2 = vrot.slane %v1209_v61, 4  ;;  %v1221_v3 = vsel %vm519_vm5, 0.0, %v1220_v62  ;;  %v1233_v39 = vsel %vm519_vm5, %v1220_v62, %v1209_v61  ;;  %1380 = vmatpush.msra.mxu3 %v1360_v59  ;;  %v1357_v61 = vld [vmem:[%s2275_s9] sm:$0xff] }
 0x4d0   : > { %v1214_v4 = vrot.slane %v1197_v63, 4  ;;  %v1237_v5 = vperm.slane %v1233_v39, %v1912_v44  ;;  %v1238_v6 = vrot.slane %v1221_v3, 4  ;;  %v1217_v7 = vsel %vm519_vm5, 0.0, %v1216_v1 }
 0x4d1   : > { %v1219_v45 = vsel %vm519_vm5, 0.0, %v1218_v2  ;;  %v1222_v48 = vsel %vm519_vm5, %v1216_v1, %v1197_v63  ;;  %v1227_v47 = vrot.slane %v1217_v7, 4  ;;  %v1634_v7 = vld [vmem:[%s2273_s7] ss:$0 sm:$0xff] }
 0x4d2   : > { %v1215_v9 = vsel %vm519_vm5, 0.0, %v1214_v4  ;;  %v1226_v10 = vperm.slane %v1222_v48, %v1912_v44  ;;  %v1239_v11 = vsel %vm519_vm5, %v1238_v6, %v1219_v45  ;;  %v1258_v17 = vrot.slane %v1237_v5, 4 }
 0x4d3   : > { %v1243_v12 = vperm.slane %v1239_v11, %v1912_v44  ;;  %v1228_v13 = vsel %vm519_vm5, %v1227_v47, %v1215_v9  ;;  %v1442_v11 = vld [vmem:[%s2277_s11 + $0x70] sm:$0xff] }
 0x4d4   : > { %v1246_v14 = vrot.slane %v1226_v10, 4  ;;  %v1232_v15 = vperm.slane %v1228_v13, %v1912_v44  ;;  %v1439_v13 = vld [vmem:[%s2277_s11 + $0x58] sm:$0xff] }
 0x4d5   : > { %v1259_v16 = vsel %vm519_vm5, %v1243_v12, %v1258_v17  ;;  %v1256_v18 = vrot.slane %v1243_v12, 4  ;;  %v1441_v12 = vld [vmem:[%s2277_s11 + $0x68] sm:$0xff]  ;;  %v1440_v17 = vld [vmem:[%s2277_s11 + $0x60] sm:$0xff] }
 0x4d6   : > { %v1267_v35 = vperm.slane %v1259_v16, %v1919_v51  ;;  %v1247_v40 = vsel %vm519_vm5, %v1232_v15, %v1246_v14  ;;  %v1244_v36 = vrot.slane %v1232_v15, 4  ;;  %v1636_v14 = vld [vmem:[%s2276_s10] ss:$0 sm:$0xff]  ;;  %v1438_v15 = vld [vmem:[%s2277_s11 + $0x50] sm:$0xff] }
 0x4d7   : > { %v1257_v50 = vsel %vm519_vm5, %v1256_v18, %v1237_v5  ;;  %v1255_v21 = vperm.slane %v1247_v40, %v1919_v51  ;;  %v1437_v18 = vld [vmem:[%s2277_s11 + $0x48] sm:$0xff]  ;;  %v1436_v40 = vld [vmem:[%s2277_s11 + $0x40] sm:$0xff] }
 0x4d8   : > { %v1272_v22 = vrot.slane %v1267_v35, 4  ;;  %v1263_v23 = vperm.slane %v1257_v50, %v1919_v51  ;;  %v1245_v24 = vsel %vm519_vm5, %v1244_v36, %v1226_v10  ;;  %v1443_v10 = vld [vmem:[%s2277_s11 + $0x78] sm:$0xff] }
 0x4d9   : > { %v1251_v44 = vperm.slane %v1245_v24, %v1919_v51  ;;  %v1274_v29 = vrot.slane %v1255_v21, 4  ;;  %v1295_v51 = vld [vmem:[%s2271_s5 + $0x10] sm:$0xff]  ;;  %1448 = vmatpush.msra.mxu0 %v1443_v10  ;;  %v1435_v50 = vld [vmem:[%s2277_s11 + $0x38] sm:$0xff]  ;;  %v1433_v24 = vld [vmem:[%s2277_s11 + $0x28] sm:$0xff] }
 0x4da   : > { %v1273_v25 = vsel %vm519_vm5, %v1272_v22, %v1255_v21  ;;  %v1268_v26 = vrot.slane %v1263_v23, 4  ;;  %1317 = vmatpush.msrb.mxu2 %v1295_v51  ;;  %v1434_v22 = vld [vmem:[%s2277_s11 + $0x30] sm:$0xff] }
 0x4db   : > { %1281 = vrot.lane.b32.xlu0 %v1273_v25, %s1736_s20  ;;  %v1270_v19 = vrot.slane %v1251_v44, 4  ;;  %v1275_v30 = vsel %vm519_vm5, %v1267_v35, %v1274_v29  ;;  %1449 = vmatpush.msra.mxu0 %v1442_v11 }
 0x4dc   : > { %v1269_v20 = vsel %vm519_vm5, %v1268_v26, %v1251_v44  ;;  %1318 = vmatpush.msrb.mxu2 %v1294_v32  ;;  %v1432_v44 = vld [vmem:[%s2277_s11 + $0x20] sm:$0xff]  ;;  %v1431_v26 = vld [vmem:[%s2277_s11 + $0x18] sm:$0xff] }
 0x4dd   : > { %v1271_v28 = vsel %vm519_vm5, %v1263_v23, %v1270_v19  ;;  %vm1289_vm5 = vcmask 130048   ;;  %1450 = vmatpush.msra.mxu0 %v1441_v12  ;;  %v1430_v19 = vld [vmem:[%s2277_s11 + $0x10] sm:$0xff] }
 0x4de   : > { %1277 = vrot.lane.b32.xlu2 %v1271_v28, %s1737_s21  ;;  %1319 = vmatpush.msrb.mxu2 %v1293_v33 }
 0x4df   : > { %1451 = vmatpush.msra.mxu0 %v1440_v17 }
 0x4e1   : > { %1452 = vmatpush.msra.mxu0 %v1439_v13 }
 0x4e3   : > { %1453 = vmatpush.msra.mxu0 %v1438_v15 }
 0x4e5   : > { %1454 = vmatpush.msra.mxu0 %v1437_v18 }
 0x4e6   : > { %1285 = vrot.lane.b32.xlu2 %v1275_v30, %s1738_s22  ;;  %v1428_v30 = vld [vmem:[%s2277_s11] sm:$0xff]  ;;  %s429_s22 = sand.u32 1, %s1718_s26  }
 0x4e7   : > { %1455 = vmatpush.msra.mxu0 %v1436_v40  ;;  %s1549_s23 = sshll.u32 %s429_s22, 3  ;;  %s1471_s29 = scalar_lea.sflag [#allocation3], %s429_s22 }
 0x4e8   : > { %s431_s20 = scalar_lea.vmem [#allocation2], %s1549_s23  ;;  %s1684_s23 = scalar_lea.hbm %s2279_s13, 16 }
 0x4e9   : > { %1456 = vmatpush.msra.mxu0 %v1435_v50  ;;  %s1483_s21 = sshll.u32 %s431_s20, 4  ;;  %p1686_p1 = scmp.lt.s32.totalorder %s1684_s23, %s1680_s1  ;;  %s1484_s21 = int_to_ptr.vmem [resolvable:$true] %s1483_s21 }
 0x4eb   : > { %1457 = vmatpush.msra.mxu0 %v1434_v22  ;;  %p1687_p2 = por %p1686_p1, %p1685_p0 }
 0x4ed   : > { %1458 = vmatpush.msra.mxu0 %v1433_v24  ;;  %p1688_p3 = pnand %p1687_p2, %p1683_p13 }
 0x4ef   : > { %1459 = vmatpush.msra.mxu0 %v1432_v44 }
 0x4f1   : > { %1460 = vmatpush.msra.mxu0 %v1431_v26 }
 0x4f3   : > { %1461 = vmatpush.msra.mxu0 %v1430_v19 }
 0x538   : > { %v1278_v34 = vpop.permute.xlu2 %1277 }
 0x539   : > { %v1288_v37 = vsel %vm873_vm6, %v1269_v20, %v1278_v34  ;;  %v1429_v20 = vld [vmem:[%s2277_s11 + $0x8] sm:$0xff] }
 0x53a   : > { %1462 = vmatpush.msra.mxu0 %v1429_v20 }
 0x53c   : > { %1463 = vmatpush.msra.mxu0 %v1428_v30 }
 0x540   : > { %v1286_v41 = vpop.permute.xlu2 %1285 }
 0x54d   : > { %v1282_v38 = vpop.permute.xlu0 %1281 }
 0x54e   : > { %v1290_v27 = vsel %vm1289_vm5, %v1288_v37, %v1282_v38 }
 0x54f   : > { %v1292_v42 = vsel %vm1291_vm10, %v1290_v27, %v1286_v41 }
 0x550   : > { %1564 = vmatmul.msk.f32.vlgmr.msrb.gmra.mxu2 %vm439_vm0, %v1292_v42 }
 0x5d3   : > { %v1321_v46 = vpop.f32.mrf.mxu2 }
 0x5d4   : > { %v1322_v49 = vadd.f32 %v1633_v43, %v1321_v46 }
 0x5d6   : > { %v2151_v52 = vadd.f32 %v1322_v49, %v1862_v0  ;;  %v1359_v0 = vld [vmem:[%s2275_s9 + $0x10] sm:$0xff] }
 0x5d7   : > { %1381 = vmatpush.msra.mxu3 %v1359_v0 }
 0x5d8   : > { %v1327_v53 = vsel %vm439_vm0, %v2151_v52, 0.0 }
 0x5d9   : > { %1328 = vadd.xlane.f32.xlu2 %v1327_v53  ;;  %1382 = vmatpush.msra.mxu3 %v1358_v60 }
 0x5db   : > { %1383 = vmatpush.msra.mxu3 %v1357_v61 }
 0x64c   : > { %v1329_v54 = vpop.xlane.xlu2 %1328 }
 0x64d   : > { %v1330_v55 = vmul.f32 %v1329_v54, %v1866_v8 }
 0x64f   : > { %v1331_v56 = vsub.f32 %v2151_v52, %v1330_v55 }
 0x651   : > { %v1332_v57 = vmul.f32 %v1331_v56, %v1331_v56 }
 0x653   : > { %v1333_v58 = vsel %vm439_vm0, %v1332_v57, 0.0 }
 0x654   : > { %1334 = vadd.xlane.f32.xlu0 %v1333_v58 }
 0x6c7   : > { %v1335_v62 = vpop.xlane.xlu0 %1334 }
 0x6c8   : > { %v1336_v63 = vmul.f32 %v1335_v62, %v1866_v8  ;;  %v1635_v8 = vld [vmem:[%s2274_s8] ss:$0 sm:$0xff] }
 0x6ca   : > { %v1337_v1 = vadd.f32 1e-05, %v1336_v63 }
 0x6cc   : > { %1658 = vrsqrt.f32 %v1337_v1  ;;  %vm1344_vm11 = vweird.f32 %v1337_v1 }
 0x6d2   : > { %v1659_v2 = vpop.eup %1658 }
 0x6d3   : > { %v1339_v3 = vmul.f32 %v1659_v2, %v1337_v1  ;;  %vm1345_vm6 = vweird.f32 %v1659_v2 }
 0x6d4   : > { %vm1346_vm12 = vmor %vm1344_vm11, %vm1345_vm6 }
 0x6d5   : > { %v1340_v39 = vmul.f32 %v1659_v2, %v1339_v3 }
 0x6d7   : > { %v1341_v4 = vmul.f32 0.5, %v1340_v39  ;;  %v1637_v39 = vld [vmem:[%s2278_s12] ss:$0 sm:$0xff] }
 0x6d9   : > { %v1342_v5 = vsub.f32 1.5, %v1341_v4 }
 0x6db   : > { %v1343_v6 = vmul.f32 %v1659_v2, %v1342_v5 }
 0x6dd   : > { %v1347_v45 = vsel %vm1346_vm12, %v1659_v2, %v1343_v6 }
 0x6de   : > { %v1348_v48 = vmul.f32 %v1347_v45, %v1331_v56 }
 0x6e0   : > { %v1352_v47 = vmul.f32 %v1634_v7, %v1348_v48 }
 0x6e2   : > { %v1356_v9 = vadd.f32 %v1635_v8, %v1352_v47 }
 0x6e4   : > { %1565 = vmatmul.msk.f32.vlgmr.msra.gmra.mxu3 %vm439_vm0, %v1356_v9 }
 0x767   : > { %v1385_v16 = vpop.f32.mrf.mxu3 }
 0x768   : > { %v1386_v35 = vadd.f32 %v1636_v14, %v1385_v16 }
 0x76a   : > { %v1389_v36 = vmul.f32 0.70710677, %v1386_v35  ;;  %v1388_v1 = vmul.f32 0.5, %v1386_v35 }
 0x76c   : > { %v1390_v21 = vand.u32 2147483647, %v1389_v36  ;;  %vm1423_vm2 = vcmp.ge.f32.partialorder %v1389_v36, 0.0 }
 0x76e   : > { %v1391_v23 = vmul.f32 0.3275911, %v1390_v21  ;;  %v1417_v41 = vsub.f32 0.0, %v1390_v21 }
 0x770   : > { %v1392_v25 = vadd.f32 1.0, %v1391_v23  ;;  %v1418_v46 = vmul.f32 %v1417_v41, %v1390_v21 }
 0x772   : > { %1660 = vrcp.f32 %v1392_v25  ;;  %v1404_v51 = vand.u32 2147483648, %v1392_v25  ;;  %v1402_v33 = vand.u32 2147483647, %v1392_v25  ;;  %vm1398_vm14 = vweird.f32 %v1392_v25 }
 0x773   : > { %v1419_v54 = vmul.f32 1.442695, %v1418_v46 }
 0x774   : > { %v1405_v37 = vor.u32 1.1754944e-38, %v1404_v51  ;;  %vm1403_vm1 = vcmp.eq.f32.partialorder %v1402_v33, 8.507059e+37 }
 0x775   : > { %1662 = vpow2.f32 %v1419_v54 }
 0x778   : > { %v1661_v28 = vpop.eup %1660 }
 0x779   : > { %v1394_v29 = vmul.f32 %v1661_v28, %v1392_v25  ;;  %vm1399_vm13 = vweird.f32 %v1661_v28 }
 0x77a   : > { %vm1400_vm15 = vmor %vm1398_vm14, %vm1399_vm13 }
 0x77b   : > { %v1395_v31 = vsub.f32 1.0, %v1394_v29  ;;  %v1663_v0 = vpop.eup %1662 }
 0x77d   : > { %v1396_v32 = vmul.f32 %v1661_v28, %v1395_v31 }
 0x77f   : > { %v1397_v34 = vadd.f32 %v1661_v28, %v1396_v32 }
 0x781   : > { %v1401_v38 = vsel %vm1400_vm15, %v1661_v28, %v1397_v34 }
 0x782   : > { %v1406_v27 = vsel %vm1403_vm1, %v1405_v37, %v1401_v38 }
 0x783   : > { %v1408_v42 = vmul.f32 1.0614054, %v1406_v27 }
 0x785   : > { %v1409_v43 = vadd.f32 -1.4531521, %v1408_v42 }
 0x787   : > { %v1410_v49 = vmul.f32 %v1409_v43, %v1406_v27 }
 0x789   : > { %v1411_v53 = vadd.f32 1.4214138, %v1410_v49 }
 0x78b   : > { %v1412_v55 = vmul.f32 %v1411_v53, %v1406_v27 }
 0x78d   : > { %v1413_v56 = vadd.f32 -0.28449672, %v1412_v55 }
 0x78f   : > { %v1414_v57 = vmul.f32 %v1413_v56, %v1406_v27 }
 0x791   : > { %v1415_v58 = vadd.f32 0.2548296, %v1414_v57 }
 0x793   : > { %v1416_v59 = vmul.f32 %v1415_v58, %v1406_v27 }
 0x795   : > { %v1421_v60 = vmul.f32 %v1663_v0, %v1416_v59 }
 0x797   : > { %v1422_v61 = vsub.f32 1.0, %v1421_v60 }
 0x799   : > { %v1424_v62 = vsub.f32 0.0, %v1422_v61 }
 0x79b   : > { %v1425_v63 = vsel %vm1423_vm2, %v1422_v61, %v1424_v62 }
 0x79c   : > { %v1426_v2 = vadd.f32 1.0, %v1425_v63 }
 0x79e   : > { %v1427_v3 = vmul.f32 %v1426_v2, %v1388_v1 }
 0x7a0   : > { %1464 = vmatmul.f32.vlgmr.msra.gmra.mxu0 %v1427_v3 }
 0x81d   : > { %v1465_v4 = vpop.f32.mrf.mxu0 }
 0x81e   : > { %v1466_v5 = vadd.f32 %v1637_v39, %v1465_v4 }
 0x820   : > { %v1468_v6 = vadd.f32 %v1466_v5, %v2151_v52 }
 0x822   : > { %1469 = vst.msk [vmem:[%s431_s20] sm:$0xff] %vm439_vm0, %v1468_v6 }
 0x823   : > { %1691 = shalt.err (!%p1688_p3)
}
 0x824   : > { %1570 = dma.vmem_to_hbm [thread:$0]  (%p1847_p5), %s1484_s21, 128, %s1486_s2, %s1471_s29  }
 0x825 PF: > { %p1576_p4 = scmp.ge.s32.totalorder %s1726_s28, 2  ;;  %s1497_s22 = sand.u32 1, %s1714_s25  }
 0x826   : > { %s1498_s16 = scalar_lea.sflag [#allocation3], %s1497_s22 }
 0x827   : > { %p1573_p7 = pnand %p1576_p4, %p1851_p6 }
 0x829   : > { %p1574_p8 = pneg %p1573_p7 }
 0x82b   : > { %1709 = dma.done.wait (%p1574_p8), %s1498_s16, 128  }
 0x82c   : > { %1711 = vsyncadd (%p1574_p8), %s1498_s16, 4294967168  ;;  %p23_p9 = scmp.ge.s32.totalorder %s1834_s14, 4   ;;  %s2290_s25 = smov %s1718_s26 }
 0x82d   : > { %s2291_s26 = smov %s1722_s27  ;;  %s2292_s27 = smov %s1845_s17 }
 0x82e   : > { %s2293_s28 = smov %s1834_s14  ;;  %25 = sbr.rel (!%p23_p9) target bundleno = 8 (0x8), region = 107 }
 0x833   :  { %1504 = vsyncpa [#allocation3], 1 }
 0x834   :  { %1506 = vsyncpa [#allocation3 + $0x1], 1 }

// kernel: tpu_custom_call.1
= control target key start
LH: loop header
LB: loop body
LE: loop exit
PB: predicated region body
PF: predicated region fallthrough
CT: control target
= control target key end

     0   :  { %s1608_s0 = inlined_call_operand.vmem [shape: f32[2,8,32], index: 0, kind: input, shape index: {}]   ;;  %s1609_s1 = inlined_call_operand.vmem [shape: f32[1,32], index: 1, kind: input, shape index: {}]   ;;  %s1610_s2 = inlined_call_operand.vmem [shape: f32[1,32], index: 2, kind: input, shape index: {}]   ;;  %s1611_s3 = inlined_call_operand.vmem [shape: f32[32,96], index: 3, kind: input, shape index: {}]   ;;  %s1612_s4 = inlined_call_operand.vmem [shape: f32[1,96], index: 4, kind: input, shape index: {}]   ;;  %s1613_s5 = inlined_call_operand.vmem [shape: f32[32,32], index: 5, kind: input, shape index: {}]   ;;  %s1614_s6 = inlined_call_operand.vmem [shape: f32[1,32], index: 6, kind: input, shape index: {}]   ;;  %s1615_s7 = inlined_call_operand.vmem [shape: f32[1,32], index: 7, kind: input, shape index: {}]   ;;  %s1616_s8 = inlined_call_operand.vmem [shape: f32[1,32], index: 8, kind: input, shape index: {}]   ;;  %s1617_s9 = inlined_call_operand.vmem [shape: f32[32,128], index: 9, kind: input, shape index: {}]   ;;  %s1618_s10 = inlined_call_operand.vmem [shape: f32[1,128], index: 10, kind: input, shape index: {}]   ;;  %s1619_s11 = inlined_call_operand.vmem [shape: f32[128,32], index: 11, kind: input, shape index: {}]   ;;  %s1620_s12 = inlined_call_operand.vmem [shape: f32[1,32], index: 12, kind: input, shape index: {}]   ;;  %s1621_s13 = inlined_call_operand.hbm [shape: f32[2,8,32], index: 13, kind: output, shape index: {}]  }
   0x1   :  { %1622 = sst [smem:[#allocation5_spill]] %s1608_s0 }
   0x2   :  { %1623 = sst [smem:[#allocation6_spill]] %s1609_s1 }
   0x3   :  { %1624 = sst [smem:[#allocation7_spill]] %s1610_s2 }
   0x4   :  { %1625 = sst [smem:[#allocation8_spill]] %s1611_s3 }
   0x5   :  { %18 = vsyncpa [#allocation3], 0 }
   0x6   :  { %20 = vsyncpa [#allocation3 + $0x1], 0  ;;  %s1344_s25 = smov 0   ;;  %s1346_s26 = smov 0  }
   0x7   :  { %s1348_s27 = smov 0   ;;  %s1350_s28 = smov 0  }
   0x8 LB: > { %s1365_s29 = sadd.s32 4294967295, %s1263_s28   ;;  %s1089_s30 = sadd.s32 4294967294, %s1263_s28   ;;  %s1263_s28 = sphi %s1350_s28, %s1637_s28   ;;  %s1259_s27 = sphi %s1348_s27, %s1636_s27   ;;  %s1255_s26 = sphi %s1346_s26, %s1635_s26   ;;  %s1251_s25 = sphi %s1344_s25, %s1634_s25  }
   0x9   : > { %s1369_s14 = sadd.s32 1, %s1263_s28   ;;  %s311_s15 = sadd.s32 1, %s1259_s27 }
   0xa   : > { %s308_s16 = ssub.s32 %s1263_s28, %s1369_s14  ;;  %p321_p0 = scmp.ne.s32.totalorder %s1259_s27, %s1255_s26 }
   0xb   : > { %p309_p1 = scmp.eq.s32.totalorder %s308_s16, 0  ;;  %p322_p2 = scmp.eq.s32.totalorder %s1365_s29, 1 }
   0xc   : > { %p327_p3 = scmp.ne.s32.totalorder %s1255_s26, %s1251_s25  ;;  %p328_p4 = scmp.eq.s32.totalorder %s1089_s30, 1 }
   0xd   : > { %s1380_s17 = scalar_select %p309_p1, %s1259_s27, %s311_s15  }
   0xe   : > { %p1382_p5 = por %p322_p2, %p321_p0  ;;  %p1386_p6 = por %p328_p4, %p327_p3 }
   0xf   : > { %p1092_p7 = scmp.ge.s32.totalorder %s1263_s28, 1  ;;  %p389_p8 = scmp.lt.s32.totalorder %s1263_s28, 3 }
  0x11   : > { %p390_p9 = pnand %p1092_p7, %p389_p8 }
  0x12   : > { %p432_p10 = scmp.lt.s32.totalorder (!%p390_p9), %s1365_s29, 1  ;;  %s1628_s0 = sld [smem:[#allocation5_spill]] (!%p390_p9) }
  0x13   : > { %393 = sbr.rel (%p390_p9) target bundleno = 2045 (0x7fd), region = 72  ;;  %s1629_s3 = sld [smem:[#allocation8_spill]] (!%p390_p9) }
  0x14   : > { %s1630_s1 = sld [smem:[#allocation6_spill]] (!%p390_p9)  ;;  %s1266_s23 = smov (!%p390_p9), 104  }
  0x15   : > { %s1631_s2 = sld [smem:[#allocation7_spill]] (!%p390_p9)  ;;  %s1268_s30 = smov (!%p390_p9), 96  }
  0x16   : > { %s1269_s15 = smov (!%p390_p9), 112   ;;  %s1270_s16 = smov (!%p390_p9), 64  }
  0x17   : > { %s1273_s22 = smov (!%p390_p9), 8  }
  0x18   : > { %s433_s20 = scalar_select %p432_p10, %s1365_s29, 1  ;;  %vm439_vm0 = vcmask 261120   ;;  %v1265_v2 = vmov 32.0   ;;  %v1169_v33 = vld [vmem:[%s1612_s4] ss:$0 sm:$0xff]  ;;  %vm517_vm5 = vcmask 64512  }
  0x19   : > { %1175 = vrcp.f32 %v1265_v2  ;;  %v480_v14 = vld [vmem:[%s1629_s3 + $0x18] sm:$0xff]  ;;  %v479_v15 = vld [vmem:[%s1629_s3 + $0x10] sm:$0xff]  ;;  %v478_v16 = vld [vmem:[%s1629_s3 + $0x8] sm:$0xff] }
  0x1a   : > { %s1094_s21 = sshll.u32 %s433_s20, 3  ;;  %500 = vmatpush.msra.mxu1 %v480_v14  ;;  %v477_v17 = vld [vmem:[%s1629_s3] sm:$0xff]  ;;  %s1271_s20 = smov 24  }
  0x1b   : > { %s435_s24 = scalar_lea.vmem %s1628_s0, %s1094_s21  ;;  %v1167_v27 = vld [vmem:[%s1630_s1] ss:$0 sm:$0xff]  ;;  %s1272_s21 = smov 16  }
  0x1c   : > { %v1397_v0 = vld [vmem:[%s435_s24] sm:$0xff]  ;;  %501 = vmatpush.msra.mxu1 %v479_v15  ;;  %s1267_s24 = smov 120   ;;  %s1111_s0 = sshll.u32 %s1365_s29, 3 }
  0x1d   : > { %v440_v1 = vsel %vm439_vm0, %v1397_v0, 0.0  ;;  %v1168_v30 = vld [vmem:[%s1631_s2] ss:$0 sm:$0xff] }
  0x1e   : > { %441 = vadd.xlane.f32.xlu0 %v440_v1  ;;  %502 = vmatpush.msra.mxu1 %v478_v16 }
  0x1f   : > { %v1176_v3 = vpop.eup %1175 }
  0x20   : > { %v444_v4 = vmul.f32 32.0, %v1176_v3  ;;  %vm448_vm1 = vweird.f32 %v1176_v3  ;;  %503 = vmatpush.msra.mxu1 %v477_v17 }
  0x22   : > { %v445_v5 = vsub.f32 1.0, %v444_v4 }
  0x24   : > { %v446_v6 = vmul.f32 %v1176_v3, %v445_v5 }
  0x26   : > { %v447_v7 = vadd.f32 %v1176_v3, %v446_v6 }
  0x28   : > { %v1401_v8 = vsel %vm448_vm1, %v1176_v3, %v447_v7 }
  0x91   : > { %v442_v9 = vpop.xlane.xlu0 %441 }
  0x92   : > { %v450_v10 = vmul.f32 %v1401_v8, %v442_v9 }
  0x94   : > { %v451_v11 = vsub.f32 %v1397_v0, %v450_v10 }
  0x96   : > { %v452_v12 = vmul.f32 %v451_v11, %v451_v11 }
  0x98   : > { %v453_v13 = vsel %vm439_vm0, %v452_v12, 0.0 }
  0x99   : > { %454 = vadd.xlane.f32.xlu0 %v453_v13 }
 0x10c   : > { %v455_v18 = vpop.xlane.xlu0 %454 }
 0x10d   : > { %v456_v19 = vmul.f32 %v455_v18, %v1401_v8 }
 0x10f   : > { %v457_v20 = vadd.f32 1e-05, %v456_v19 }
 0x111   : > { %1177 = vrsqrt.f32 %v457_v20  ;;  %vm464_vm3 = vweird.f32 %v457_v20 }
 0x117   : > { %v1178_v21 = vpop.eup %1177 }
 0x118   : > { %v459_v22 = vmul.f32 %v1178_v21, %v457_v20  ;;  %vm465_vm2 = vweird.f32 %v1178_v21 }
 0x119   : > { %vm466_vm4 = vmor %vm464_vm3, %vm465_vm2 }
 0x11a   : > { %v460_v23 = vmul.f32 %v1178_v21, %v459_v22 }
 0x11c   : > { %v461_v24 = vmul.f32 0.5, %v460_v23 }
 0x11e   : > { %v462_v25 = vsub.f32 1.5, %v461_v24 }
 0x120   : > { %v463_v26 = vmul.f32 %v1178_v21, %v462_v25 }
 0x122   : > { %v467_v28 = vsel %vm466_vm4, %v1178_v21, %v463_v26 }
 0x123   : > { %v468_v29 = vmul.f32 %v467_v28, %v451_v11 }
 0x125   : > { %v472_v31 = vmul.f32 %v1167_v27, %v468_v29 }
 0x127   : > { %v476_v32 = vadd.f32 %v1168_v30, %v472_v31 }
 0x129   : > { %1095 = vmatmul.msk.f32.vlgmr.msra.gmra.mxu1 %vm439_vm0, %v476_v32 }
 0x1a6   : > { %v505_v34 = vpop.f32.mrf.mxu1 }
 0x1a7   : > { %v1429_v35 = vadd.f32 %v1169_v33, %v505_v34 }
 0x1a9   : > { %513 = vrot.lane.b32.xlu2 %v1429_v35, %s1266_s23  ;;  %509 = vrot.lane.b32.xlu1 %v1429_v35, %s1267_s24  ;;  %s1025_s24 = scalar_lea.hbm %s1621_s13, %s1111_s0 }
 0x1aa   : > { %s1029_s2 = sshll.u32 %s1025_s24, 4  ;;  %s1030_s2 = int_to_ptr.hbm [resolvable:$true] %s1029_s2 }
 0x1ab   : > { %s1215_s3 = sshra.s32 %s1030_s2, 4  ;;  %s1216_s3 = int_to_ptr.hbm [resolvable:$true] %s1215_s3 }
 0x1ac   : > { %p1222_p0 = scmp.lt.s32.totalorder %s1216_s3, %s1621_s13 }
 0x1b1   : > { %515 = vrot.lane.b32.xlu2 %v1429_v35, %s1268_s30  ;;  %511 = vrot.lane.b32.xlu1 %v1429_v35, %s1269_s15 }
 0x203   : > { %v514_v36 = vpop.permute.xlu2 %513 }
 0x204   : > { %594 = vrot.lane.b32.xlu2 %v514_v36, %s1268_s30 }
 0x20b   : > { %v516_v37 = vpop.permute.xlu2 %515 }
 0x20c   : > { %1096 = vmatpush.xpose.msk.msrb.mxu1 %vm517_vm5, %v516_v37 }
 0x20f   : > { %1097 = vmatmul.msk.f32.vlgmr.msrb.gmra.mxu1 %vm517_vm5, %v1429_v35 }
 0x21b   : > { %v510_v38 = vpop.permute.xlu1 %509 }
 0x21c   : > { %542 = vrot.lane.b32.xlu0 %v510_v38, %s1268_s30 }
 0x223   : > { %v512_v39 = vpop.permute.xlu1 %511 }
 0x224   : > { %568 = vrot.lane.b32.xlu1 %v512_v39, %s1268_s30  ;;  %v1162_v9 = vpack.i.bf16 %v512_v39, %v510_v38 }
 0x25e   : > { %v595_v40 = vpop.permute.xlu2 %594 }
 0x25f   : > { %1102 = vmatpush.xpose.msk.msra.mxu1 %vm517_vm5, %v595_v40 }
 0x262   : > { %1103 = vmatmul.msk.f32.vlgmr.msra.gmra.mxu1 %vm517_vm5, %v514_v36 }
 0x28c   : > { %v539_v41 = vpop.f32.mrf.mxu1 }
 0x28d   : > { %v620_v42 = vsel %vm517_vm5, %v539_v41, -inf }
 0x28e   : > { %v543_v43 = vpop.permute.xlu0 %542  ;;  %621 = vmax.xlane.f32.xlu1 %v620_v42 }
 0x28f   : > { %1098 = vmatpush.xpose.msk.msra.mxu2 %vm517_vm5, %v543_v43 }
 0x292   : > { %1099 = vmatmul.msk.f32.vlgmr.msra.gmra.mxu2 %vm517_vm5, %v510_v38 }
 0x296   : > { %v569_v44 = vpop.permute.xlu1 %568 }
 0x297   : > { %1100 = vmatpush.xpose.msk.msra.mxu3 %vm517_vm5, %v569_v44 }
 0x29a   : > { %1101 = vmatmul.msk.f32.vlgmr.msra.gmra.mxu3 %vm517_vm5, %v512_v39 }
 0x2df   : > { %v617_v52 = vpop.f32.mrf.mxu1 }
 0x2e0   : > { %v629_v54 = vsel %vm517_vm5, %v617_v52, -inf }
 0x301   : > { %v622_v45 = vpop.xlane.xlu1 %621 }
 0x302   : > { %v632_v46 = vsub.f32 %v539_v41, %v622_v45 }
 0x304   : > { %v636_v47 = vmul.f32 1.442695, %v632_v46 }
 0x306   : > { %1179 = vpow2.f32 %v636_v47 }
 0x30c   : > { %v1180_v48 = vpop.eup %1179 }
 0x30d   : > { %v644_v49 = vsel %vm517_vm5, %v1180_v48, 0.0 }
 0x30e   : > { %645 = vadd.xlane.f32.xlu1 %v644_v49  ;;  %v982_v49 = vld [vmem:[%s1619_s11 + $0x50] sm:$0xff] }
 0x315   : > { %v565_v50 = vpop.f32.mrf.mxu2 }
 0x316   : > { %v623_v51 = vsel %vm517_vm5, %v565_v50, -inf }
 0x317   : > { %624 = vmax.xlane.f32.xlu2 %v623_v51 }
 0x31d   : > { %v591_v53 = vpop.f32.mrf.mxu3 }
 0x31e   : > { %v626_v55 = vsel %vm517_vm5, %v591_v53, -inf }
 0x31f   : > { %630 = vmax.xlane.f32.xlu2 %v629_v54  ;;  %627 = vmax.xlane.f32.xlu0 %v626_v55 }
 0x381   : > { %v646_v10 = vpop.xlane.xlu1 %645 }
 0x382   : > { %v667_v16 = vand.u32 2147483648, %v646_v10  ;;  %vm661_vm7 = vweird.f32 %v646_v10  ;;  %v665_v17 = vand.u32 2147483647, %v646_v10 }
 0x384   : > { %v668_v20 = vor.u32 1.1754944e-38, %v667_v16  ;;  %vm666_vm9 = vcmp.eq.f32.partialorder %v665_v17, 8.507059e+37  ;;  %v1170_v16 = vld [vmem:[%s1614_s6] ss:$0 sm:$0xff] }
 0x38a   : > { %v625_v56 = vpop.xlane.xlu2 %624 }
 0x38b   : > { %v633_v57 = vsub.f32 %v565_v50, %v625_v56 }
 0x38d   : > { %v638_v58 = vmul.f32 1.442695, %v633_v57 }
 0x38f   : > { %1181 = vpow2.f32 %v638_v58 }
 0x392   : > { %v631_v59 = vpop.xlane.xlu2 %630  ;;  %v628_v60 = vpop.xlane.xlu0 %627 }
 0x393   : > { %v635_v61 = vsub.f32 %v617_v52, %v631_v59  ;;  %v634_v62 = vsub.f32 %v591_v53, %v628_v60 }
 0x395   : > { %v1449_v63 = vpop.eup %1181  ;;  %v642_v1 = vmul.f32 1.442695, %v635_v61  ;;  %v640_v2 = vmul.f32 1.442695, %v634_v62 }
 0x396   : > { %v647_v3 = vsel %vm517_vm5, %v1449_v63, 0.0 }
 0x397   : > { %1183 = vpow2.f32 %v642_v1  ;;  %648 = vadd.xlane.f32.xlu2 %v647_v3 }
 0x398   : > { %1185 = vpow2.f32 %v640_v2 }
 0x399   : > { %1187 = vrcp.f32 %v646_v10 }
 0x39d   : > { %v1453_v4 = vpop.eup %1183 }
 0x39e   : > { %v1455_v5 = vpop.eup %1185  ;;  %v653_v6 = vsel %vm517_vm5, %v1453_v4, 0.0 }
 0x39f   : > { %654 = vadd.xlane.f32.xlu0 %v653_v6  ;;  %v650_v7 = vsel %vm517_vm5, %v1455_v5, 0.0  ;;  %v1188_v11 = vpop.eup %1187 }
 0x3a0   : > { %651 = vadd.xlane.f32.xlu1 %v650_v7  ;;  %v657_v12 = vmul.f32 %v1188_v11, %v646_v10  ;;  %vm662_vm6 = vweird.f32 %v1188_v11  ;;  %v838_v7 = vld [vmem:[%s1613_s5 + $0x8] sm:$0xff] }
 0x3a1   : > { %vm663_vm8 = vmor %vm661_vm7, %vm662_vm6 }
 0x3a2   : > { %v658_v13 = vsub.f32 1.0, %v657_v12 }
 0x3a4   : > { %v659_v14 = vmul.f32 %v1188_v11, %v658_v13 }
 0x3a6   : > { %v660_v15 = vadd.f32 %v1188_v11, %v659_v14 }
 0x3a8   : > { %v664_v19 = vsel %vm663_vm8, %v1188_v11, %v660_v15  ;;  %vm833_vm8 = vcmask 130048  }
 0x3a9   : > { %v669_v21 = vsel %vm666_vm9, %v668_v20, %v664_v19  ;;  %vm835_vm9 = vcmask 195584  }
 0x3aa   : > { %v712_v24 = vmul.f32 %v1180_v48, %v669_v21 }
 0x3af   : > { %716 = vrot.lane.b32.xlu2 %v1429_v35, %s1270_s16 }
 0x3b3   : > { %794 = vrot.lane.b32.xlu0 %v514_v36, %s1270_s16 }
 0x3b9   : > { %1163 = vrot.lane.b32.xlu1 %v1162_v9, %s1270_s16  ;;  %v837_v9 = vld [vmem:[%s1613_s5] sm:$0xff]  ;;  %s429_s16 = sand.u32 1, %s1255_s26  }
 0x3ba   : > { %s1015_s29 = scalar_lea.sflag [#allocation3], %s429_s16 }
 0x40a   : > { %v649_v18 = vpop.xlane.xlu2 %648 }
 0x40b   : > { %1189 = vrcp.f32 %v649_v18  ;;  %vm675_vm1 = vweird.f32 %v649_v18  ;;  %v681_v46 = vand.u32 2147483648, %v649_v18  ;;  %v679_v50 = vand.u32 2147483647, %v649_v18 }
 0x40d   : > { %v682_v55 = vor.u32 1.1754944e-38, %v681_v46  ;;  %vm680_vm6 = vcmp.eq.f32.partialorder %v679_v50, 8.507059e+37  ;;  %v984_v46 = vld [vmem:[%s1619_s11 + $0x60] sm:$0xff] }
 0x411   : > { %v1190_v26 = vpop.eup %1189 }
 0x412   : > { %v717_v22 = vpop.permute.xlu2 %716  ;;  %v655_v23 = vpop.xlane.xlu0 %654  ;;  %v671_v27 = vmul.f32 %v1190_v26, %v649_v18  ;;  %vm676_vm13 = vweird.f32 %v1190_v26 }
 0x413   : > { %1191 = vrcp.f32 %v655_v23  ;;  %v652_v25 = vpop.xlane.xlu1 %651  ;;  %737 = vmatpush.msrb.mxu2 %v717_v22  ;;  %v709_v34 = vand.u32 2147483648, %v655_v23  ;;  %v707_v37 = vand.u32 2147483647, %v655_v23  ;;  %vm703_vm11 = vweird.f32 %v655_v23  ;;  %vm1464_vm2 = vmor %vm675_vm1, %vm676_vm13 }
 0x414   : > { %1193 = vrcp.f32 %v652_v25  ;;  %1104 = vmatmul.msk.f32.vlgmr.msrb.gmra.mxu2 %vm517_vm5, %v712_v24  ;;  %v672_v31 = vsub.f32 1.0, %v671_v27  ;;  %v695_v47 = vand.u32 2147483648, %v652_v25  ;;  %vm689_vm3 = vweird.f32 %v652_v25  ;;  %v902_v27 = vld [vmem:[%s1617_s9 + $0x8] sm:$0xff] }
 0x415   : > { %v710_v41 = vor.u32 1.1754944e-38, %v709_v34  ;;  %vm708_vm14 = vcmp.eq.f32.partialorder %v707_v37, 8.507059e+37  ;;  %v693_v51 = vand.u32 2147483647, %v652_v25 }
 0x416   : > { %v673_v38 = vmul.f32 %v1190_v26, %v672_v31  ;;  %v696_v56 = vor.u32 1.1754944e-38, %v695_v47  ;;  %v983_v47 = vld [vmem:[%s1619_s11 + $0x58] sm:$0xff] }
 0x417   : > { %vm694_vm7 = vcmp.eq.f32.partialorder %v693_v51, 8.507059e+37  ;;  %v981_v51 = vld [vmem:[%s1619_s11 + $0x48] sm:$0xff] }
 0x418   : > { %v674_v43 = vadd.f32 %v1190_v26, %v673_v38  ;;  %v1171_v38 = vld [vmem:[%s1615_s7] ss:$0 sm:$0xff] }
 0x419   : > { %v1192_v28 = vpop.eup %1191 }
 0x41a   : > { %v1194_v29 = vpop.eup %1193  ;;  %v699_v30 = vmul.f32 %v1192_v28, %v655_v23  ;;  %vm704_vm10 = vweird.f32 %v1192_v28  ;;  %v678_v54 = vsel %vm1464_vm2, %v1190_v26, %v674_v43  ;;  %v904_v26 = vld [vmem:[%s1617_s9 + $0x18] sm:$0xff] }
 0x41b   : > { %v685_v32 = vmul.f32 %v1194_v29, %v652_v25  ;;  %vm705_vm12 = vmor %vm703_vm11, %vm704_vm10  ;;  %vm690_vm15 = vweird.f32 %v1194_v29  ;;  %v683_v58 = vsel %vm680_vm6, %v682_v55, %v678_v54  ;;  %v987_v43 = vld [vmem:[%s1619_s11 + $0x78] sm:$0xff] }
 0x41c   : > { %v700_v33 = vsub.f32 1.0, %v699_v30  ;;  %vm691_vm4 = vmor %vm689_vm3, %vm690_vm15  ;;  %v713_v62 = vmul.f32 %v1449_v63, %v683_v58  ;;  %v840_v63 = vld [vmem:[%s1613_s5 + $0x18] sm:$0xff]  ;;  %992 = vmatpush.msra.mxu0 %v987_v43 }
 0x41d   : > { %v686_v35 = vsub.f32 1.0, %v685_v32  ;;  %v979_v55 = vld [vmem:[%s1619_s11 + $0x38] sm:$0xff] }
 0x41e   : > { %v701_v36 = vmul.f32 %v1192_v28, %v700_v33 }
 0x41f   : > { %v687_v39 = vmul.f32 %v1194_v29, %v686_v35 }
 0x420   : > { %v702_v40 = vadd.f32 %v1192_v28, %v701_v36 }
 0x421   : > { %v688_v45 = vadd.f32 %v1194_v29, %v687_v39 }
 0x422   : > { %v706_v42 = vsel %vm705_vm12, %v1192_v28, %v702_v40  ;;  %v901_v28 = vld [vmem:[%s1617_s9] sm:$0xff] }
 0x423   : > { %v711_v44 = vsel %vm708_vm14, %v710_v41, %v706_v42  ;;  %v692_v53 = vsel %vm691_vm4, %v1194_v29, %v688_v45  ;;  %v985_v45 = vld [vmem:[%s1619_s11 + $0x68] sm:$0xff] }
 0x424   : > { %v715_v48 = vmul.f32 %v1453_v4, %v711_v44  ;;  %v697_v57 = vsel %vm694_vm7, %v696_v56, %v692_v53  ;;  %v986_v44 = vld [vmem:[%s1619_s11 + $0x70] sm:$0xff]  ;;  %v980_v53 = vld [vmem:[%s1619_s11 + $0x40] sm:$0xff] }
 0x425   : > { %v795_v52 = vpop.permute.xlu0 %794  ;;  %v714_v1 = vmul.f32 %v1455_v5, %v697_v57  ;;  %v839_v5 = vld [vmem:[%s1613_s5 + $0x10] sm:$0xff]  ;;  %993 = vmatpush.msra.mxu0 %v986_v44 }
 0x426   : > { %815 = vmatpush.msrb.mxu1 %v795_v52  ;;  %v978_v57 = vld [vmem:[%s1619_s11 + $0x30] sm:$0xff] }
 0x427   : > { %1107 = vmatmul.msk.f32.vlgmr.msrb.gmra.mxu1 %vm517_vm5, %v715_v48  ;;  %994 = vmatpush.msra.mxu0 %v985_v45  ;;  %v1173_v48 = vld [vmem:[%s1618_s10] ss:$0 sm:$0xff] }
 0x429   : > { %995 = vmatpush.msra.mxu0 %v984_v46 }
 0x42b   : > { %v1164_v59 = vpop.permute.xlu1 %1163  ;;  %996 = vmatpush.msra.mxu0 %v983_v47 }
 0x42c   : > { %v1166_v60 = vunpack.i.h.bf16 %v1164_v59  ;;  %v1165_v61 = vunpack.i.l.bf16 %v1164_v59  ;;  %v977_v59 = vld [vmem:[%s1619_s11 + $0x28] sm:$0xff] }
 0x42d   : > { %997 = vmatpush.msra.mxu0 %v982_v49 }
 0x42e   : > { %763 = vmatpush.msrb.mxu3 %v1165_v61  ;;  %789 = vmatpush.msra.mxu2 %v1166_v60  ;;  %v976_v61 = vld [vmem:[%s1619_s11 + $0x20] sm:$0xff] }
 0x42f   : > { %1105 = vmatmul.msk.f32.vlgmr.msrb.gmra.mxu3 %vm517_vm5, %v713_v62  ;;  %1106 = vmatmul.msk.f32.vlgmr.msra.gmra.mxu2 %vm517_vm5, %v714_v1  ;;  %v975_v62 = vld [vmem:[%s1619_s11 + $0x18] sm:$0xff]  ;;  %v974_v1 = vld [vmem:[%s1619_s11 + $0x10] sm:$0xff] }
 0x430   : > { %860 = vmatpush.msrb.mxu2 %v840_v63  ;;  %924 = vmatpush.msra.mxu3 %v904_v26 }
 0x431   : > { %998 = vmatpush.msra.mxu0 %v981_v51 }
 0x432   : > { %861 = vmatpush.msrb.mxu2 %v839_v5 }
 0x433   : > { %999 = vmatpush.msra.mxu0 %v980_v53 }
 0x434   : > { %862 = vmatpush.msrb.mxu2 %v838_v7 }
 0x435   : > { %1000 = vmatpush.msra.mxu0 %v979_v55 }
 0x436   : > { %863 = vmatpush.msrb.mxu2 %v837_v9 }
 0x437   : > { %1001 = vmatpush.msra.mxu0 %v978_v57 }
 0x439   : > { %1002 = vmatpush.msra.mxu0 %v977_v59 }
 0x43b   : > { %1003 = vmatpush.msra.mxu0 %v976_v61 }
 0x43d   : > { %1004 = vmatpush.msra.mxu0 %v975_v62 }
 0x43f   : > { %1005 = vmatpush.msra.mxu0 %v974_v1 }
 0x497   : > { %v739_v3 = vpop.f32.mrf.mxu2 }
 0x4a4   : > { %v817_v2 = vpop.f32.mrf.mxu1 }
 0x4a5   : > { %829 = vrot.lane.b32.xlu1 %v817_v2, %s1271_s20  ;;  %v973_v2 = vld [vmem:[%s1619_s11 + $0x8] sm:$0xff]  ;;  %s1093_s20 = sshll.u32 %s429_s16, 3 }
 0x4a6   : > { %1006 = vmatpush.msra.mxu0 %v973_v2  ;;  %s431_s30 = scalar_lea.vmem [#allocation2], %s1093_s20  ;;  %s1221_s20 = scalar_lea.hbm %s1621_s13, 16 }
 0x4a7   : > { %s1027_s15 = sshll.u32 %s431_s30, 4  ;;  %s1028_s15 = int_to_ptr.vmem [resolvable:$true] %s1027_s15 }
 0x4b2   : > { %v765_v4 = vpop.f32.mrf.mxu3  ;;  %v791_v6 = vpop.f32.mrf.mxu2 }
 0x4b3   : > { %825 = vrot.lane.b32.xlu0 %v791_v6, %s1272_s21  ;;  %821 = vrot.lane.b32.xlu2 %v765_v4, %s1273_s22  ;;  %v972_v6 = vld [vmem:[%s1619_s11] sm:$0xff]  ;;  %s1217_s21 = scalar_lea.hbm %s1216_s3, 8 }
 0x4b4   : > { %1007 = vmatpush.msra.mxu0 %v972_v6  ;;  %p1218_p11 = scmp.ne.s32.totalorder %s1216_s3, %s1217_s21  ;;  %p1223_p1 = scmp.lt.s32.totalorder %s1221_s20, %s1217_s21 }
 0x4b6   : > { %p1219_p12 = pnand %p1218_p11, %p1382_p5  ;;  %p1224_p2 = por %p1223_p1, %p1222_p0 }
 0x4b8   : > { %p1220_p13 = pneg %p1219_p12 }
 0x4ba   : > { %p1225_p3 = pnand %p1224_p2, %p1220_p13 }
 0x50d   : > { %v822_v10 = vpop.permute.xlu2 %821 }
 0x50e   : > { %v832_v11 = vsel %vm517_vm5, %v739_v3, %v822_v10 }
 0x517   : > { %v830_v13 = vpop.permute.xlu1 %829 }
 0x525   : > { %v826_v12 = vpop.permute.xlu0 %825 }
 0x526   : > { %v834_v14 = vsel %vm833_vm8, %v832_v11, %v826_v12 }
 0x527   : > { %v836_v15 = vsel %vm835_vm9, %v834_v14, %v830_v13 }
 0x528   : > { %1108 = vmatmul.msk.f32.vlgmr.msrb.gmra.mxu2 %vm439_vm0, %v836_v15 }
 0x5ab   : > { %v865_v17 = vpop.f32.mrf.mxu2 }
 0x5ac   : > { %v866_v18 = vadd.f32 %v1170_v16, %v865_v17 }
 0x5ae   : > { %v1493_v19 = vadd.f32 %v866_v18, %v1397_v0  ;;  %v903_v0 = vld [vmem:[%s1617_s9 + $0x10] sm:$0xff] }
 0x5af   : > { %925 = vmatpush.msra.mxu3 %v903_v0 }
 0x5b0   : > { %v871_v20 = vsel %vm439_vm0, %v1493_v19, 0.0 }
 0x5b1   : > { %872 = vadd.xlane.f32.xlu2 %v871_v20  ;;  %926 = vmatpush.msra.mxu3 %v902_v27 }
 0x5b3   : > { %927 = vmatpush.msra.mxu3 %v901_v28 }
 0x624   : > { %v873_v21 = vpop.xlane.xlu2 %872 }
 0x625   : > { %v874_v22 = vmul.f32 %v873_v21, %v1401_v8 }
 0x627   : > { %v875_v23 = vsub.f32 %v1493_v19, %v874_v22 }
 0x629   : > { %v876_v24 = vmul.f32 %v875_v23, %v875_v23 }
 0x62b   : > { %v877_v25 = vsel %vm439_vm0, %v876_v24, 0.0 }
 0x62c   : > { %878 = vadd.xlane.f32.xlu0 %v877_v25 }
 0x69f   : > { %v879_v29 = vpop.xlane.xlu0 %878 }
 0x6a0   : > { %v880_v30 = vmul.f32 %v879_v29, %v1401_v8  ;;  %v1172_v8 = vld [vmem:[%s1616_s8] ss:$0 sm:$0xff] }
 0x6a2   : > { %v881_v31 = vadd.f32 1e-05, %v880_v30 }
 0x6a4   : > { %1195 = vrsqrt.f32 %v881_v31  ;;  %vm888_vm10 = vweird.f32 %v881_v31 }
 0x6aa   : > { %v1196_v32 = vpop.eup %1195 }
 0x6ab   : > { %v883_v33 = vmul.f32 %v1196_v32, %v881_v31  ;;  %vm889_vm5 = vweird.f32 %v1196_v32 }
 0x6ac   : > { %vm890_vm11 = vmor %vm888_vm10, %vm889_vm5 }
 0x6ad   : > { %v884_v34 = vmul.f32 %v1196_v32, %v883_v33 }
 0x6af   : > { %v885_v35 = vmul.f32 0.5, %v884_v34  ;;  %v1174_v34 = vld [vmem:[%s1620_s12] ss:$0 sm:$0xff] }
 0x6b1   : > { %v886_v36 = vsub.f32 1.5, %v885_v35 }
 0x6b3   : > { %v887_v37 = vmul.f32 %v1196_v32, %v886_v36 }
 0x6b5   : > { %v891_v39 = vsel %vm890_vm11, %v1196_v32, %v887_v37 }
 0x6b6   : > { %v892_v40 = vmul.f32 %v891_v39, %v875_v23 }
 0x6b8   : > { %v896_v41 = vmul.f32 %v1171_v38, %v892_v40 }
 0x6ba   : > { %v900_v42 = vadd.f32 %v1172_v8, %v896_v41 }
 0x6bc   : > { %1109 = vmatmul.msk.f32.vlgmr.msra.gmra.mxu3 %vm439_vm0, %v900_v42 }
 0x73f   : > { %v929_v50 = vpop.f32.mrf.mxu3 }
 0x740   : > { %v930_v52 = vadd.f32 %v1173_v48, %v929_v50 }
 0x742   : > { %v933_v54 = vmul.f32 0.70710677, %v930_v52  ;;  %v932_v31 = vmul.f32 0.5, %v930_v52 }
 0x744   : > { %v934_v56 = vand.u32 2147483647, %v933_v54  ;;  %vm967_vm1 = vcmp.ge.f32.partialorder %v933_v54, 0.0 }
 0x746   : > { %v935_v58 = vmul.f32 0.3275911, %v934_v56  ;;  %v961_v13 = vsub.f32 0.0, %v934_v56 }
 0x748   : > { %v936_v60 = vadd.f32 1.0, %v935_v58  ;;  %v962_v17 = vmul.f32 %v961_v13, %v934_v56 }
 0x74a   : > { %1197 = vrcp.f32 %v936_v60  ;;  %v948_v5 = vand.u32 2147483648, %v936_v60  ;;  %v946_v9 = vand.u32 2147483647, %v936_v60  ;;  %vm942_vm13 = vweird.f32 %v936_v60 }
 0x74b   : > { %v963_v21 = vmul.f32 1.442695, %v962_v17 }
 0x74c   : > { %v949_v11 = vor.u32 1.1754944e-38, %v948_v5  ;;  %vm947_vm15 = vcmp.eq.f32.partialorder %v946_v9, 8.507059e+37 }
 0x74d   : > { %1199 = vpow2.f32 %v963_v21 }
 0x750   : > { %v1198_v3 = vpop.eup %1197 }
 0x751   : > { %v938_v4 = vmul.f32 %v1198_v3, %v936_v60  ;;  %vm943_vm12 = vweird.f32 %v1198_v3 }
 0x752   : > { %vm944_vm14 = vmor %vm942_vm13, %vm943_vm12 }
 0x753   : > { %v939_v63 = vsub.f32 1.0, %v938_v4  ;;  %v1200_v0 = vpop.eup %1199 }
 0x755   : > { %v940_v7 = vmul.f32 %v1198_v3, %v939_v63 }
 0x757   : > { %v941_v10 = vadd.f32 %v1198_v3, %v940_v7 }
 0x759   : > { %v945_v12 = vsel %vm944_vm14, %v1198_v3, %v941_v10 }
 0x75a   : > { %v950_v14 = vsel %vm947_vm15, %v949_v11, %v945_v12 }
 0x75b   : > { %v952_v15 = vmul.f32 1.0614054, %v950_v14 }
 0x75d   : > { %v953_v16 = vadd.f32 -1.4531521, %v952_v15 }
 0x75f   : > { %v954_v18 = vmul.f32 %v953_v16, %v950_v14 }
 0x761   : > { %v955_v20 = vadd.f32 1.4214138, %v954_v18 }
 0x763   : > { %v956_v22 = vmul.f32 %v955_v20, %v950_v14 }
 0x765   : > { %v957_v23 = vadd.f32 -0.28449672, %v956_v22 }
 0x767   : > { %v958_v24 = vmul.f32 %v957_v23, %v950_v14 }
 0x769   : > { %v959_v25 = vadd.f32 0.2548296, %v958_v24 }
 0x76b   : > { %v960_v26 = vmul.f32 %v959_v25, %v950_v14 }
 0x76d   : > { %v965_v27 = vmul.f32 %v1200_v0, %v960_v26 }
 0x76f   : > { %v966_v28 = vsub.f32 1.0, %v965_v27 }
 0x771   : > { %v968_v29 = vsub.f32 0.0, %v966_v28 }
 0x773   : > { %v969_v30 = vsel %vm967_vm1, %v966_v28, %v968_v29 }
 0x774   : > { %v970_v32 = vadd.f32 1.0, %v969_v30 }
 0x776   : > { %v971_v33 = vmul.f32 %v970_v32, %v932_v31 }
 0x778   : > { %1008 = vmatmul.f32.vlgmr.msra.gmra.mxu0 %v971_v33 }
 0x7f5   : > { %v1009_v35 = vpop.f32.mrf.mxu0 }
 0x7f6   : > { %v1010_v36 = vadd.f32 %v1174_v34, %v1009_v35 }
 0x7f8   : > { %v1012_v37 = vadd.f32 %v1010_v36, %v1493_v19 }
 0x7fa   : > { %1013 = vst.msk [vmem:[%s431_s30] sm:$0xff] %vm439_vm0, %v1012_v37 }
 0x7fb   : > { %1228 = shalt.err (!%p1225_p3)
}
 0x7fc   : > { %1114 = dma.vmem_to_hbm [thread:$0]  (%p1382_p5), %s1028_s15, 128, %s1030_s2, %s1015_s29  }
 0x7fd PF: > { %p1120_p4 = scmp.ge.s32.totalorder %s1263_s28, 2  ;;  %s1041_s16 = sand.u32 1, %s1251_s25  }
 0x7fe   : > { %s1042_s24 = scalar_lea.sflag [#allocation3], %s1041_s16 }
 0x7ff   : > { %p1117_p7 = pnand %p1120_p4, %p1386_p6 }
 0x801   : > { %p1118_p8 = pneg %p1117_p7 }
 0x803   : > { %1246 = dma.done.wait (%p1118_p8), %s1042_s24, 128  }
 0x804   : > { %1248 = vsyncadd (%p1118_p8), %s1042_s24, 4294967168  ;;  %p23_p9 = scmp.ge.s32.totalorder %s1369_s14, 4   ;;  %s1634_s25 = smov %s1255_s26 }
 0x805   : > { %s1635_s26 = smov %s1259_s27  ;;  %s1636_s27 = smov %s1380_s17 }
 0x806   : > { %s1637_s28 = smov %s1369_s14  ;;  %25 = sbr.rel (!%p23_p9) target bundleno = 8 (0x8), region = 107 }
 0x80b   :  { %1048 = vsyncpa [#allocation3], 1 }
 0x80c   :  { %1050 = vsyncpa [#allocation3 + $0x1], 1 }

</bundles_post_ra>
